<compile_context>
chip_gen: v5e
topology: v5e:2x2
jax: 0.10.0
libtpu: 0.0.40
codegen_flags: <defaults>
</compile_context>

<pallas_src>
import jax
import jax.numpy as jnp
from jax.experimental import pallas as pl
from jax.experimental.pallas import tpu as pltpu

INPUT_SIZE = 12
IN_FEAT = 16          # input features padded 12 -> 16 (NOT 128)
HIDDEN = 128
NUM_LAYERS = 3
FC1 = 32


def _round_up(n, m):
    return (n + m - 1) // m * m


def _cdiv(a, b):
    return (a + b - 1) // b


def _permute_gates(a, axis):
    """Reorder PyTorch gate blocks [i, f, g, o] -> [i, f, o, g] along `axis`."""
    H = HIDDEN
    i_f = jax.lax.slice_in_dim(a, 0, 2 * H, axis=axis)
    g = jax.lax.slice_in_dim(a, 2 * H, 3 * H, axis=axis)
    o = jax.lax.slice_in_dim(a, 3 * H, 4 * H, axis=axis)
    return jnp.concatenate([i_f, o, g], axis=axis)


def _pack_params(params):
    """Pack PyTorch-layout params into the kernel's layout (gate order [i,f,o,g])."""
    H = HIDDEN
    # layer-0 input weights, features padded 12 -> 16 with zero rows
    wih0 = jnp.zeros((IN_FEAT, 4 * H), jnp.float32)
    wih0 = wih0.at[:INPUT_SIZE, :].set(params["w_ih_0"].T)
    wih0 = _permute_gates(wih0, axis=1).astype(jnp.bfloat16)            # (16, 4H)
    # layers 1..2 input weights (K = H)
    wih12 = jnp.stack(
        [_permute_gates(params[f"w_ih_{l}"].T, axis=1) for l in (1, 2)]
    ).astype(jnp.bfloat16)                                              # (2, H, 4H)
    # hidden weights for all layers
    whh = jnp.stack(
        [_permute_gates(params[f"w_hh_{l}"].T, axis=1) for l in range(NUM_LAYERS)]
    ).astype(jnp.bfloat16)                                              # (3, H, 4H)
    # fused biases
    bias = jnp.stack(
        [_permute_gates(params[f"b_ih_{l}"] + params[f"b_hh_{l}"], axis=0)
         for l in range(NUM_LAYERS)]
    )[:, None, :].astype(jnp.float32)                                   # (3, 1, 4H)
    w1 = params["fc1_w"].T.astype(jnp.float32)                          # (H, 32)
    b1 = params["fc1_b"][None, :].astype(jnp.float32)                   # (1, 32)
    w2 = params["fc2_w"].T.astype(jnp.float32)                          # (32, 1)
    b2 = params["fc2_b"][None, :].astype(jnp.float32)                   # (1, 1)
    return wih0, wih12, whh, bias, w1, b1, w2, b2


def _lstm_model_kernel(x_ref, wih0_ref, wih12_ref, whh_ref, b_ref,
                       w1_ref, b1_ref, w2_ref, b2_ref,
                       out_ref,
                       seq_ref, ig_ref, h_ref, c_ref):
    """One grid step == one batch tile.  Layer-major: per layer, one big
    input-side matmul over all time steps, then a hidden-only recurrence."""
    H = HIDDEN
    ST = x_ref.shape[0]          # S * TB rows, time-major within the tile
    TB = h_ref.shape[0]
    S = ST // TB
    unroll = 2 if S % 2 == 0 else 1   # modest unroll; never full unroll

    for l in range(NUM_LAYERS):
        # ---- (1) input-side gate pre-activations for ALL time steps:
        #          one (S*TB, K) @ (K, 4H) bf16 MXU matmul, bias fused here.
        if l == 0:
            xin = x_ref[...].astype(jnp.bfloat16)            # (S*TB, 16)
            w_in = wih0_ref[...]                             # (16, 4H)
        else:
            xin = seq_ref[...].astype(jnp.bfloat16)          # (S*TB, H)
            w_in = wih12_ref[l - 1]                          # (H, 4H)
        ig_ref[...] = (jnp.dot(xin, w_in, preferred_element_type=jnp.float32)
                       + b_ref[l])                           # (S*TB, 4H) f32

        # ---- (2) recurrence: only the (TB,H)@(H,4H) hidden matmul per step.
        h_ref[...] = jnp.zeros_like(h_ref)
        c_ref[...] = jnp.zeros_like(c_ref)
        w_hh = whh_ref[l]        # (H, 4H) bf16, resident across all S steps

        def one_step(t, l=l, w_hh=w_hh):
            r0 = pl.multiple_of(t * TB, 8)
            gates = ig_ref[pl.ds(r0, TB), :] + jnp.dot(
                h_ref[...].astype(jnp.bfloat16), w_hh,
                preferred_element_type=jnp.float32)          # (TB, 4H) f32
            # gate order [i, f, o, g]: one sigmoid bank + one tanh bank
            sig = jax.nn.sigmoid(gates[:, :3 * H])
            g_g = jnp.tanh(gates[:, 3 * H:])
            i_g = sig[:, 0 * H:1 * H]
            f_g = sig[:, 1 * H:2 * H]
            o_g = sig[:, 2 * H:3 * H]
            c_new = f_g * c_ref[...] + i_g * g_g
            h_new = o_g * jnp.tanh(c_new)
            c_ref[...] = c_new
            h_ref[...] = h_new
            if l + 1 < NUM_LAYERS:
                # next layer's input sequence (inter-layer dropout = identity)
                seq_ref[pl.ds(r0, TB), :] = h_new

        def steps(tt, carry):
            for u in range(unroll):
                one_step(tt * unroll + u)
            return carry

        jax.lax.fori_loop(0, S // unroll, steps, 0)

    # head: dropout(out[:, -1, :]) (identity, eval) -> relu(fc1) -> fc2, f32
    hid = jax.nn.relu(
        jnp.dot(h_ref[...], w1_ref[...], preferred_element_type=jnp.float32)
        + b1_ref[...])
    out_ref[...] = (jnp.dot(hid, w2_ref[...], preferred_element_type=jnp.float32)
                    + b2_ref[...])


def lstm_model_forward(x, params):
    """x: (batch, seq, input) float32 -> (batch, 1) float32."""
    B, S, I = x.shape
    assert I == INPUT_SIZE

    # Batch tiling: >= 2 tiles once B >= 16 so both v7x TensorCores get work.
    B8 = _round_up(B, 8)
    if B8 <= 8:
        n_tiles, TB = 1, B8
    else:
        n_tiles = max(2, _cdiv(B8, 128))
        TB = _round_up(_cdiv(B8, n_tiles), 8)
        n_tiles = _cdiv(B8, TB)
    B_pad = n_tiles * TB

    # Wrapper-side layout: pad batch, pad features 12 -> 16 (NOT 128), and
    # flatten to a 2-D slab with (tile, time, batch-in-tile) row order so the
    # kernel never needs an in-kernel reshape and the block's last dim equals
    # the full array dim.
    x_pad = jnp.zeros((B_pad, S, IN_FEAT), jnp.float32)
    x_pad = x_pad.at[:B, :, :INPUT_SIZE].set(x.astype(jnp.float32))
    x_flat = (x_pad.reshape(n_tiles, TB, S, IN_FEAT)
              .transpose(0, 2, 1, 3)
              .reshape(n_tiles * S * TB, IN_FEAT))

    wih0, wih12, whh, bias, w1, b1, w2, b2 = _pack_params(params)

    H = HIDDEN
    # NOTE: the weight/bias specs below have constant index maps; Pallas may
    # still double-buffer them (~1 MB waste) — acceptable at these sizes.
    out_pad = pl.pallas_call(
        _lstm_model_kernel,
        out_shape=jax.ShapeDtypeStruct((B_pad, 1), jnp.float32),
        grid_spec=pltpu.PrefetchScalarGridSpec(
            num_scalar_prefetch=0,
            grid=(n_tiles,),
            in_specs=[
                pl.BlockSpec((S * TB, IN_FEAT), lambda b: (b, 0)),            # x tile
                pl.BlockSpec((IN_FEAT, 4 * H), lambda b: (0, 0)),             # W_ih layer 0
                pl.BlockSpec((NUM_LAYERS - 1, H, 4 * H), lambda b: (0, 0, 0)),  # W_ih layers 1-2
                pl.BlockSpec((NUM_LAYERS, H, 4 * H), lambda b: (0, 0, 0)),    # W_hh
                pl.BlockSpec((NUM_LAYERS, 1, 4 * H), lambda b: (0, 0, 0)),    # fused bias
                pl.BlockSpec((H, FC1), lambda b: (0, 0)),                     # fc1 W
                pl.BlockSpec((1, FC1), lambda b: (0, 0)),                     # fc1 b
                pl.BlockSpec((FC1, 1), lambda b: (0, 0)),                     # fc2 W
                pl.BlockSpec((1, 1), lambda b: (0, 0)),                       # fc2 b
            ],
            out_specs=pl.BlockSpec((TB, 1), lambda b: (b, 0)),
            scratch_shapes=[
                pltpu.VMEM((S * TB, H), jnp.float32),        # inter-layer activations
                pltpu.VMEM((S * TB, 4 * H), jnp.float32),    # input-side gate pre-acts
                pltpu.VMEM((TB, H), jnp.float32),            # h
                pltpu.VMEM((TB, H), jnp.float32),            # c
            ]),
        compiler_params=pltpu.CompilerParams(
            dimension_semantics=("parallel",),               # batch tiles independent
            vmem_limit_bytes=32 * 1024 * 1024),              # explicit (v5e default is 16 MiB)
    )(x_flat, wih0, wih12, whh, bias, w1, b1, w2, b2)
    return out_pad[:B]


def init_params(key):
    """Deterministic synthetic parameters, PyTorch-style uniform(-k, k)."""
    params = {}
    k_lstm = 1.0 / jnp.sqrt(HIDDEN)
    for l in range(NUM_LAYERS):
        in_l = INPUT_SIZE if l == 0 else HIDDEN
        key, k1, k2, k3, k4 = jax.random.split(key, 5)
        params[f"w_ih_{l}"] = jax.random.uniform(k1, (4 * HIDDEN, in_l),
                                                 minval=-k_lstm, maxval=k_lstm)
        params[f"w_hh_{l}"] = jax.random.uniform(k2, (4 * HIDDEN, HIDDEN),
                                                 minval=-k_lstm, maxval=k_lstm)
        params[f"b_ih_{l}"] = jax.random.uniform(k3, (4 * HIDDEN,),
                                                 minval=-k_lstm, maxval=k_lstm)
        params[f"b_hh_{l}"] = jax.random.uniform(k4, (4 * HIDDEN,),
                                                 minval=-k_lstm, maxval=k_lstm)
    key, k1, k2, k3, k4 = jax.random.split(key, 5)
    k_fc1 = 1.0 / jnp.sqrt(HIDDEN)
    k_fc2 = 1.0 / jnp.sqrt(FC1)
    params["fc1_w"] = jax.random.uniform(k1, (FC1, HIDDEN), minval=-k_fc1, maxval=k_fc1)
    params["fc1_b"] = jax.random.uniform(k2, (FC1,), minval=-k_fc1, maxval=k_fc1)
    params["fc2_w"] = jax.random.uniform(k3, (1, FC1), minval=-k_fc2, maxval=k_fc2)
    params["fc2_b"] = jax.random.uniform(k4, (1,), minval=-k_fc2, maxval=k_fc2)
    return {k: v.astype(jnp.float32) for k, v in params.items()}


def reference_forward(x, params):
    """Pure-JAX reference of the PyTorch forward (eval mode), written from the
    original weight layout / gate order.  Matmul inputs are cast to bf16 (f32
    accumulation) to mirror the kernel's weight quantization (== default TPU
    f32 matmul precision)."""
    bf16 = jnp.bfloat16

    def cell(inp, h, c, wih, whh, b):
        gates = (jnp.dot(inp.astype(bf16), wih.T.astype(bf16),
                         preferred_element_type=jnp.float32)
                 + jnp.dot(h.astype(bf16), whh.T.astype(bf16),
                           preferred_element_type=jnp.float32)
                 + b)
        i_g, f_g, g_g, o_g = jnp.split(gates, 4, axis=-1)
        i_g = jax.nn.sigmoid(i_g)
        f_g = jax.nn.sigmoid(f_g)
        g_g = jnp.tanh(g_g)
        o_g = jax.nn.sigmoid(o_g)
        c_new = f_g * c + i_g * g_g
        h_new = o_g * jnp.tanh(c_new)
        return h_new, c_new

    B = x.shape[0]
    h = jnp.zeros((NUM_LAYERS, B, HIDDEN), jnp.float32)
    c = jnp.zeros((NUM_LAYERS, B, HIDDEN), jnp.float32)

    def step(carry, x_t):
        h, c = carry
        inp = x_t
        hs, cs = [], []
        for l in range(NUM_LAYERS):
            b = params[f"b_ih_{l}"] + params[f"b_hh_{l}"]
            hn, cn = cell(inp, h[l], c[l],
                          params[f"w_ih_{l}"], params[f"w_hh_{l}"], b)
            hs.append(hn)
            cs.append(cn)
            inp = hn
        return (jnp.stack(hs), jnp.stack(cs)), inp

    (_, _), outs = jax.lax.scan(step, (h, c), jnp.transpose(x, (1, 0, 2)))
    last = outs[-1]                                   # out[:, -1, :]
    hid = jax.nn.relu(last @ params["fc1_w"].T + params["fc1_b"])
    return hid @ params["fc2_w"].T + params["fc2_b"]  # (B, 1)


if __name__ == "__main__":
    key = jax.random.PRNGKey(0)
    k_x, k_p = jax.random.split(key)

    B, S = 4, 8
    x = jax.random.normal(k_x, (B, S, INPUT_SIZE), dtype=jnp.float32)
    params = init_params(k_p)

    out = jax.block_until_ready(lstm_model_forward(x, params))
    ref = jax.block_until_ready(reference_forward(x, params))

    assert out.shape == (B, 1), out.shape
    assert jnp.allclose(out, ref, rtol=2e-3, atol=2e-3), (out, ref)
    print("KERNEL_OK")
</pallas_src>

<mosaic_0001>
module attributes {stable_mosaic.version = 11 : i64} {
  func.func @_lstm_model_kernel(%arg0: i32, %arg1: memref<64x16xf32, #tpu.memory_space<vmem>>, %arg2: memref<16x512xbf16, #tpu.memory_space<vmem>>, %arg3: memref<2x128x512xbf16, #tpu.memory_space<vmem>>, %arg4: memref<3x128x512xbf16, #tpu.memory_space<vmem>>, %arg5: memref<3x1x512xf32, #tpu.memory_space<vmem>>, %arg6: memref<128x32xf32, #tpu.memory_space<vmem>>, %arg7: memref<1x32xf32, #tpu.memory_space<vmem>>, %arg8: memref<32x1xf32, #tpu.memory_space<vmem>>, %arg9: memref<1x1xf32, #tpu.memory_space<vmem>>, %arg10: memref<8x1xf32, #tpu.memory_space<vmem>>, %arg11: memref<64x128xf32, #tpu.memory_space<vmem>>, %arg12: memref<64x512xf32, #tpu.memory_space<vmem>>, %arg13: memref<8x128xf32, #tpu.memory_space<vmem>>, %arg14: memref<8x128xf32, #tpu.memory_space<vmem>>) attributes {dimension_semantics = [#tpu.dimension_semantics<parallel>], iteration_bounds = array<i64: 1>, scalar_prefetch = 0 : i64, scratch_operands = 4 : i64, tpu.core_type = #tpu.core_type<tc>, window_params = [{transform_indices = @transform_0, window_bounds = array<i64: 64, 16>}, {pipeline_mode = #tpu.pipeline_mode<synchronous>, transform_indices = @transform_1, window_bounds = array<i64: 16, 512>}, {pipeline_mode = #tpu.pipeline_mode<synchronous>, transform_indices = @transform_2, window_bounds = array<i64: 2, 128, 512>}, {pipeline_mode = #tpu.pipeline_mode<synchronous>, transform_indices = @transform_3, window_bounds = array<i64: 3, 128, 512>}, {pipeline_mode = #tpu.pipeline_mode<synchronous>, transform_indices = @transform_4, window_bounds = array<i64: 3, 1, 512>}, {pipeline_mode = #tpu.pipeline_mode<synchronous>, transform_indices = @transform_5, window_bounds = array<i64: 128, 32>}, {pipeline_mode = #tpu.pipeline_mode<synchronous>, transform_indices = @transform_6, window_bounds = array<i64: 1, 32>}, {pipeline_mode = #tpu.pipeline_mode<synchronous>, transform_indices = @transform_7, window_bounds = array<i64: 32, 1>}, {pipeline_mode = #tpu.pipeline_mode<synchronous>, transform_indices = @transform_8, window_bounds = array<i64: 1, 1>}, {transform_indices = @transform_9, window_bounds = array<i64: 8, 1>}]} {
    %c0 = arith.constant 0 : index
    %c0_0 = arith.constant 0 : index
    %0 = vector.load %arg1[%c0, %c0_0] : memref<64x16xf32, #tpu.memory_space<vmem>>, vector<64x16xf32>
    %1 = arith.truncf %0 : vector<64x16xf32> to vector<64x16xbf16>
    %c0_1 = arith.constant 0 : index
    %c0_2 = arith.constant 0 : index
    %2 = vector.load %arg2[%c0_1, %c0_2] : memref<16x512xbf16, #tpu.memory_space<vmem>>, vector<16x512xbf16>
    %cst = arith.constant dense<0.000000e+00> : vector<64x512xf32>
    %3 = tpu.matmul %1, %2, %cst {dimension_numbers = #tpu.dot_dimension_numbers<[1], [0], [0], [1], [0, 0, 1, 1], [], []>} : vector<64x16xbf16>, vector<16x512xbf16>, vector<64x512xf32> -> vector<64x512xf32>
    %c0_3 = arith.constant 0 : index
    %c0_4 = arith.constant 0 : index
    %c0_5 = arith.constant 0 : index
    %4 = vector.load %arg5[%c0_3, %c0_4, %c0_5] : memref<3x1x512xf32, #tpu.memory_space<vmem>>, vector<1x1x512xf32>
    %5 = vector.shape_cast %4 : vector<1x1x512xf32> to vector<1x512xf32>
    %6 = vector.broadcast %5 : vector<1x512xf32> to vector<64x512xf32>
    %7 = arith.addf %3, %6 : vector<64x512xf32>
    %c0_6 = arith.constant 0 : index
    %c0_7 = arith.constant 0 : index
    %8 = vector.load %arg12[%c0_6, %c0_7] : memref<64x512xf32, #tpu.memory_space<vmem>>, vector<64x512xf32>
    tpu.vector_store %arg12[%c0_6, %c0_7], %7 {strides = array<i32>} : memref<64x512xf32, #tpu.memory_space<vmem>>, vector<64x512xf32>,
    %cst_8 = arith.constant 0.000000e+00 : f32
    %9 = vector.broadcast %cst_8 : f32 to vector<8x128xf32>
    %c0_9 = arith.constant 0 : index
    %c0_10 = arith.constant 0 : index
    %10 = vector.load %arg13[%c0_9, %c0_10] : memref<8x128xf32, #tpu.memory_space<vmem>>, vector<8x128xf32>
    tpu.vector_store %arg13[%c0_9, %c0_10], %9 {strides = array<i32>} : memref<8x128xf32, #tpu.memory_space<vmem>>, vector<8x128xf32>,
    %cst_11 = arith.constant 0.000000e+00 : f32
    %11 = vector.broadcast %cst_11 : f32 to vector<8x128xf32>
    %c0_12 = arith.constant 0 : index
    %c0_13 = arith.constant 0 : index
    %12 = vector.load %arg14[%c0_12, %c0_13] : memref<8x128xf32, #tpu.memory_space<vmem>>, vector<8x128xf32>
    tpu.vector_store %arg14[%c0_12, %c0_13], %11 {strides = array<i32>} : memref<8x128xf32, #tpu.memory_space<vmem>>, vector<8x128xf32>,
    %c0_14 = arith.constant 0 : index
    %c0_15 = arith.constant 0 : index
    %c0_16 = arith.constant 0 : index
    %13 = vector.load %arg4[%c0_14, %c0_15, %c0_16] : memref<3x128x512xbf16, #tpu.memory_space<vmem>>, vector<1x128x512xbf16>
    %14 = vector.shape_cast %13 : vector<1x128x512xbf16> to vector<128x512xbf16>
    %c0_i32 = arith.constant 0 : i32
    %c4_i32 = arith.constant 4 : i32
    %15 = arith.addi %c0_i32, %c4_i32 : i32
    %c1_i32 = arith.constant 1 : i32
    scf.for %arg15 = %c0_i32 to %15 step %c1_i32  : i32 {
      %c2_i32 = arith.constant 2 : i32
      %64 = arith.muli %arg15, %c2_i32 : i32
      %c0_i32_79 = arith.constant 0 : i32
      %65 = arith.addi %64, %c0_i32_79 : i32
      %c8_i32 = arith.constant 8 : i32
      %66 = arith.muli %65, %c8_i32 : i32
      %67 = tpu.assume_multiple %66, 8 : i32
      %68 = arith.index_cast %67 : i32 to index
      %c0_80 = arith.constant 0 : index
      %69 = vector.load %arg12[%68, %c0_80] : memref<64x512xf32, #tpu.memory_space<vmem>>, vector<8x512xf32>
      %c0_81 = arith.constant 0 : index
      %c0_82 = arith.constant 0 : index
      %70 = vector.load %arg13[%c0_81, %c0_82] : memref<8x128xf32, #tpu.memory_space<vmem>>, vector<8x128xf32>
      %71 = arith.truncf %70 : vector<8x128xf32> to vector<8x128xbf16>
      %cst_83 = arith.constant dense<0.000000e+00> : vector<8x512xf32>
      %72 = tpu.matmul %71, %14, %cst_83 {dimension_numbers = #tpu.dot_dimension_numbers<[1], [0], [0], [1], [0, 0, 1, 1], [], []>} : vector<8x128xbf16>, vector<128x512xbf16>, vector<8x512xf32> -> vector<8x512xf32>
      %73 = arith.addf %69, %72 : vector<8x512xf32>
      %74 = vector.extract_strided_slice %73 {offsets = [0, 0], sizes = [8, 384], strides = [1, 1]} : vector<8x512xf32> to vector<8x384xf32>
      %75 = arith.negf %74 : vector<8x384xf32>
      %76 = math.exp %75 : vector<8x384xf32>
      %cst_84 = arith.constant 1.000000e+00 : f32
      %77 = vector.broadcast %cst_84 : f32 to vector<8x384xf32>
      %78 = arith.addf %77, %76 : vector<8x384xf32>
      %79 = arith.divf %77, %78 : vector<8x384xf32>
      %80 = vector.extract_strided_slice %73 {offsets = [0, 384], sizes = [8, 128], strides = [1, 1]} : vector<8x512xf32> to vector<8x128xf32>
      %81 = math.tanh %80 : vector<8x128xf32>
      %82 = vector.extract_strided_slice %79 {offsets = [0, 0], sizes = [8, 128], strides = [1, 1]} : vector<8x384xf32> to vector<8x128xf32>
      %83 = vector.extract_strided_slice %79 {offsets = [0, 128], sizes = [8, 128], strides = [1, 1]} : vector<8x384xf32> to vector<8x128xf32>
      %84 = vector.extract_strided_slice %79 {offsets = [0, 256], sizes = [8, 128], strides = [1, 1]} : vector<8x384xf32> to vector<8x128xf32>
      %c0_85 = arith.constant 0 : index
      %c0_86 = arith.constant 0 : index
      %85 = vector.load %arg14[%c0_85, %c0_86] : memref<8x128xf32, #tpu.memory_space<vmem>>, vector<8x128xf32>
      %86 = arith.mulf %83, %85 : vector<8x128xf32>
      %87 = arith.mulf %82, %81 : vector<8x128xf32>
      %88 = arith.addf %86, %87 : vector<8x128xf32>
      %89 = math.tanh %88 : vector<8x128xf32>
      %90 = arith.mulf %84, %89 : vector<8x128xf32>
      %c0_87 = arith.constant 0 : index
      %c0_88 = arith.constant 0 : index
      %91 = vector.load %arg14[%c0_87, %c0_88] : memref<8x128xf32, #tpu.memory_space<vmem>>, vector<8x128xf32>
      tpu.vector_store %arg14[%c0_87, %c0_88], %88 {strides = array<i32>} : memref<8x128xf32, #tpu.memory_space<vmem>>, vector<8x128xf32>,
      %c0_89 = arith.constant 0 : index
      %c0_90 = arith.constant 0 : index
      %92 = vector.load %arg13[%c0_89, %c0_90] : memref<8x128xf32, #tpu.memory_space<vmem>>, vector<8x128xf32>
      tpu.vector_store %arg13[%c0_89, %c0_90], %90 {strides = array<i32>} : memref<8x128xf32, #tpu.memory_space<vmem>>, vector<8x128xf32>,
      %93 = arith.index_cast %67 : i32 to index
      %c0_91 = arith.constant 0 : index
      %94 = vector.load %arg11[%93, %c0_91] : memref<64x128xf32, #tpu.memory_space<vmem>>, vector<8x128xf32>
      tpu.vector_store %arg11[%93, %c0_91], %90 {strides = array<i32>} : memref<64x128xf32, #tpu.memory_space<vmem>>, vector<8x128xf32>,
      %c2_i32_92 = arith.constant 2 : i32
      %95 = arith.muli %arg15, %c2_i32_92 : i32
      %c1_i32_93 = arith.constant 1 : i32
      %96 = arith.addi %95, %c1_i32_93 : i32
      %c8_i32_94 = arith.constant 8 : i32
      %97 = arith.muli %96, %c8_i32_94 : i32
      %98 = tpu.assume_multiple %97, 8 : i32
      %99 = arith.index_cast %98 : i32 to index
      %c0_95 = arith.constant 0 : index
      %100 = vector.load %arg12[%99, %c0_95] : memref<64x512xf32, #tpu.memory_space<vmem>>, vector<8x512xf32>
      %c0_96 = arith.constant 0 : index
      %c0_97 = arith.constant 0 : index
      %101 = vector.load %arg13[%c0_96, %c0_97] : memref<8x128xf32, #tpu.memory_space<vmem>>, vector<8x128xf32>
      %102 = arith.truncf %101 : vector<8x128xf32> to vector<8x128xbf16>
      %cst_98 = arith.constant dense<0.000000e+00> : vector<8x512xf32>
      %103 = tpu.matmul %102, %14, %cst_98 {dimension_numbers = #tpu.dot_dimension_numbers<[1], [0], [0], [1], [0, 0, 1, 1], [], []>} : vector<8x128xbf16>, vector<128x512xbf16>, vector<8x512xf32> -> vector<8x512xf32>
      %104 = arith.addf %100, %103 : vector<8x512xf32>
      %105 = vector.extract_strided_slice %104 {offsets = [0, 0], sizes = [8, 384], strides = [1, 1]} : vector<8x512xf32> to vector<8x384xf32>
      %106 = arith.negf %105 : vector<8x384xf32>
      %107 = math.exp %106 : vector<8x384xf32>
      %cst_99 = arith.constant 1.000000e+00 : f32
      %108 = vector.broadcast %cst_99 : f32 to vector<8x384xf32>
      %109 = arith.addf %108, %107 : vector<8x384xf32>
      %110 = arith.divf %108, %109 : vector<8x384xf32>
      %111 = vector.extract_strided_slice %104 {offsets = [0, 384], sizes = [8, 128], strides = [1, 1]} : vector<8x512xf32> to vector<8x128xf32>
      %112 = math.tanh %111 : vector<8x128xf32>
      %113 = vector.extract_strided_slice %110 {offsets = [0, 0], sizes = [8, 128], strides = [1, 1]} : vector<8x384xf32> to vector<8x128xf32>
      %114 = vector.extract_strided_slice %110 {offsets = [0, 128], sizes = [8, 128], strides = [1, 1]} : vector<8x384xf32> to vector<8x128xf32>
      %115 = vector.extract_strided_slice %110 {offsets = [0, 256], sizes = [8, 128], strides = [1, 1]} : vector<8x384xf32> to vector<8x128xf32>
      %c0_100 = arith.constant 0 : index
      %c0_101 = arith.constant 0 : index
      %116 = vector.load %arg14[%c0_100, %c0_101] : memref<8x128xf32, #tpu.memory_space<vmem>>, vector<8x128xf32>
      %117 = arith.mulf %114, %116 : vector<8x128xf32>
      %118 = arith.mulf %113, %112 : vector<8x128xf32>
      %119 = arith.addf %117, %118 : vector<8x128xf32>
      %120 = math.tanh %119 : vector<8x128xf32>
      %121 = arith.mulf %115, %120 : vector<8x128xf32>
      %c0_102 = arith.constant 0 : index
      %c0_103 = arith.constant 0 : index
      %122 = vector.load %arg14[%c0_102, %c0_103] : memref<8x128xf32, #tpu.memory_space<vmem>>, vector<8x128xf32>
      tpu.vector_store %arg14[%c0_102, %c0_103], %119 {strides = array<i32>} : memref<8x128xf32, #tpu.memory_space<vmem>>, vector<8x128xf32>,
      %c0_104 = arith.constant 0 : index
      %c0_105 = arith.constant 0 : index
      %123 = vector.load %arg13[%c0_104, %c0_105] : memref<8x128xf32, #tpu.memory_space<vmem>>, vector<8x128xf32>
      tpu.vector_store %arg13[%c0_104, %c0_105], %121 {strides = array<i32>} : memref<8x128xf32, #tpu.memory_space<vmem>>, vector<8x128xf32>,
      %124 = arith.index_cast %98 : i32 to index
      %c0_106 = arith.constant 0 : index
      %125 = vector.load %arg11[%124, %c0_106] : memref<64x128xf32, #tpu.memory_space<vmem>>, vector<8x128xf32>
      tpu.vector_store %arg11[%124, %c0_106], %121 {strides = array<i32>} : memref<64x128xf32, #tpu.memory_space<vmem>>, vector<8x128xf32>,
    }
    %c4_i32_17 = arith.constant 4 : i32
    %c0_18 = arith.constant 0 : index
    %c0_19 = arith.constant 0 : index
    %16 = vector.load %arg11[%c0_18, %c0_19] : memref<64x128xf32, #tpu.memory_space<vmem>>, vector<64x128xf32>
    %17 = arith.truncf %16 : vector<64x128xf32> to vector<64x128xbf16>
    %c0_20 = arith.constant 0 : index
    %c0_21 = arith.constant 0 : index
    %c0_22 = arith.constant 0 : index
    %18 = vector.load %arg3[%c0_20, %c0_21, %c0_22] : memref<2x128x512xbf16, #tpu.memory_space<vmem>>, vector<1x128x512xbf16>
    %19 = vector.shape_cast %18 : vector<1x128x512xbf16> to vector<128x512xbf16>
    %cst_23 = arith.constant dense<0.000000e+00> : vector<64x512xf32>
    %20 = tpu.matmul %17, %19, %cst_23 {dimension_numbers = #tpu.dot_dimension_numbers<[1], [0], [0], [1], [0, 0, 1, 1], [], []>} : vector<64x128xbf16>, vector<128x512xbf16>, vector<64x512xf32> -> vector<64x512xf32>
    %c1 = arith.constant 1 : index
    %c0_24 = arith.constant 0 : index
    %c0_25 = arith.constant 0 : index
    %21 = vector.load %arg5[%c1, %c0_24, %c0_25] : memref<3x1x512xf32, #tpu.memory_space<vmem>>, vector<1x1x512xf32>
    %22 = vector.shape_cast %21 : vector<1x1x512xf32> to vector<1x512xf32>
    %23 = vector.broadcast %22 : vector<1x512xf32> to vector<64x512xf32>
    %24 = arith.addf %20, %23 : vector<64x512xf32>
    %c0_26 = arith.constant 0 : index
    %c0_27 = arith.constant 0 : index
    %25 = vector.load %arg12[%c0_26, %c0_27] : memref<64x512xf32, #tpu.memory_space<vmem>>, vector<64x512xf32>
    tpu.vector_store %arg12[%c0_26, %c0_27], %24 {strides = array<i32>} : memref<64x512xf32, #tpu.memory_space<vmem>>, vector<64x512xf32>,
    %cst_28 = arith.constant 0.000000e+00 : f32
    %26 = vector.broadcast %cst_28 : f32 to vector<8x128xf32>
    %c0_29 = arith.constant 0 : index
    %c0_30 = arith.constant 0 : index
    %27 = vector.load %arg13[%c0_29, %c0_30] : memref<8x128xf32, #tpu.memory_space<vmem>>, vector<8x128xf32>
    tpu.vector_store %arg13[%c0_29, %c0_30], %26 {strides = array<i32>} : memref<8x128xf32, #tpu.memory_space<vmem>>, vector<8x128xf32>,
    %cst_31 = arith.constant 0.000000e+00 : f32
    %28 = vector.broadcast %cst_31 : f32 to vector<8x128xf32>
    %c0_32 = arith.constant 0 : index
    %c0_33 = arith.constant 0 : index
    %29 = vector.load %arg14[%c0_32, %c0_33] : memref<8x128xf32, #tpu.memory_space<vmem>>, vector<8x128xf32>
    tpu.vector_store %arg14[%c0_32, %c0_33], %28 {strides = array<i32>} : memref<8x128xf32, #tpu.memory_space<vmem>>, vector<8x128xf32>,
    %c1_34 = arith.constant 1 : index
    %c0_35 = arith.constant 0 : index
    %c0_36 = arith.constant 0 : index
    %30 = vector.load %arg4[%c1_34, %c0_35, %c0_36] : memref<3x128x512xbf16, #tpu.memory_space<vmem>>, vector<1x128x512xbf16>
    %31 = vector.shape_cast %30 : vector<1x128x512xbf16> to vector<128x512xbf16>
    %c0_i32_37 = arith.constant 0 : i32
    %c4_i32_38 = arith.constant 4 : i32
    %32 = arith.addi %c0_i32_37, %c4_i32_38 : i32
    %c1_i32_39 = arith.constant 1 : i32
    scf.for %arg15 = %c0_i32_37 to %32 step %c1_i32_39  : i32 {
      %c2_i32 = arith.constant 2 : i32
      %64 = arith.muli %arg15, %c2_i32 : i32
      %c0_i32_79 = arith.constant 0 : i32
      %65 = arith.addi %64, %c0_i32_79 : i32
      %c8_i32 = arith.constant 8 : i32
      %66 = arith.muli %65, %c8_i32 : i32
      %67 = tpu.assume_multiple %66, 8 : i32
      %68 = arith.index_cast %67 : i32 to index
      %c0_80 = arith.constant 0 : index
      %69 = vector.load %arg12[%68, %c0_80] : memref<64x512xf32, #tpu.memory_space<vmem>>, vector<8x512xf32>
      %c0_81 = arith.constant 0 : index
      %c0_82 = arith.constant 0 : index
      %70 = vector.load %arg13[%c0_81, %c0_82] : memref<8x128xf32, #tpu.memory_space<vmem>>, vector<8x128xf32>
      %71 = arith.truncf %70 : vector<8x128xf32> to vector<8x128xbf16>
      %cst_83 = arith.constant dense<0.000000e+00> : vector<8x512xf32>
      %72 = tpu.matmul %71, %31, %cst_83 {dimension_numbers = #tpu.dot_dimension_numbers<[1], [0], [0], [1], [0, 0, 1, 1], [], []>} : vector<8x128xbf16>, vector<128x512xbf16>, vector<8x512xf32> -> vector<8x512xf32>
      %73 = arith.addf %69, %72 : vector<8x512xf32>
      %74 = vector.extract_strided_slice %73 {offsets = [0, 0], sizes = [8, 384], strides = [1, 1]} : vector<8x512xf32> to vector<8x384xf32>
      %75 = arith.negf %74 : vector<8x384xf32>
      %76 = math.exp %75 : vector<8x384xf32>
      %cst_84 = arith.constant 1.000000e+00 : f32
      %77 = vector.broadcast %cst_84 : f32 to vector<8x384xf32>
      %78 = arith.addf %77, %76 : vector<8x384xf32>
      %79 = arith.divf %77, %78 : vector<8x384xf32>
      %80 = vector.extract_strided_slice %73 {offsets = [0, 384], sizes = [8, 128], strides = [1, 1]} : vector<8x512xf32> to vector<8x128xf32>
      %81 = math.tanh %80 : vector<8x128xf32>
      %82 = vector.extract_strided_slice %79 {offsets = [0, 0], sizes = [8, 128], strides = [1, 1]} : vector<8x384xf32> to vector<8x128xf32>
      %83 = vector.extract_strided_slice %79 {offsets = [0, 128], sizes = [8, 128], strides = [1, 1]} : vector<8x384xf32> to vector<8x128xf32>
      %84 = vector.extract_strided_slice %79 {offsets = [0, 256], sizes = [8, 128], strides = [1, 1]} : vector<8x384xf32> to vector<8x128xf32>
      %c0_85 = arith.constant 0 : index
      %c0_86 = arith.constant 0 : index
      %85 = vector.load %arg14[%c0_85, %c0_86] : memref<8x128xf32, #tpu.memory_space<vmem>>, vector<8x128xf32>
      %86 = arith.mulf %83, %85 : vector<8x128xf32>
      %87 = arith.mulf %82, %81 : vector<8x128xf32>
      %88 = arith.addf %86, %87 : vector<8x128xf32>
      %89 = math.tanh %88 : vector<8x128xf32>
      %90 = arith.mulf %84, %89 : vector<8x128xf32>
      %c0_87 = arith.constant 0 : index
      %c0_88 = arith.constant 0 : index
      %91 = vector.load %arg14[%c0_87, %c0_88] : memref<8x128xf32, #tpu.memory_space<vmem>>, vector<8x128xf32>
      tpu.vector_store %arg14[%c0_87, %c0_88], %88 {strides = array<i32>} : memref<8x128xf32, #tpu.memory_space<vmem>>, vector<8x128xf32>,
      %c0_89 = arith.constant 0 : index
      %c0_90 = arith.constant 0 : index
      %92 = vector.load %arg13[%c0_89, %c0_90] : memref<8x128xf32, #tpu.memory_space<vmem>>, vector<8x128xf32>
      tpu.vector_store %arg13[%c0_89, %c0_90], %90 {strides = array<i32>} : memref<8x128xf32, #tpu.memory_space<vmem>>, vector<8x128xf32>,
      %93 = arith.index_cast %67 : i32 to index
      %c0_91 = arith.constant 0 : index
      %94 = vector.load %arg11[%93, %c0_91] : memref<64x128xf32, #tpu.memory_space<vmem>>, vector<8x128xf32>
      tpu.vector_store %arg11[%93, %c0_91], %90 {strides = array<i32>} : memref<64x128xf32, #tpu.memory_space<vmem>>, vector<8x128xf32>,
      %c2_i32_92 = arith.constant 2 : i32
      %95 = arith.muli %arg15, %c2_i32_92 : i32
      %c1_i32_93 = arith.constant 1 : i32
      %96 = arith.addi %95, %c1_i32_93 : i32
      %c8_i32_94 = arith.constant 8 : i32
      %97 = arith.muli %96, %c8_i32_94 : i32
      %98 = tpu.assume_multiple %97, 8 : i32
      %99 = arith.index_cast %98 : i32 to index
      %c0_95 = arith.constant 0 : index
      %100 = vector.load %arg12[%99, %c0_95] : memref<64x512xf32, #tpu.memory_space<vmem>>, vector<8x512xf32>
      %c0_96 = arith.constant 0 : index
      %c0_97 = arith.constant 0 : index
      %101 = vector.load %arg13[%c0_96, %c0_97] : memref<8x128xf32, #tpu.memory_space<vmem>>, vector<8x128xf32>
      %102 = arith.truncf %101 : vector<8x128xf32> to vector<8x128xbf16>
      %cst_98 = arith.constant dense<0.000000e+00> : vector<8x512xf32>
      %103 = tpu.matmul %102, %31, %cst_98 {dimension_numbers = #tpu.dot_dimension_numbers<[1], [0], [0], [1], [0, 0, 1, 1], [], []>} : vector<8x128xbf16>, vector<128x512xbf16>, vector<8x512xf32> -> vector<8x512xf32>
      %104 = arith.addf %100, %103 : vector<8x512xf32>
      %105 = vector.extract_strided_slice %104 {offsets = [0, 0], sizes = [8, 384], strides = [1, 1]} : vector<8x512xf32> to vector<8x384xf32>
      %106 = arith.negf %105 : vector<8x384xf32>
      %107 = math.exp %106 : vector<8x384xf32>
      %cst_99 = arith.constant 1.000000e+00 : f32
      %108 = vector.broadcast %cst_99 : f32 to vector<8x384xf32>
      %109 = arith.addf %108, %107 : vector<8x384xf32>
      %110 = arith.divf %108, %109 : vector<8x384xf32>
      %111 = vector.extract_strided_slice %104 {offsets = [0, 384], sizes = [8, 128], strides = [1, 1]} : vector<8x512xf32> to vector<8x128xf32>
      %112 = math.tanh %111 : vector<8x128xf32>
      %113 = vector.extract_strided_slice %110 {offsets = [0, 0], sizes = [8, 128], strides = [1, 1]} : vector<8x384xf32> to vector<8x128xf32>
      %114 = vector.extract_strided_slice %110 {offsets = [0, 128], sizes = [8, 128], strides = [1, 1]} : vector<8x384xf32> to vector<8x128xf32>
      %115 = vector.extract_strided_slice %110 {offsets = [0, 256], sizes = [8, 128], strides = [1, 1]} : vector<8x384xf32> to vector<8x128xf32>
      %c0_100 = arith.constant 0 : index
      %c0_101 = arith.constant 0 : index
      %116 = vector.load %arg14[%c0_100, %c0_101] : memref<8x128xf32, #tpu.memory_space<vmem>>, vector<8x128xf32>
      %117 = arith.mulf %114, %116 : vector<8x128xf32>
      %118 = arith.mulf %113, %112 : vector<8x128xf32>
      %119 = arith.addf %117, %118 : vector<8x128xf32>
      %120 = math.tanh %119 : vector<8x128xf32>
      %121 = arith.mulf %115, %120 : vector<8x128xf32>
      %c0_102 = arith.constant 0 : index
      %c0_103 = arith.constant 0 : index
      %122 = vector.load %arg14[%c0_102, %c0_103] : memref<8x128xf32, #tpu.memory_space<vmem>>, vector<8x128xf32>
      tpu.vector_store %arg14[%c0_102, %c0_103], %119 {strides = array<i32>} : memref<8x128xf32, #tpu.memory_space<vmem>>, vector<8x128xf32>,
      %c0_104 = arith.constant 0 : index
      %c0_105 = arith.constant 0 : index
      %123 = vector.load %arg13[%c0_104, %c0_105] : memref<8x128xf32, #tpu.memory_space<vmem>>, vector<8x128xf32>
      tpu.vector_store %arg13[%c0_104, %c0_105], %121 {strides = array<i32>} : memref<8x128xf32, #tpu.memory_space<vmem>>, vector<8x128xf32>,
      %124 = arith.index_cast %98 : i32 to index
      %c0_106 = arith.constant 0 : index
      %125 = vector.load %arg11[%124, %c0_106] : memref<64x128xf32, #tpu.memory_space<vmem>>, vector<8x128xf32>
      tpu.vector_store %arg11[%124, %c0_106], %121 {strides = array<i32>} : memref<64x128xf32, #tpu.memory_space<vmem>>, vector<8x128xf32>,
    }
    %c4_i32_40 = arith.constant 4 : i32
    %c0_41 = arith.constant 0 : index
    %c0_42 = arith.constant 0 : index
    %33 = vector.load %arg11[%c0_41, %c0_42] : memref<64x128xf32, #tpu.memory_space<vmem>>, vector<64x128xf32>
    %34 = arith.truncf %33 : vector<64x128xf32> to vector<64x128xbf16>
    %c1_43 = arith.constant 1 : index
    %c0_44 = arith.constant 0 : index
    %c0_45 = arith.constant 0 : index
    %35 = vector.load %arg3[%c1_43, %c0_44, %c0_45] : memref<2x128x512xbf16, #tpu.memory_space<vmem>>, vector<1x128x512xbf16>
    %36 = vector.shape_cast %35 : vector<1x128x512xbf16> to vector<128x512xbf16>
    %cst_46 = arith.constant dense<0.000000e+00> : vector<64x512xf32>
    %37 = tpu.matmul %34, %36, %cst_46 {dimension_numbers = #tpu.dot_dimension_numbers<[1], [0], [0], [1], [0, 0, 1, 1], [], []>} : vector<64x128xbf16>, vector<128x512xbf16>, vector<64x512xf32> -> vector<64x512xf32>
    %c2 = arith.constant 2 : index
    %c0_47 = arith.constant 0 : index
    %c0_48 = arith.constant 0 : index
    %38 = vector.load %arg5[%c2, %c0_47, %c0_48] : memref<3x1x512xf32, #tpu.memory_space<vmem>>, vector<1x1x512xf32>
    %39 = vector.shape_cast %38 : vector<1x1x512xf32> to vector<1x512xf32>
    %40 = vector.broadcast %39 : vector<1x512xf32> to vector<64x512xf32>
    %41 = arith.addf %37, %40 : vector<64x512xf32>
    %c0_49 = arith.constant 0 : index
    %c0_50 = arith.constant 0 : index
    %42 = vector.load %arg12[%c0_49, %c0_50] : memref<64x512xf32, #tpu.memory_space<vmem>>, vector<64x512xf32>
    tpu.vector_store %arg12[%c0_49, %c0_50], %41 {strides = array<i32>} : memref<64x512xf32, #tpu.memory_space<vmem>>, vector<64x512xf32>,
    %cst_51 = arith.constant 0.000000e+00 : f32
    %43 = vector.broadcast %cst_51 : f32 to vector<8x128xf32>
    %c0_52 = arith.constant 0 : index
    %c0_53 = arith.constant 0 : index
    %44 = vector.load %arg13[%c0_52, %c0_53] : memref<8x128xf32, #tpu.memory_space<vmem>>, vector<8x128xf32>
    tpu.vector_store %arg13[%c0_52, %c0_53], %43 {strides = array<i32>} : memref<8x128xf32, #tpu.memory_space<vmem>>, vector<8x128xf32>,
    %cst_54 = arith.constant 0.000000e+00 : f32
    %45 = vector.broadcast %cst_54 : f32 to vector<8x128xf32>
    %c0_55 = arith.constant 0 : index
    %c0_56 = arith.constant 0 : index
    %46 = vector.load %arg14[%c0_55, %c0_56] : memref<8x128xf32, #tpu.memory_space<vmem>>, vector<8x128xf32>
    tpu.vector_store %arg14[%c0_55, %c0_56], %45 {strides = array<i32>} : memref<8x128xf32, #tpu.memory_space<vmem>>, vector<8x128xf32>,
    %c2_57 = arith.constant 2 : index
    %c0_58 = arith.constant 0 : index
    %c0_59 = arith.constant 0 : index
    %47 = vector.load %arg4[%c2_57, %c0_58, %c0_59] : memref<3x128x512xbf16, #tpu.memory_space<vmem>>, vector<1x128x512xbf16>
    %48 = vector.shape_cast %47 : vector<1x128x512xbf16> to vector<128x512xbf16>
    %c0_i32_60 = arith.constant 0 : i32
    %c4_i32_61 = arith.constant 4 : i32
    %49 = arith.addi %c0_i32_60, %c4_i32_61 : i32
    %c1_i32_62 = arith.constant 1 : i32
    scf.for %arg15 = %c0_i32_60 to %49 step %c1_i32_62  : i32 {
      %c2_i32 = arith.constant 2 : i32
      %64 = arith.muli %arg15, %c2_i32 : i32
      %c0_i32_79 = arith.constant 0 : i32
      %65 = arith.addi %64, %c0_i32_79 : i32
      %c8_i32 = arith.constant 8 : i32
      %66 = arith.muli %65, %c8_i32 : i32
      %67 = tpu.assume_multiple %66, 8 : i32
      %68 = arith.index_cast %67 : i32 to index
      %c0_80 = arith.constant 0 : index
      %69 = vector.load %arg12[%68, %c0_80] : memref<64x512xf32, #tpu.memory_space<vmem>>, vector<8x512xf32>
      %c0_81 = arith.constant 0 : index
      %c0_82 = arith.constant 0 : index
      %70 = vector.load %arg13[%c0_81, %c0_82] : memref<8x128xf32, #tpu.memory_space<vmem>>, vector<8x128xf32>
      %71 = arith.truncf %70 : vector<8x128xf32> to vector<8x128xbf16>
      %cst_83 = arith.constant dense<0.000000e+00> : vector<8x512xf32>
      %72 = tpu.matmul %71, %48, %cst_83 {dimension_numbers = #tpu.dot_dimension_numbers<[1], [0], [0], [1], [0, 0, 1, 1], [], []>} : vector<8x128xbf16>, vector<128x512xbf16>, vector<8x512xf32> -> vector<8x512xf32>
      %73 = arith.addf %69, %72 : vector<8x512xf32>
      %74 = vector.extract_strided_slice %73 {offsets = [0, 0], sizes = [8, 384], strides = [1, 1]} : vector<8x512xf32> to vector<8x384xf32>
      %75 = arith.negf %74 : vector<8x384xf32>
      %76 = math.exp %75 : vector<8x384xf32>
      %cst_84 = arith.constant 1.000000e+00 : f32
      %77 = vector.broadcast %cst_84 : f32 to vector<8x384xf32>
      %78 = arith.addf %77, %76 : vector<8x384xf32>
      %79 = arith.divf %77, %78 : vector<8x384xf32>
      %80 = vector.extract_strided_slice %73 {offsets = [0, 384], sizes = [8, 128], strides = [1, 1]} : vector<8x512xf32> to vector<8x128xf32>
      %81 = math.tanh %80 : vector<8x128xf32>
      %82 = vector.extract_strided_slice %79 {offsets = [0, 0], sizes = [8, 128], strides = [1, 1]} : vector<8x384xf32> to vector<8x128xf32>
      %83 = vector.extract_strided_slice %79 {offsets = [0, 128], sizes = [8, 128], strides = [1, 1]} : vector<8x384xf32> to vector<8x128xf32>
      %84 = vector.extract_strided_slice %79 {offsets = [0, 256], sizes = [8, 128], strides = [1, 1]} : vector<8x384xf32> to vector<8x128xf32>
      %c0_85 = arith.constant 0 : index
      %c0_86 = arith.constant 0 : index
      %85 = vector.load %arg14[%c0_85, %c0_86] : memref<8x128xf32, #tpu.memory_space<vmem>>, vector<8x128xf32>
      %86 = arith.mulf %83, %85 : vector<8x128xf32>
      %87 = arith.mulf %82, %81 : vector<8x128xf32>
      %88 = arith.addf %86, %87 : vector<8x128xf32>
      %89 = math.tanh %88 : vector<8x128xf32>
      %90 = arith.mulf %84, %89 : vector<8x128xf32>
      %c0_87 = arith.constant 0 : index
      %c0_88 = arith.constant 0 : index
      %91 = vector.load %arg14[%c0_87, %c0_88] : memref<8x128xf32, #tpu.memory_space<vmem>>, vector<8x128xf32>
      tpu.vector_store %arg14[%c0_87, %c0_88], %88 {strides = array<i32>} : memref<8x128xf32, #tpu.memory_space<vmem>>, vector<8x128xf32>,
      %c0_89 = arith.constant 0 : index
      %c0_90 = arith.constant 0 : index
      %92 = vector.load %arg13[%c0_89, %c0_90] : memref<8x128xf32, #tpu.memory_space<vmem>>, vector<8x128xf32>
      tpu.vector_store %arg13[%c0_89, %c0_90], %90 {strides = array<i32>} : memref<8x128xf32, #tpu.memory_space<vmem>>, vector<8x128xf32>,
      %c2_i32_91 = arith.constant 2 : i32
      %93 = arith.muli %arg15, %c2_i32_91 : i32
      %c1_i32_92 = arith.constant 1 : i32
      %94 = arith.addi %93, %c1_i32_92 : i32
      %c8_i32_93 = arith.constant 8 : i32
      %95 = arith.muli %94, %c8_i32_93 : i32
      %96 = tpu.assume_multiple %95, 8 : i32
      %97 = arith.index_cast %96 : i32 to index
      %c0_94 = arith.constant 0 : index
      %98 = vector.load %arg12[%97, %c0_94] : memref<64x512xf32, #tpu.memory_space<vmem>>, vector<8x512xf32>
      %c0_95 = arith.constant 0 : index
      %c0_96 = arith.constant 0 : index
      %99 = vector.load %arg13[%c0_95, %c0_96] : memref<8x128xf32, #tpu.memory_space<vmem>>, vector<8x128xf32>
      %100 = arith.truncf %99 : vector<8x128xf32> to vector<8x128xbf16>
      %cst_97 = arith.constant dense<0.000000e+00> : vector<8x512xf32>
      %101 = tpu.matmul %100, %48, %cst_97 {dimension_numbers = #tpu.dot_dimension_numbers<[1], [0], [0], [1], [0, 0, 1, 1], [], []>} : vector<8x128xbf16>, vector<128x512xbf16>, vector<8x512xf32> -> vector<8x512xf32>
      %102 = arith.addf %98, %101 : vector<8x512xf32>
      %103 = vector.extract_strided_slice %102 {offsets = [0, 0], sizes = [8, 384], strides = [1, 1]} : vector<8x512xf32> to vector<8x384xf32>
      %104 = arith.negf %103 : vector<8x384xf32>
      %105 = math.exp %104 : vector<8x384xf32>
      %cst_98 = arith.constant 1.000000e+00 : f32
      %106 = vector.broadcast %cst_98 : f32 to vector<8x384xf32>
      %107 = arith.addf %106, %105 : vector<8x384xf32>
      %108 = arith.divf %106, %107 : vector<8x384xf32>
      %109 = vector.extract_strided_slice %102 {offsets = [0, 384], sizes = [8, 128], strides = [1, 1]} : vector<8x512xf32> to vector<8x128xf32>
      %110 = math.tanh %109 : vector<8x128xf32>
      %111 = vector.extract_strided_slice %108 {offsets = [0, 0], sizes = [8, 128], strides = [1, 1]} : vector<8x384xf32> to vector<8x128xf32>
      %112 = vector.extract_strided_slice %108 {offsets = [0, 128], sizes = [8, 128], strides = [1, 1]} : vector<8x384xf32> to vector<8x128xf32>
      %113 = vector.extract_strided_slice %108 {offsets = [0, 256], sizes = [8, 128], strides = [1, 1]} : vector<8x384xf32> to vector<8x128xf32>
      %c0_99 = arith.constant 0 : index
      %c0_100 = arith.constant 0 : index
      %114 = vector.load %arg14[%c0_99, %c0_100] : memref<8x128xf32, #tpu.memory_space<vmem>>, vector<8x128xf32>
      %115 = arith.mulf %112, %114 : vector<8x128xf32>
      %116 = arith.mulf %111, %110 : vector<8x128xf32>
      %117 = arith.addf %115, %116 : vector<8x128xf32>
      %118 = math.tanh %117 : vector<8x128xf32>
      %119 = arith.mulf %113, %118 : vector<8x128xf32>
      %c0_101 = arith.constant 0 : index
      %c0_102 = arith.constant 0 : index
      %120 = vector.load %arg14[%c0_101, %c0_102] : memref<8x128xf32, #tpu.memory_space<vmem>>, vector<8x128xf32>
      tpu.vector_store %arg14[%c0_101, %c0_102], %117 {strides = array<i32>} : memref<8x128xf32, #tpu.memory_space<vmem>>, vector<8x128xf32>,
      %c0_103 = arith.constant 0 : index
      %c0_104 = arith.constant 0 : index
      %121 = vector.load %arg13[%c0_103, %c0_104] : memref<8x128xf32, #tpu.memory_space<vmem>>, vector<8x128xf32>
      tpu.vector_store %arg13[%c0_103, %c0_104], %119 {strides = array<i32>} : memref<8x128xf32, #tpu.memory_space<vmem>>, vector<8x128xf32>,
    }
    %c4_i32_63 = arith.constant 4 : i32
    %c0_64 = arith.constant 0 : index
    %c0_65 = arith.constant 0 : index
    %50 = vector.load %arg13[%c0_64, %c0_65] : memref<8x128xf32, #tpu.memory_space<vmem>>, vector<8x128xf32>
    %c0_66 = arith.constant 0 : index
    %c0_67 = arith.constant 0 : index
    %51 = vector.load %arg6[%c0_66, %c0_67] : memref<128x32xf32, #tpu.memory_space<vmem>>, vector<128x32xf32>
    %cst_68 = arith.constant dense<0.000000e+00> : vector<8x32xf32>
    %52 = tpu.matmul %50, %51, %cst_68 {dimension_numbers = #tpu.dot_dimension_numbers<[1], [0], [0], [1], [0, 0, 1, 1], [], []>} : vector<8x128xf32>, vector<128x32xf32>, vector<8x32xf32> -> vector<8x32xf32>
    %c0_69 = arith.constant 0 : index
    %c0_70 = arith.constant 0 : index
    %53 = vector.load %arg7[%c0_69, %c0_70] : memref<1x32xf32, #tpu.memory_space<vmem>>, vector<1x32xf32>
    %54 = vector.broadcast %53 : vector<1x32xf32> to vector<8x32xf32>
    %55 = arith.addf %52, %54 : vector<8x32xf32>
    %cst_71 = arith.constant 0.000000e+00 : f32
    %56 = vector.broadcast %cst_71 : f32 to vector<8x32xf32>
    %57 = arith.maximumf %55, %56 : vector<8x32xf32>
    %c0_72 = arith.constant 0 : index
    %c0_73 = arith.constant 0 : index
    %58 = vector.load %arg8[%c0_72, %c0_73] : memref<32x1xf32, #tpu.memory_space<vmem>>, vector<32x1xf32>
    %cst_74 = arith.constant dense<0.000000e+00> : vector<8x1xf32>
    %59 = tpu.matmul %57, %58, %cst_74 {dimension_numbers = #tpu.dot_dimension_numbers<[1], [0], [0], [1], [0, 0, 1, 1], [], []>} : vector<8x32xf32>, vector<32x1xf32>, vector<8x1xf32> -> vector<8x1xf32>
    %c0_75 = arith.constant 0 : index
    %c0_76 = arith.constant 0 : index
    %60 = vector.load %arg9[%c0_75, %c0_76] : memref<1x1xf32, #tpu.memory_space<vmem>>, vector<1x1xf32>
    %61 = vector.broadcast %60 : vector<1x1xf32> to vector<8x1xf32>
    %62 = arith.addf %59, %61 : vector<8x1xf32>
    %c0_77 = arith.constant 0 : index
    %c0_78 = arith.constant 0 : index
    %63 = vector.load %arg10[%c0_77, %c0_78] : memref<8x1xf32, #tpu.memory_space<vmem>>, vector<8x1xf32>
    tpu.vector_store %arg10[%c0_77, %c0_78], %62 {strides = array<i32>} : memref<8x1xf32, #tpu.memory_space<vmem>>, vector<8x1xf32>,
    return
  }
  func.func @transform_0(%arg0: i32) -> (i32, i32) {
    %c0_i32 = arith.constant 0 : i32
    %c0_i32_0 = arith.constant 0 : i32
    return %arg0, %c0_i32 : i32, i32
  }
  func.func @transform_1(%arg0: i32) -> (i32, i32) {
    %c0_i32 = arith.constant 0 : i32
    %c0_i32_0 = arith.constant 0 : i32
    %c0_i32_1 = arith.constant 0 : i32
    return %c0_i32, %c0_i32_0 : i32, i32
  }
  func.func @transform_2(%arg0: i32) -> (i32, i32, i32) {
    %c0_i32 = arith.constant 0 : i32
    %c0_i32_0 = arith.constant 0 : i32
    %c0_i32_1 = arith.constant 0 : i32
    %c0_i32_2 = arith.constant 0 : i32
    return %c0_i32, %c0_i32_0, %c0_i32_1 : i32, i32, i32
  }
  func.func @transform_3(%arg0: i32) -> (i32, i32, i32) {
    %c0_i32 = arith.constant 0 : i32
    %c0_i32_0 = arith.constant 0 : i32
    %c0_i32_1 = arith.constant 0 : i32
    %c0_i32_2 = arith.constant 0 : i32
    return %c0_i32, %c0_i32_0, %c0_i32_1 : i32, i32, i32
  }
  func.func @transform_4(%arg0: i32) -> (i32, i32, i32) {
    %c0_i32 = arith.constant 0 : i32
    %c0_i32_0 = arith.constant 0 : i32
    %c0_i32_1 = arith.constant 0 : i32
    %c0_i32_2 = arith.constant 0 : i32
    return %c0_i32, %c0_i32_0, %c0_i32_1 : i32, i32, i32
  }
  func.func @transform_5(%arg0: i32) -> (i32, i32) {
    %c0_i32 = arith.constant 0 : i32
    %c0_i32_0 = arith.constant 0 : i32
    %c0_i32_1 = arith.constant 0 : i32
    return %c0_i32, %c0_i32_0 : i32, i32
  }
  func.func @transform_6(%arg0: i32) -> (i32, i32) {
    %c0_i32 = arith.constant 0 : i32
    %c0_i32_0 = arith.constant 0 : i32
    %c0_i32_1 = arith.constant 0 : i32
    return %c0_i32, %c0_i32_0 : i32, i32
  }
  func.func @transform_7(%arg0: i32) -> (i32, i32) {
    %c0_i32 = arith.constant 0 : i32
    %c0_i32_0 = arith.constant 0 : i32
    %c0_i32_1 = arith.constant 0 : i32
    return %c0_i32, %c0_i32_0 : i32, i32
  }
  func.func @transform_8(%arg0: i32) -> (i32, i32) {
    %c0_i32 = arith.constant 0 : i32
    %c0_i32_0 = arith.constant 0 : i32
    %c0_i32_1 = arith.constant 0 : i32
    return %c0_i32, %c0_i32_0 : i32, i32
  }
  func.func @transform_9(%arg0: i32) -> (i32, i32) {
    %c0_i32 = arith.constant 0 : i32
    %c0_i32_0 = arith.constant 0 : i32
    return %arg0, %c0_i32 : i32, i32
  }
}

</mosaic_0001>

<bundles_post_ra>
// kernel: tpu_custom_call.1
= control target key start
LH: loop header
LB: loop body
LE: loop exit
PB: predicated region body
PF: predicated region fallthrough
CT: control target
= control target key end

     0   :  { %s4732_s0 = inlined_call_operand.vmem [shape: f32[64,16], index: 0, kind: input, shape index: {}]   ;;  %s4733_s1 = inlined_call_operand.vmem [shape: bf16[16,512], index: 1, kind: input, shape index: {}]   ;;  %s4734_s2 = inlined_call_operand.hbm [shape: bf16[2,128,512], index: 2, kind: input, shape index: {}]   ;;  %s4735_s3 = inlined_call_operand.hbm [shape: bf16[3,128,512], index: 3, kind: input, shape index: {}]   ;;  %s4736_s4 = inlined_call_operand.vmem [shape: f32[3,1,512], index: 4, kind: input, shape index: {}]   ;;  %s4737_s5 = inlined_call_operand.vmem [shape: f32[128,32], index: 5, kind: input, shape index: {}]   ;;  %s4738_s6 = inlined_call_operand.vmem [shape: f32[1,32], index: 6, kind: input, shape index: {}]   ;;  %s4739_s7 = inlined_call_operand.vmem [shape: f32[32,1], index: 7, kind: input, shape index: {}]   ;;  %s4740_s8 = inlined_call_operand.<no memory space> [shape: f32[1,1], index: 8, kind: input, shape index: {}]   ;;  %s4741_s9 = inlined_call_operand.vmem [shape: f32[8,1], index: 9, kind: output, shape index: {}]  }
   0x1   :  { %v14_v0 = vstv %s4740_s8 }
   0x2   :  { %15 = vst [vmem:[#allocation6] sm:$0x1] %v14_v0 }
   0x3   :  { %16 = vsyncpa [#allocation8], 0  ;;  %s26_s13 = sshll.u32 %s4734_s2, 4  ;;  %s27_s13 = int_to_ptr.hbm [resolvable:$true] %s26_s13 }
   0x4   :  { %17 = vsyncpa [#allocation10], 0  ;;  %s3646_s14 = smov [#allocation7]   ;;  %s39_s18 = sshll.u32 %s4735_s3, 4  ;;  %s40_s18 = int_to_ptr.hbm [resolvable:$true] %s39_s18 }
   0x5   :  { %s28_s15 = sshll.u32 %s3646_s14, 4  ;;  %s3647_s19 = smov 256   ;;  %s29_s15 = int_to_ptr.vmem [resolvable:$true] %s28_s15 }
   0x6   :  { %s3648_s20 = smov 16   ;;  %s3649_s8 = smov [#allocation9]  }
   0x7   :  { %34 = dma.hbm_to_vmem [thread:$0]  %s27_s13, 8192, %s29_s15, [#allocation8], %s3647_s19, %s3647_s19, %s3648_s20  }
   0x8   :  { %s41_s21 = sshll.u32 %s3649_s8, 4  ;;  %s42_s21 = int_to_ptr.vmem [resolvable:$true] %s41_s21 }
   0x9   :  { %47 = dma.hbm_to_vmem [thread:$0]  %s40_s18, 12288, %s42_s21, [#allocation10], %s3647_s19, %s3647_s19, %s3648_s20  }
   0xa   :  { %3630 = dma.done.wait [#allocation8], 8192  }
   0xb   :  { %3631 = vsyncadd [#allocation8], 4294959104 }
   0xc   :  { %3632 = dma.done.wait [#allocation10], 12288  }
   0xd   :  { %3633 = vsyncadd [#allocation10], 4294955008  ;;  %v4742_v1 = vmov 0.0   ;;  %v3712_v2 = vld [vmem:[#allocation9 + $0x4] sm:$0xf]  ;;  %vm113_vm0 = vcmask 130048  }
   0xe   :  { %274 = vst [vmem:[#allocation4] sm:$0xff] %v4742_v1  ;;  %v3714_v3 = vld [vmem:[#allocation9] sm:$0xf]  ;;  %v3716_v4 = vld [vmem:[#allocation9 + $0xc] sm:$0xf] }
   0xf   :  { %275 = vst [vmem:[#allocation5] sm:$0xff] %v4742_v1  ;;  %v3718_v5 = vld [vmem:[#allocation9 + $0x8] sm:$0xf]  ;;  %v3720_v6 = vld [vmem:[#allocation9 + $0x10] sm:$0xf0] }
  0x10   :  { %4745 = vst [vmem:[#allocation13_spill] sm:$0xff] %v3712_v2  ;;  %v3722_v7 = vld [vmem:[#allocation9 + $0xc] sm:$0xf0]  ;;  %v3724_v8 = vld [vmem:[#allocation9 + $0x18] sm:$0xf0] }
  0x11   :  { %4746 = vst [vmem:[#allocation14_spill] sm:$0xff] %v3714_v3  ;;  %v3726_v9 = vld [vmem:[#allocation9 + $0x14] sm:$0xf0]  ;;  %v3728_v10 = vld [vmem:[#allocation9 + $0x24] sm:$0xf] }
  0x12   :  { %4747 = vst [vmem:[#allocation15_spill] sm:$0xff] %v3716_v4  ;;  %v3730_v11 = vld [vmem:[#allocation9 + $0x20] sm:$0xf]  ;;  %v3732_v12 = vld [vmem:[#allocation9 + $0x2c] sm:$0xf] }
  0x13   :  { %4748 = vst [vmem:[#allocation16_spill] sm:$0xff] %v3718_v5  ;;  %v3734_v13 = vld [vmem:[#allocation9 + $0x28] sm:$0xf]  ;;  %v3736_v14 = vld [vmem:[#allocation9 + $0x30] sm:$0xf0] }
  0x14   :  { %4749 = vst [vmem:[#allocation17_spill] sm:$0xff] %v3720_v6  ;;  %v3738_v15 = vld [vmem:[#allocation9 + $0x2c] sm:$0xf0]  ;;  %v3740_v16 = vld [vmem:[#allocation9 + $0x38] sm:$0xf0] }
  0x15   :  { %4750 = vst [vmem:[#allocation18_spill] sm:$0xff] %v3722_v7  ;;  %v3742_v17 = vld [vmem:[#allocation9 + $0x34] sm:$0xf0]  ;;  %v3744_v18 = vld [vmem:[#allocation9 + $0x44] sm:$0xf] }
  0x16   :  { %4751 = vst [vmem:[#allocation19_spill] sm:$0xff] %v3724_v8  ;;  %v3746_v19 = vld [vmem:[#allocation9 + $0x40] sm:$0xf]  ;;  %v3748_v20 = vld [vmem:[#allocation9 + $0x4c] sm:$0xf] }
  0x17   :  { %4752 = vst [vmem:[#allocation20_spill] sm:$0xff] %v3726_v9  ;;  %v3750_v21 = vld [vmem:[#allocation9 + $0x48] sm:$0xf]  ;;  %v3752_v22 = vld [vmem:[#allocation9 + $0x50] sm:$0xf0] }
  0x18   :  { %4753 = vst [vmem:[#allocation21_spill] sm:$0xff] %v3728_v10  ;;  %v3754_v23 = vld [vmem:[#allocation9 + $0x4c] sm:$0xf0]  ;;  %v3756_v24 = vld [vmem:[#allocation9 + $0x58] sm:$0xf0] }
  0x19   :  { %4754 = vst [vmem:[#allocation22_spill] sm:$0xff] %v3730_v11  ;;  %v3758_v25 = vld [vmem:[#allocation9 + $0x54] sm:$0xf0]  ;;  %v3760_v26 = vld [vmem:[#allocation9 + $0x64] sm:$0xf] }
  0x1a   :  { %4755 = vst [vmem:[#allocation23_spill] sm:$0xff] %v3732_v12  ;;  %v3762_v27 = vld [vmem:[#allocation9 + $0x60] sm:$0xf]  ;;  %v3764_v28 = vld [vmem:[#allocation9 + $0x6c] sm:$0xf] }
  0x1b   :  { %4756 = vst [vmem:[#allocation24_spill] sm:$0xff] %v3734_v13  ;;  %v3766_v29 = vld [vmem:[#allocation9 + $0x68] sm:$0xf]  ;;  %v3768_v30 = vld [vmem:[#allocation9 + $0x70] sm:$0xf0] }
  0x1c   :  { %4757 = vst [vmem:[#allocation25_spill] sm:$0xff] %v3736_v14  ;;  %v3770_v31 = vld [vmem:[#allocation9 + $0x6c] sm:$0xf0]  ;;  %v3772_v32 = vld [vmem:[#allocation9 + $0x78] sm:$0xf0] }
  0x1d   :  { %4758 = vst [vmem:[#allocation26_spill] sm:$0xff] %v3738_v15  ;;  %v3774_v33 = vld [vmem:[#allocation9 + $0x74] sm:$0xf0]  ;;  %v3776_v34 = vld [vmem:[#allocation9 + $0x84] sm:$0xf] }
  0x1e   :  { %4759 = vst [vmem:[#allocation27_spill] sm:$0xff] %v3740_v16  ;;  %v3778_v35 = vld [vmem:[#allocation9 + $0x80] sm:$0xf]  ;;  %v3780_v36 = vld [vmem:[#allocation9 + $0x8c] sm:$0xf] }
  0x1f   :  { %4760 = vst [vmem:[#allocation28_spill] sm:$0xff] %v3742_v17  ;;  %v3782_v37 = vld [vmem:[#allocation9 + $0x88] sm:$0xf]  ;;  %v3784_v38 = vld [vmem:[#allocation9 + $0x90] sm:$0xf0] }
  0x20   :  { %4761 = vst [vmem:[#allocation29_spill] sm:$0xff] %v3744_v18  ;;  %v3786_v39 = vld [vmem:[#allocation9 + $0x8c] sm:$0xf0]  ;;  %v3788_v40 = vld [vmem:[#allocation9 + $0x98] sm:$0xf0] }
  0x21   :  { %4762 = vst [vmem:[#allocation30_spill] sm:$0xff] %v3746_v19  ;;  %v3790_v41 = vld [vmem:[#allocation9 + $0x94] sm:$0xf0]  ;;  %v3792_v42 = vld [vmem:[#allocation9 + $0xa4] sm:$0xf]  ;;  %v67_v17 = vld [vmem:[%s4732_s0] sm:$0xff] }
  0x22   :  { %4763 = vst [vmem:[#allocation31_spill] sm:$0xff] %v3748_v20  ;;  %v3794_v43 = vld [vmem:[#allocation9 + $0xa0] sm:$0xf]  ;;  %v3796_v44 = vld [vmem:[#allocation9 + $0xac] sm:$0xf] }
  0x23   :  { %4764 = vst [vmem:[#allocation32_spill] sm:$0xff] %v3750_v21  ;;  %v3798_v45 = vld [vmem:[#allocation9 + $0xa8] sm:$0xf]  ;;  %v3800_v46 = vld [vmem:[#allocation9 + $0xb0] sm:$0xf0] }
  0x24   :  { %4765 = vst [vmem:[#allocation33_spill] sm:$0xff] %v3752_v22  ;;  %v3802_v47 = vld [vmem:[#allocation9 + $0xac] sm:$0xf0]  ;;  %v3804_v48 = vld [vmem:[#allocation9 + $0xb8] sm:$0xf0] }
  0x25   :  { %4766 = vst [vmem:[#allocation34_spill] sm:$0xff] %v3754_v23  ;;  %v3806_v49 = vld [vmem:[#allocation9 + $0xb4] sm:$0xf0]  ;;  %v3808_v50 = vld [vmem:[#allocation9 + $0xc4] sm:$0xf] }
  0x26   :  { %4767 = vst [vmem:[#allocation35_spill] sm:$0xff] %v3756_v24  ;;  %v3810_v51 = vld [vmem:[#allocation9 + $0xc0] sm:$0xf]  ;;  %v3812_v52 = vld [vmem:[#allocation9 + $0xcc] sm:$0xf] }
  0x27   :  { %4768 = vst [vmem:[#allocation36_spill] sm:$0xff] %v3758_v25  ;;  %v3814_v53 = vld [vmem:[#allocation9 + $0xc8] sm:$0xf]  ;;  %v3816_v54 = vld [vmem:[#allocation9 + $0xd0] sm:$0xf0] }
  0x28   :  { %4769 = vst [vmem:[#allocation37_spill] sm:$0xff] %v3760_v26  ;;  %v3818_v55 = vld [vmem:[#allocation9 + $0xcc] sm:$0xf0]  ;;  %v3820_v56 = vld [vmem:[#allocation9 + $0xd8] sm:$0xf0] }
  0x29   :  { %4770 = vst [vmem:[#allocation38_spill] sm:$0xff] %v3762_v27  ;;  %v3822_v57 = vld [vmem:[#allocation9 + $0xd4] sm:$0xf0]  ;;  %v3824_v58 = vld [vmem:[#allocation9 + $0xe4] sm:$0xf] }
  0x2a   :  { %4771 = vst [vmem:[#allocation39_spill] sm:$0xff] %v3764_v28  ;;  %v3826_v59 = vld [vmem:[#allocation9 + $0xe0] sm:$0xf]  ;;  %v3828_v60 = vld [vmem:[#allocation9 + $0xec] sm:$0xf] }
  0x2b   :  { %4772 = vst [vmem:[#allocation40_spill] sm:$0xff] %v3766_v29  ;;  %v3830_v61 = vld [vmem:[#allocation9 + $0xe8] sm:$0xf]  ;;  %v3832_v62 = vld [vmem:[#allocation9 + $0xf0] sm:$0xf0] }
  0x2c   :  { %4773 = vst [vmem:[#allocation41_spill] sm:$0xff] %v3768_v30  ;;  %v3834_v63 = vld [vmem:[#allocation9 + $0xec] sm:$0xf0]  ;;  %v3836_v0 = vld [vmem:[#allocation9 + $0xf8] sm:$0xf0] }
  0x2d   :  { %4774 = vst [vmem:[#allocation42_spill] sm:$0xff] %v3770_v31  ;;  %v3838_v1 = vld [vmem:[#allocation9 + $0xf4] sm:$0xf0]  ;;  %v2544_v4 = vld [vmem:[%s4733_s1] sm:$0xf] }
  0x2e   :  { %4775 = vst [vmem:[#allocation43_spill] sm:$0xff] %v3772_v32  ;;  %v3264_v8 = vld [vmem:[%s4733_s1 + $0xc] sm:$0xf0]  ;;  %v3262_v5 = vld [vmem:[%s4733_s1 + $0x4] sm:$0xf] }
  0x2f   :  { %4776 = vst [vmem:[#allocation44_spill] sm:$0xff] %v3774_v33  ;;  %v2545_v9 = vor.u32 %v3264_v8, %v2544_v4  ;;  %v2546_v2 = vld [vmem:[%s4733_s1 + $0x10] sm:$0xf0]  ;;  %v2552_v6 = vld [vmem:[%s4733_s1 + $0x8] sm:$0xf] }
  0x30   :  { %4777 = vst [vmem:[#allocation45_spill] sm:$0xff] %v3776_v34  ;;  %v2549_v7 = vor.u32 %v3262_v5, %v2546_v2  ;;  %v3265_v3 = vld [vmem:[%s4733_s1 + $0x14] sm:$0xf0]  ;;  %v3263_v4 = vld [vmem:[%s4733_s1 + $0xc] sm:$0xf] }
  0x31   :  { %4778 = vst [vmem:[#allocation46_spill] sm:$0xff] %v3778_v35  ;;  %v2554_v8 = vld [vmem:[%s4733_s1 + $0x18] sm:$0xf0]  ;;  %133 = vmatpush.bf16.msra.mxu0 %v2545_v9  ;;  %v2553_v12 = vor.u32 %v3265_v3, %v2552_v6  ;;  %v68_v2 = vld [vmem:[%s4732_s0 + $0x8] sm:$0xff]  ;;  %v69_v3 = vld [vmem:[%s4732_s0 + $0x10] sm:$0xff] }
  0x32   :  { %4779 = vst [vmem:[#allocation47_spill] sm:$0xff] %v3780_v36  ;;  %v2557_v16 = vor.u32 %v3263_v4, %v2554_v8  ;;  %162 = vmatpush.bf16.msra.mxu1 %v2549_v7  ;;  %v75_v5 = vpack.c.bf16 %v68_v2, %v67_v17  ;;  %v70_v6 = vld [vmem:[%s4732_s0 + $0x18] sm:$0xff]  ;;  %v71_v9 = vld [vmem:[%s4732_s0 + $0x20] sm:$0xff]  ;;  %v73_v17 = vld [vmem:[%s4732_s0 + $0x30] sm:$0xff] }
  0x33   :  { %4780 = vst [vmem:[#allocation48_spill] sm:$0xff] %v3782_v37  ;;  %191 = vmatpush.bf16.msra.mxu2 %v2553_v12  ;;  %v76_v7 = vpack.c.bf16 %v70_v6, %v69_v3  ;;  %v72_v12 = vld [vmem:[%s4732_s0 + $0x28] sm:$0xff]  ;;  %v74_v4 = vld [vmem:[%s4732_s0 + $0x38] sm:$0xff]  ;;  %v83_v2 = vld [vmem:[%s4736_s4] sm:$0xf]  ;;  %s3947_s0 = smov 0  }
  0x34   :  { %4781 = vst [vmem:[#allocation49_spill] sm:$0xff] %v3784_v38  ;;  %220 = vmatpush.bf16.msra.mxu3 %v2557_v16  ;;  %2558 = vmatmul.msk.bf16.vlgmr.msra.gmra.mxu0 %vm113_vm0, %v75_v5  ;;  %v77_v16 = vpack.c.bf16 %v72_v12, %v71_v9  ;;  %v78_v8 = vpack.c.bf16 %v74_v4, %v73_v17  ;;  %v3909_v3 = vperm.slane %v83_v2, 1  ;;  %v3915_v17 = vperm.slane %v83_v2, 3 }
  0x35   :  { %4782 = vst [vmem:[#allocation50_spill] sm:$0xff] %v3786_v39  ;;  %2562 = vmatmul.msk.bf16.vlgmr.msra.gmra.mxu1 %vm113_vm0, %v75_v5 }
  0x36   :  { %4783 = vst [vmem:[#allocation51_spill] sm:$0xff] %v3788_v40  ;;  %2566 = vmatmul.msk.bf16.vlgmr.msra.gmra.mxu2 %vm113_vm0, %v75_v5 }
  0x37   :  { %4784 = vst [vmem:[#allocation52_spill] sm:$0xff] %v3790_v41  ;;  %2570 = vmatmul.msk.bf16.vlgmr.msra.gmra.mxu3 %vm113_vm0, %v75_v5  ;;  %v3907_v5 = vperm.slane %v83_v2, 0 }
  0x38   :  { %4785 = vst [vmem:[#allocation53_spill] sm:$0xff] %v3792_v42 }
  0x39   :  { %4786 = vst [vmem:[#allocation54_spill] sm:$0xff] %v3794_v43 }
  0x3a   :  { %4787 = vst [vmem:[#allocation55_spill] sm:$0xff] %v3836_v0 }
  0x3b   :  { %4788 = vst [vmem:[#allocation56_spill] sm:$0xff] %v3838_v1 }
  0x44   :  { %2559 = vmatmul.msk.bf16.gmra.mxu0 %vm113_vm0, %v76_v7 }
  0x45   :  { %2563 = vmatmul.msk.bf16.gmra.mxu1 %vm113_vm0, %v76_v7 }
  0x46   :  { %2567 = vmatmul.msk.bf16.gmra.mxu2 %vm113_vm0, %v76_v7 }
  0x47   :  { %2571 = vmatmul.msk.bf16.gmra.mxu3 %vm113_vm0, %v76_v7 }
  0x54   :  { %2560 = vmatmul.msk.bf16.gmra.mxu0 %vm113_vm0, %v77_v16 }
  0x55   :  { %2564 = vmatmul.msk.bf16.gmra.mxu1 %vm113_vm0, %v77_v16 }
  0x56   :  { %2568 = vmatmul.msk.bf16.gmra.mxu2 %vm113_vm0, %v77_v16 }
  0x57   :  { %2572 = vmatmul.msk.bf16.gmra.mxu3 %vm113_vm0, %v77_v16  ;;  %v3913_v16 = vperm.slane %v83_v2, 2 }
  0x64   :  { %2561 = vmatmul.msk.bf16.gmra.mxu0 %vm113_vm0, %v78_v8 }
  0x65   :  { %2565 = vmatmul.msk.bf16.gmra.mxu1 %vm113_vm0, %v78_v8 }
  0x66   :  { %2569 = vmatmul.msk.bf16.gmra.mxu2 %vm113_vm0, %v78_v8 }
  0x67   :  { %2573 = vmatmul.msk.bf16.gmra.mxu3 %vm113_vm0, %v78_v8 }
  0xb1   :  { %v135_v6 = vpop.f32.mrf.mxu0 }
  0xb2   :  { %v136_v7 = vadd.f32 %v135_v6, %v3907_v5  ;;  %v164_v9 = vpop.f32.mrf.mxu1 }
  0xb3   :  { %v165_v12 = vadd.f32 %v164_v9, %v3909_v3 }
  0xb4   :  { %242 = vst [vmem:[#allocation3] sm:$0xff] %v136_v7 }
  0xb5   :  { %243 = vst [vmem:[#allocation3 + $0x8] sm:$0xff] %v165_v12 }
  0xb9   :  { %v193_v4 = vpop.f32.mrf.mxu2  ;;  %v137_v14 = vpop.f32.mrf.mxu0 }
  0xba   :  { %v222_v8 = vpop.f32.mrf.mxu3  ;;  %v194_v13 = vadd.f32 %v193_v4, %v3913_v16  ;;  %v166_v15 = vpop.f32.mrf.mxu1  ;;  %v138_v11 = vadd.f32 %v137_v14, %v3907_v5 }
  0xbb   :  { %v223_v10 = vadd.f32 %v222_v8, %v3915_v17  ;;  %v167_v6 = vadd.f32 %v166_v15, %v3909_v3 }
  0xbc   :  { %244 = vst [vmem:[#allocation3 + $0x10] sm:$0xff] %v194_v13 }
  0xbd   :  { %245 = vst [vmem:[#allocation3 + $0x18] sm:$0xff] %v223_v10 }
  0xbe   :  { %246 = vst [vmem:[#allocation3 + $0x20] sm:$0xff] %v138_v11 }
  0xbf   :  { %247 = vst [vmem:[#allocation3 + $0x28] sm:$0xff] %v167_v6 }
  0xc1   :  { %v195_v7 = vpop.f32.mrf.mxu2  ;;  %v140_v20 = vpop.f32.mrf.mxu0 }
  0xc2   :  { %v224_v9 = vpop.f32.mrf.mxu3  ;;  %v196_v2 = vadd.f32 %v195_v7, %v3913_v16  ;;  %v169_v4 = vpop.f32.mrf.mxu1  ;;  %v141_v8 = vadd.f32 %v140_v20, %v3907_v5 }
  0xc3   :  { %v225_v12 = vadd.f32 %v224_v9, %v3915_v17  ;;  %v170_v24 = vadd.f32 %v169_v4, %v3909_v3 }
  0xc4   :  { %248 = vst [vmem:[#allocation3 + $0x30] sm:$0xff] %v196_v2 }
  0xc5   :  { %249 = vst [vmem:[#allocation3 + $0x38] sm:$0xff] %v225_v12 }
  0xc6   :  { %250 = vst [vmem:[#allocation3 + $0x40] sm:$0xff] %v141_v8 }
  0xc7   :  { %251 = vst [vmem:[#allocation3 + $0x48] sm:$0xff] %v170_v24 }
  0xc9   :  { %v198_v13 = vpop.f32.mrf.mxu2  ;;  %v142_v15 = vpop.f32.mrf.mxu0 }
  0xca   :  { %v227_v10 = vpop.f32.mrf.mxu3  ;;  %v199_v11 = vadd.f32 %v198_v13, %v3913_v16  ;;  %v171_v6 = vpop.f32.mrf.mxu1  ;;  %v143_v7 = vadd.f32 %v142_v15, %v3907_v5 }
  0xcb   :  { %v228_v14 = vadd.f32 %v227_v10, %v3915_v17  ;;  %v172_v9 = vadd.f32 %v171_v6, %v3909_v3 }
  0xcc   :  { %252 = vst [vmem:[#allocation3 + $0x50] sm:$0xff] %v199_v11 }
  0xcd   :  { %253 = vst [vmem:[#allocation3 + $0x58] sm:$0xff] %v228_v14 }
  0xce   :  { %254 = vst [vmem:[#allocation3 + $0x60] sm:$0xff] %v143_v7 }
  0xcf   :  { %255 = vst [vmem:[#allocation3 + $0x68] sm:$0xff] %v172_v9 }
  0xd1   :  { %v200_v20 = vpop.f32.mrf.mxu2  ;;  %v145_v4 = vpop.f32.mrf.mxu0 }
  0xd2   :  { %v229_v2 = vpop.f32.mrf.mxu3  ;;  %v201_v24 = vadd.f32 %v200_v20, %v3913_v16  ;;  %v174_v8 = vpop.f32.mrf.mxu1  ;;  %v146_v13 = vadd.f32 %v145_v4, %v3907_v5 }
  0xd3   :  { %v230_v12 = vadd.f32 %v229_v2, %v3915_v17  ;;  %v175_v10 = vadd.f32 %v174_v8, %v3909_v3 }
  0xd4   :  { %256 = vst [vmem:[#allocation3 + $0x70] sm:$0xff] %v201_v24 }
  0xd5   :  { %257 = vst [vmem:[#allocation3 + $0x78] sm:$0xff] %v230_v12 }
  0xd6   :  { %258 = vst [vmem:[#allocation3 + $0x80] sm:$0xff] %v146_v13 }
  0xd7   :  { %259 = vst [vmem:[#allocation3 + $0x88] sm:$0xff] %v175_v10 }
  0xd9   :  { %v203_v11 = vpop.f32.mrf.mxu2  ;;  %v147_v7 = vpop.f32.mrf.mxu0 }
  0xda   :  { %v232_v14 = vpop.f32.mrf.mxu3  ;;  %v204_v15 = vadd.f32 %v203_v11, %v3913_v16  ;;  %v176_v9 = vpop.f32.mrf.mxu1  ;;  %v148_v20 = vadd.f32 %v147_v7, %v3907_v5 }
  0xdb   :  { %v233_v6 = vadd.f32 %v232_v14, %v3915_v17  ;;  %v177_v2 = vadd.f32 %v176_v9, %v3909_v3 }
  0xdc   :  { %260 = vst [vmem:[#allocation3 + $0x90] sm:$0xff] %v204_v15 }
  0xdd   :  { %261 = vst [vmem:[#allocation3 + $0x98] sm:$0xff] %v233_v6 }
  0xde   :  { %262 = vst [vmem:[#allocation3 + $0xa0] sm:$0xff] %v148_v20 }
  0xdf   :  { %263 = vst [vmem:[#allocation3 + $0xa8] sm:$0xff] %v177_v2 }
  0xe1   :  { %v205_v24 = vpop.f32.mrf.mxu2  ;;  %v150_v13 = vpop.f32.mrf.mxu0 }
  0xe2   :  { %v234_v12 = vpop.f32.mrf.mxu3  ;;  %v206_v4 = vadd.f32 %v205_v24, %v3913_v16  ;;  %v179_v10 = vpop.f32.mrf.mxu1  ;;  %v151_v11 = vadd.f32 %v150_v13, %v3907_v5 }
  0xe3   :  { %v235_v8 = vadd.f32 %v234_v12, %v3915_v17  ;;  %v180_v14 = vadd.f32 %v179_v10, %v3909_v3 }
  0xe4   :  { %264 = vst [vmem:[#allocation3 + $0xb0] sm:$0xff] %v206_v4 }
  0xe5   :  { %265 = vst [vmem:[#allocation3 + $0xb8] sm:$0xff] %v235_v8 }
  0xe6   :  { %266 = vst [vmem:[#allocation3 + $0xc0] sm:$0xff] %v151_v11 }
  0xe7   :  { %267 = vst [vmem:[#allocation3 + $0xc8] sm:$0xff] %v180_v14 }
  0xe9   :  { %v208_v15 = vpop.f32.mrf.mxu2  ;;  %v152_v20 = vpop.f32.mrf.mxu0 }
  0xea   :  { %v237_v6 = vpop.f32.mrf.mxu3  ;;  %v209_v7 = vadd.f32 %v208_v15, %v3913_v16  ;;  %v181_v2 = vpop.f32.mrf.mxu1  ;;  %v153_v24 = vadd.f32 %v152_v20, %v3907_v5 }
  0xeb   :  { %v238_v9 = vadd.f32 %v237_v6, %v3915_v17  ;;  %v182_v12 = vadd.f32 %v181_v2, %v3909_v3 }
  0xec   :  { %268 = vst [vmem:[#allocation3 + $0xd0] sm:$0xff] %v209_v7 }
  0xed   :  { %269 = vst [vmem:[#allocation3 + $0xd8] sm:$0xff] %v238_v9 }
  0xee   :  { %270 = vst [vmem:[#allocation3 + $0xe0] sm:$0xff] %v153_v24 }
  0xef   :  { %271 = vst [vmem:[#allocation3 + $0xe8] sm:$0xff] %v182_v12 }
  0xf1   :  { %v210_v4 = vpop.f32.mrf.mxu2 }
  0xf2   :  { %v239_v8 = vpop.f32.mrf.mxu3  ;;  %v211_v13 = vadd.f32 %v210_v4, %v3913_v16 }
  0xf3   :  { %v240_v10 = vadd.f32 %v239_v8, %v3915_v17 }
  0xf4   :  { %272 = vst [vmem:[#allocation3 + $0xf0] sm:$0xff] %v211_v13 }
  0xf5   :  { %273 = vst [vmem:[#allocation3 + $0xf8] sm:$0xff] %v240_v10 }
  0xf6 LB: > { %v3954_v5 = vor.u32 %v3834_v63, %v3826_v59  ;;  %v3958_v3 = vor.u32 %v3824_v58, %v3832_v62  ;;  %v4789_v1 = vld [vmem:[#allocation56_spill] sm:$0xff]  ;;  %v4790_v0 = vld [vmem:[#allocation55_spill] sm:$0xff]  ;;  %v3972_v11 = vor.u32 %v3818_v55, %v3810_v51  ;;  %v3976_v14 = vor.u32 %v3808_v50, %v3816_v54  ;;  %v4791_v43 = vld [vmem:[#allocation54_spill] sm:$0xff]  ;;  %s4057_s29 = sshll.u32 %s3636_s0, 4  ;;  %s313_s0 = sadd.s32 1, %s3636_s0   ;;  %s3636_s0 = sphi %s3947_s0, %s313_s0  }
  0xf7   : > { %v3962_v16 = vor.u32 %v4789_v1, %v3830_v61  ;;  %v3966_v17 = vor.u32 %v3828_v60, %v4790_v0  ;;  %v3981_v15 = vor.u32 %v3822_v57, %v3814_v53  ;;  %v3986_v6 = vor.u32 %v3812_v52, %v3820_v56  ;;  %v4792_v42 = vld [vmem:[#allocation53_spill] sm:$0xff]  ;;  %v4793_v35 = vld [vmem:[#allocation46_spill] sm:$0xff]  ;;  %v4797_v37 = vld [vmem:[#allocation48_spill] sm:$0xff]  ;;  %s315_s30 = sshra.s32 %s4057_s29, 3  ;;  %s608_s12 = scalar_lea.vmem [#allocation2], %s4057_s29 }
  0xf8   : > { %486 = vmatpush.bf16.msra.mxu0 %v3954_v5  ;;  %499 = vmatpush.bf16.msra.mxu1 %v3958_v3  ;;  %v3992_v7 = vor.u32 %v3802_v47, %v4791_v43  ;;  %v3996_v9 = vor.u32 %v4792_v42, %v3800_v46  ;;  %v2668_v20 = vor.u32 %v3806_v49, %v3798_v45  ;;  %v4794_v39 = vld [vmem:[#allocation50_spill] sm:$0xff]  ;;  %v4795_v38 = vld [vmem:[#allocation49_spill] sm:$0xff]  ;;  %v4798_v41 = vld [vmem:[#allocation52_spill] sm:$0xff]  ;;  %s3298_s10 = sshll.u32 %s315_s30, 5  ;;  %s3300_s13 = sadd.s32 8, %s4057_s29 }
  0xf9   : > { %512 = vmatpush.bf16.msra.mxu2 %v3962_v16  ;;  %525 = vmatpush.bf16.msra.mxu3 %v3966_v17  ;;  %v2672_v2 = vor.u32 %v3796_v44, %v3804_v48  ;;  %v2644_v24 = vor.u32 %v4794_v39, %v4793_v35  ;;  %v4796_v34 = vld [vmem:[#allocation45_spill] sm:$0xff]  ;;  %v2652_v4 = vor.u32 %v4798_v41, %v4797_v37  ;;  %v4799_v40 = vld [vmem:[#allocation51_spill] sm:$0xff]  ;;  %v4801_v27 = vld [vmem:[#allocation38_spill] sm:$0xff]  ;;  %s319_s11 = scalar_lea.vmem [#allocation3], %s3298_s10  ;;  %s613_s14 = sshra.s32 %s3300_s13, 3 }
  0xfa   : > { %v2648_v12 = vor.u32 %v4796_v34, %v4795_v38  ;;  %v4800_v36 = vld [vmem:[#allocation47_spill] sm:$0xff]  ;;  %v4802_v31 = vld [vmem:[#allocation42_spill] sm:$0xff]  ;;  %v4803_v30 = vld [vmem:[#allocation41_spill] sm:$0xff]  ;;  %s3301_s15 = sshll.u32 %s613_s14, 5  ;;  %p310_p0 = scmp.ge.s32.totalorder %s313_s0, 4  }
  0xfb   : > { %v2656_v8 = vor.u32 %v4800_v36, %v4799_v40  ;;  %v2628_v13 = vor.u32 %v4802_v31, %v4801_v27  ;;  %v4804_v26 = vld [vmem:[#allocation37_spill] sm:$0xff]  ;;  %v4805_v29 = vld [vmem:[#allocation40_spill] sm:$0xff]  ;;  %v4807_v32 = vld [vmem:[#allocation43_spill] sm:$0xff]  ;;  %s617_s16 = scalar_lea.vmem [#allocation3], %s3301_s15  ;;  %s4246_s1 = smov (%p310_p0), 0  }
  0xfc   : > { %487 = vmatpush.bf16.msra.mxu0 %v3972_v11  ;;  %500 = vmatpush.bf16.msra.mxu1 %v3976_v14  ;;  %v2632_v10 = vor.u32 %v4804_v26, %v4803_v30  ;;  %v4806_v33 = vld [vmem:[#allocation44_spill] sm:$0xff]  ;;  %v4808_v28 = vld [vmem:[#allocation39_spill] sm:$0xff]  ;;  %v4809_v19 = vld [vmem:[#allocation30_spill] sm:$0xff] }
  0xfd   : > { %513 = vmatpush.bf16.msra.mxu2 %v3981_v15  ;;  %526 = vmatpush.bf16.msra.mxu3 %v3986_v6  ;;  %v2636_v0 = vor.u32 %v4806_v33, %v4805_v29  ;;  %v2640_v1 = vor.u32 %v4808_v28, %v4807_v32  ;;  %v4810_v23 = vld [vmem:[#allocation34_spill] sm:$0xff]  ;;  %v4811_v22 = vld [vmem:[#allocation33_spill] sm:$0xff]  ;;  %v4813_v21 = vld [vmem:[#allocation32_spill] sm:$0xff] }
  0xfe   : > { %v2612_v34 = vor.u32 %v4810_v23, %v4809_v19  ;;  %v4812_v18 = vld [vmem:[#allocation29_spill] sm:$0xff]  ;;  %v4814_v25 = vld [vmem:[#allocation36_spill] sm:$0xff]  ;;  %v4815_v27 = vld [vmem:[#allocation35_spill] sm:$0xff] }
  0xff   : > { %v2616_v35 = vor.u32 %v4812_v18, %v4811_v22  ;;  %v2620_v26 = vor.u32 %v4814_v25, %v4813_v21  ;;  %v4816_v30 = vld [vmem:[#allocation31_spill] sm:$0xff]  ;;  %v4817_v31 = vld [vmem:[#allocation22_spill] sm:$0xff]  ;;  %v4819_v33 = vld [vmem:[#allocation25_spill] sm:$0xff] }
 0x100   : > { %488 = vmatpush.bf16.msra.mxu0 %v3992_v7  ;;  %501 = vmatpush.bf16.msra.mxu1 %v3996_v9  ;;  %v2624_v29 = vor.u32 %v4816_v30, %v4815_v27  ;;  %v4818_v28 = vld [vmem:[#allocation26_spill] sm:$0xff]  ;;  %v4820_v36 = vld [vmem:[#allocation21_spill] sm:$0xff]  ;;  %v4821_v19 = vld [vmem:[#allocation24_spill] sm:$0xff] }
 0x101   : > { %514 = vmatpush.bf16.msra.mxu2 %v2668_v20  ;;  %527 = vmatpush.bf16.msra.mxu3 %v2672_v2  ;;  %v2596_v32 = vor.u32 %v4818_v28, %v4817_v31  ;;  %v2600_v37 = vor.u32 %v4820_v36, %v4819_v33  ;;  %v4822_v23 = vld [vmem:[#allocation28_spill] sm:$0xff]  ;;  %v4823_v22 = vld [vmem:[#allocation27_spill] sm:$0xff]  ;;  %v4825_v25 = vld [vmem:[#allocation14_spill] sm:$0xff] }
 0x102   : > { %v2604_v18 = vor.u32 %v4822_v23, %v4821_v19  ;;  %v4824_v38 = vld [vmem:[#allocation23_spill] sm:$0xff]  ;;  %v4826_v27 = vld [vmem:[#allocation18_spill] sm:$0xff]  ;;  %v4827_v39 = vld [vmem:[#allocation17_spill] sm:$0xff] }
 0x103   : > { %v2608_v21 = vor.u32 %v4824_v38, %v4823_v22  ;;  %v2580_v30 = vor.u32 %v4826_v27, %v4825_v25  ;;  %v4828_v40 = vld [vmem:[#allocation13_spill] sm:$0xff]  ;;  %v324_v28 = vld [vmem:[#allocation4] sm:$0xff]  ;;  %v4829_v31 = vld [vmem:[#allocation16_spill] sm:$0xff] }
 0x104   : > { %489 = vmatpush.bf16.msra.mxu0 %v2644_v24  ;;  %502 = vmatpush.bf16.msra.mxu1 %v2648_v12  ;;  %v2584_v41 = vor.u32 %v4828_v40, %v4827_v39  ;;  %v4830_v33 = vld [vmem:[#allocation20_spill] sm:$0xff]  ;;  %v4831_v42 = vld [vmem:[#allocation19_spill] sm:$0xff]  ;;  %v325_v43 = vpack.c.bf16 %v324_v28, %v324_v28  ;;  %v2825_v45 = vld [vmem:[#allocation7 + $0xc8] sm:$0xf] (%p310_p0) }
 0x105   : > { %515 = vmatpush.bf16.msra.mxu2 %v2652_v4  ;;  %528 = vmatpush.bf16.msra.mxu3 %v2656_v8  ;;  %v2588_v36 = vor.u32 %v4830_v33, %v4829_v31  ;;  %v4832_v19 = vld [vmem:[#allocation15_spill] sm:$0xff]  ;;  %v3330_v46 = vld [vmem:[#allocation7 + $0xd4] sm:$0xf0] (%p310_p0)  ;;  %v3328_v47 = vld [vmem:[#allocation7 + $0xcc] sm:$0xf] (%p310_p0) }
 0x106   : > { %v2592_v23 = vor.u32 %v4832_v19, %v4831_v42  ;;  %v320_v22 = vld [vmem:[%s319_s11] sm:$0xff]  ;;  %v2826_v48 = vor.u32 (%p310_p0), %v3330_v46, %v2825_v45  ;;  %v2827_v49 = vld [vmem:[#allocation7 + $0xd8] sm:$0xf0] (%p310_p0)  ;;  %v2801_v50 = vld [vmem:[#allocation7 + $0xa0] sm:$0xf] (%p310_p0) }
 0x107   :  { %v3325_v51 = vld [vmem:[#allocation7 + $0xac] sm:$0xf0] (%p310_p0)  ;;  %v2830_v52 = vor.u32 (%p310_p0), %v3328_v47, %v2827_v49  ;;  %v3323_v53 = vld [vmem:[#allocation7 + $0xa4] sm:$0xf] (%p310_p0)  ;;  %v2803_v54 = vld [vmem:[#allocation7 + $0xb0] sm:$0xf0] (%p310_p0) }
 0x108   : > { %490 = vmatpush.bf16.msra.mxu0 %v2628_v13  ;;  %503 = vmatpush.bf16.msra.mxu1 %v2632_v10  ;;  %v2809_v55 = vld [vmem:[#allocation7 + $0xa8] sm:$0xf] (%p310_p0)  ;;  %v2802_v56 = vor.u32 (%p310_p0), %v3325_v51, %v2801_v50  ;;  %v3326_v57 = vld [vmem:[#allocation7 + $0xb4] sm:$0xf0] (%p310_p0)  ;;  %v3324_v58 = vld [vmem:[#allocation7 + $0xac] sm:$0xf] (%p310_p0)  ;;  %v2806_v60 = vor.u32 (%p310_p0), %v3323_v53, %v2803_v54 }
 0x109   : > { %516 = vmatpush.bf16.msra.mxu2 %v2636_v0  ;;  %529 = vmatpush.bf16.msra.mxu3 %v2640_v1  ;;  %v2811_v59 = vld [vmem:[#allocation7 + $0xb8] sm:$0xf0] (%p310_p0)  ;;  %v2810_v61 = vor.u32 (%p310_p0), %v3326_v57, %v2809_v55  ;;  %v2785_v62 = vld [vmem:[#allocation7 + $0x80] sm:$0xf] (%p310_p0)  ;;  %v3321_v63 = vld [vmem:[#allocation7 + $0x8c] sm:$0xf0] (%p310_p0) }
 0x10a   :  { %v2721_v47 = vld [vmem:[#allocation7] sm:$0xf] (%p310_p0)  ;;  %v3303_v49 = vld [vmem:[#allocation7 + $0x4] sm:$0xf] (%p310_p0)  ;;  %v2723_v51 = vld [vmem:[#allocation7 + $0x10] sm:$0xf0] (%p310_p0) }
 0x10b   :  { %v3306_v53 = vld [vmem:[#allocation7 + $0x14] sm:$0xf0] (%p310_p0)  ;;  %v3304_v54 = vld [vmem:[#allocation7 + $0xc] sm:$0xf] (%p310_p0)  ;;  %v2731_v55 = vld [vmem:[#allocation7 + $0x18] sm:$0xf0] (%p310_p0) }
 0x10c   : > { %491 = vmatpush.bf16.msra.mxu0 %v2612_v34  ;;  %504 = vmatpush.bf16.msra.mxu1 %v2616_v35 }
 0x10d   : > { %517 = vmatpush.bf16.msra.mxu2 %v2620_v26  ;;  %530 = vmatpush.bf16.msra.mxu3 %v2624_v29 }
 0x110   : > { %492 = vmatpush.bf16.msra.mxu0 %v2596_v32  ;;  %505 = vmatpush.bf16.msra.mxu1 %v2600_v37 }
 0x111   : > { %518 = vmatpush.bf16.msra.mxu2 %v2604_v18  ;;  %531 = vmatpush.bf16.msra.mxu3 %v2608_v21 }
 0x114   : > { %493 = vmatpush.bf16.msra.mxu0 %v2580_v30  ;;  %506 = vmatpush.bf16.msra.mxu1 %v2584_v41 }
 0x115   : > { %519 = vmatpush.bf16.msra.mxu2 %v2588_v36  ;;  %532 = vmatpush.bf16.msra.mxu3 %v2592_v23 }
 0x117   : > { %494 = vmatmul.bf16.vlgmr.msra.gmra.mxu0 %v325_v43  ;;  %507 = vmatmul.bf16.vlgmr.msra.gmra.mxu1 %v325_v43 }
 0x118   : > { %624 = vmatpush.bf16.msrb.mxu0 %v3954_v5  ;;  %637 = vmatpush.bf16.msrb.mxu1 %v3958_v3  ;;  %v323_v3 = vld [vmem:[%s319_s11 + $0x18] sm:$0xff] }
 0x119   : > { %520 = vmatmul.bf16.vlgmr.msra.gmra.mxu2 %v325_v43  ;;  %533 = vmatmul.bf16.vlgmr.msra.gmra.mxu3 %v325_v43 }
 0x11a   : > { %650 = vmatpush.bf16.msrb.mxu2 %v3962_v16  ;;  %663 = vmatpush.bf16.msrb.mxu3 %v3966_v17 }
 0x11c   : > { %625 = vmatpush.bf16.msrb.mxu0 %v3972_v11  ;;  %638 = vmatpush.bf16.msrb.mxu1 %v3976_v14 }
 0x11e   : > { %651 = vmatpush.bf16.msrb.mxu2 %v3981_v15  ;;  %664 = vmatpush.bf16.msrb.mxu3 %v3986_v6 }
 0x120   : > { %626 = vmatpush.bf16.msrb.mxu0 %v3992_v7  ;;  %639 = vmatpush.bf16.msrb.mxu1 %v3996_v9 }
 0x122   : > { %652 = vmatpush.bf16.msrb.mxu2 %v2668_v20  ;;  %665 = vmatpush.bf16.msrb.mxu3 %v2672_v2 }
 0x124   : > { %627 = vmatpush.bf16.msrb.mxu0 %v2644_v24  ;;  %640 = vmatpush.bf16.msrb.mxu1 %v2648_v12 }
 0x126   : > { %653 = vmatpush.bf16.msrb.mxu2 %v2652_v4  ;;  %666 = vmatpush.bf16.msrb.mxu3 %v2656_v8 }
 0x128   : > { %628 = vmatpush.bf16.msrb.mxu0 %v2628_v13  ;;  %641 = vmatpush.bf16.msrb.mxu1 %v2632_v10 }
 0x12a   : > { %654 = vmatpush.bf16.msrb.mxu2 %v2636_v0  ;;  %667 = vmatpush.bf16.msrb.mxu3 %v2640_v1  ;;  %v321_v1 = vld [vmem:[%s319_s11 + $0x8] sm:$0xff] }
 0x12c   : > { %629 = vmatpush.bf16.msrb.mxu0 %v2612_v34  ;;  %642 = vmatpush.bf16.msrb.mxu1 %v2616_v35 }
 0x12e   : > { %655 = vmatpush.bf16.msrb.mxu2 %v2620_v26  ;;  %668 = vmatpush.bf16.msrb.mxu3 %v2624_v29 }
 0x130   : > { %630 = vmatpush.bf16.msrb.mxu0 %v2596_v32  ;;  %643 = vmatpush.bf16.msrb.mxu1 %v2600_v37 }
 0x132   : > { %656 = vmatpush.bf16.msrb.mxu2 %v2604_v18  ;;  %669 = vmatpush.bf16.msrb.mxu3 %v2608_v21  ;;  %v322_v18 = vld [vmem:[%s319_s11 + $0x10] sm:$0xff] }
 0x134   : > { %631 = vmatpush.bf16.msrb.mxu0 %v2580_v30  ;;  %644 = vmatpush.bf16.msrb.mxu1 %v2584_v41 }
 0x136   : > { %657 = vmatpush.bf16.msrb.mxu2 %v2588_v36  ;;  %670 = vmatpush.bf16.msrb.mxu3 %v2592_v23 }
 0x194   : > { %v495_v25 = vpop.f32.mrf.mxu0  ;;  %v508_v34 = vpop.f32.mrf.mxu1 }
 0x195   : > { %v538_v26 = vadd.f32 %v495_v25, %v320_v22  ;;  %v539_v29 = vadd.f32 %v508_v34, %v321_v1  ;;  %v600_v1 = vld [vmem:[#allocation5] sm:$0xff] }
 0x197   : > { %v2705_v32 = vmul.f32 -1.442695, %v538_v26  ;;  %v2706_v35 = vmul.f32 -1.442695, %v539_v29 }
 0x199   : > { %3472 = vpow2.f32 %v2705_v32 }
 0x19a   : > { %3474 = vpow2.f32 %v2706_v35 }
 0x19c   : > { %v521_v21 = vpop.f32.mrf.mxu2  ;;  %v534_v37 = vpop.f32.mrf.mxu3 }
 0x19d   : > { %v540_v38 = vadd.f32 %v521_v21, %v322_v18  ;;  %v497_v39 = vpop.f32.mrf.mxu0  ;;  %v510_v40 = vpop.f32.mrf.mxu1  ;;  %v541_v14 = vadd.f32 %v534_v37, %v323_v3  ;;  %v618_v3 = vld [vmem:[%s617_s16] sm:$0xff] }
 0x19f   : > { %v2707_v41 = vmul.f32 -1.442695, %v540_v38  ;;  %v3473_v42 = vpop.eup %3472 }
 0x1a0   : > { %v3475_v43 = vpop.eup %3474  ;;  %v551_v0 = vadd.f32 1.0, %v3473_v42 }
 0x1a1   : > { %3476 = vpow2.f32 %v2707_v41  ;;  %v552_v5 = vadd.f32 1.0, %v3475_v43 }
 0x1a2   : > { %3478 = vrcp.f32 %v551_v0  ;;  %v565_v12 = vand.u32 2147483648, %v551_v0  ;;  %v563_v13 = vand.u32 2147483647, %v551_v0  ;;  %vm559_vm3 = vweird.f32 %v551_v0 }
 0x1a3   : > { %3480 = vrcp.f32 %v552_v5  ;;  %v580_v4 = vand.u32 2147483648, %v552_v5  ;;  %v578_v27 = vand.u32 2147483647, %v552_v5  ;;  %vm574_vm4 = vweird.f32 %v552_v5 }
 0x1a4   : > { %v523_v16 = vpop.f32.mrf.mxu2  ;;  %v536_v17 = vpop.f32.mrf.mxu3  ;;  %v566_v36 = vor.u32 1.1754944e-38, %v565_v12  ;;  %vm564_vm7 = vcmp.eq.f32.partialorder %v563_v13, 8.507059e+37 }
 0x1a5   : > { %v581_v23 = vor.u32 1.1754944e-38, %v580_v4  ;;  %vm579_vm8 = vcmp.eq.f32.partialorder %v578_v27, 8.507059e+37  ;;  %v619_v16 = vld [vmem:[%s617_s16 + $0x8] sm:$0xff] }
 0x1a7   : > { %v3477_v11 = vpop.eup %3476 }
 0x1a8   : > { %v553_v15 = vadd.f32 1.0, %v3477_v11  ;;  %v3479_v6 = vpop.eup %3478 }
 0x1a9   : > { %v3481_v7 = vpop.eup %3480  ;;  %v555_v9 = vmul.f32 %v3479_v6, %v551_v0  ;;  %vm560_vm1 = vweird.f32 %v3479_v6 }
 0x1aa   : > { %3482 = vrcp.f32 %v553_v15  ;;  %v570_v20 = vmul.f32 %v3481_v7, %v552_v5  ;;  %vm575_vm2 = vweird.f32 %v3481_v7  ;;  %vm561_vm5 = vmor %vm559_vm3, %vm560_vm1  ;;  %v595_v38 = vand.u32 2147483648, %v553_v15 }
 0x1ab   : > { %3484 = vtanh.f32 %v541_v14  ;;  %v556_v2 = vsub.f32 1.0, %v555_v9  ;;  %vm576_vm6 = vmor %vm574_vm4, %vm575_vm2  ;;  %vm589_vm10 = vweird.f32 %v553_v15  ;;  %v593_v39 = vand.u32 2147483647, %v553_v15  ;;  %v620_v9 = vld [vmem:[%s617_s16 + $0x10] sm:$0xff] }
 0x1ac   : > { %v571_v24 = vsub.f32 1.0, %v570_v20  ;;  %v596_v41 = vor.u32 1.1754944e-38, %v595_v38 }
 0x1ad   : > { %v557_v8 = vmul.f32 %v3479_v6, %v556_v2  ;;  %vm594_vm12 = vcmp.eq.f32.partialorder %v593_v39, 8.507059e+37 }
 0x1ae   : > { %v572_v10 = vmul.f32 %v3481_v7, %v571_v24 }
 0x1af   : > { %v558_v28 = vadd.f32 %v3479_v6, %v557_v8 }
 0x1b0   : > { %v3483_v30 = vpop.eup %3482  ;;  %v573_v19 = vadd.f32 %v3481_v7, %v572_v10 }
 0x1b1   : > { %v3485_v31 = vpop.eup %3484  ;;  %v585_v33 = vmul.f32 %v3483_v30, %v553_v15  ;;  %v562_v22 = vsel %vm561_vm5, %v3479_v6, %v558_v28  ;;  %vm590_vm9 = vweird.f32 %v3483_v30 }
 0x1b2   : > { %v567_v34 = vsel %vm564_vm7, %v566_v36, %v562_v22  ;;  %v577_v26 = vsel %vm576_vm6, %v3481_v7, %v573_v19  ;;  %vm591_vm11 = vmor %vm589_vm10, %vm590_vm9 }
 0x1b3   : > { %v586_v25 = vsub.f32 1.0, %v585_v33  ;;  %v582_v29 = vsel %vm579_vm8, %v581_v23, %v577_v26  ;;  %v602_v32 = vmul.f32 %v3485_v31, %v567_v34  ;;  %v621_v33 = vld [vmem:[%s617_s16 + $0x18] sm:$0xff] }
 0x1b4   : > { %v601_v18 = vmul.f32 %v600_v1, %v582_v29 }
 0x1b5   : > { %v587_v35 = vmul.f32 %v3483_v30, %v586_v25 }
 0x1b6   : > { %v4060_v21 = vadd.f32 %v602_v32, %v601_v18 }
 0x1b7   : > { %v588_v37 = vadd.f32 %v3483_v30, %v587_v35 }
 0x1b8   : > { %3486 = vtanh.f32 %v4060_v21 }
 0x1b9   : > { %v592_v40 = vsel %vm591_vm11, %v3483_v30, %v588_v37 }
 0x1ba   : > { %v597_v43 = vsel %vm594_vm12, %v596_v41, %v592_v40 }
 0x1be   : > { %v3487_v42 = vpop.eup %3486 }
 0x1bf   : > { %v605_v0 = vmul.f32 %v3487_v42, %v597_v43 }
 0x1c1   : > { %609 = vst [vmem:[%s608_s12] sm:$0xff] %v605_v0  ;;  %v623_v5 = vpack.c.bf16 %v605_v0, %v605_v0 }
 0x1c3   : > { %632 = vmatmul.bf16.vlgmr.msrb.gmra.mxu0 %v623_v5  ;;  %645 = vmatmul.bf16.vlgmr.msrb.gmra.mxu1 %v623_v5 }
 0x1c4   : > { %658 = vmatmul.bf16.vlgmr.msrb.gmra.mxu2 %v623_v5  ;;  %671 = vmatmul.bf16.vlgmr.msrb.gmra.mxu3 %v623_v5 }
 0x240   : > { %v633_v17 = vpop.f32.mrf.mxu0  ;;  %v646_v11 = vpop.f32.mrf.mxu1 }
 0x241   : > { %v676_v14 = vadd.f32 %v633_v17, %v618_v3  ;;  %v677_v15 = vadd.f32 %v646_v11, %v619_v16 }
 0x243   : > { %v2712_v6 = vmul.f32 -1.442695, %v676_v14  ;;  %v2713_v7 = vmul.f32 -1.442695, %v677_v15 }
 0x245   : > { %3488 = vpow2.f32 %v2712_v6 }
 0x246   : > { %3490 = vpow2.f32 %v2713_v7 }
 0x247   : > { %v659_v20 = vpop.f32.mrf.mxu2  ;;  %v672_v2 = vpop.f32.mrf.mxu3 }
 0x248   : > { %v678_v24 = vadd.f32 %v659_v20, %v620_v9  ;;  %v635_v12 = vpop.f32.mrf.mxu0  ;;  %v648_v4 = vpop.f32.mrf.mxu1  ;;  %v679_v22 = vadd.f32 %v672_v2, %v621_v33  ;;  %v2835_v33 = vld [vmem:[#allocation7 + $0xf0] sm:$0xf0] (%p310_p0) }
 0x24a   : > { %v2714_v8 = vmul.f32 -1.442695, %v678_v24 }
 0x24b   : > { %v3489_v13 = vpop.eup %3488 }
 0x24c   : > { %v3491_v10 = vpop.eup %3490  ;;  %v689_v27 = vadd.f32 1.0, %v3489_v13  ;;  %3492 = vpow2.f32 %v2714_v8 }
 0x24d   : > { %v690_v30 = vadd.f32 1.0, %v3491_v10 }
 0x24e   : > { %3494 = vrcp.f32 %v689_v27  ;;  %v703_v32 = vand.u32 2147483648, %v689_v27  ;;  %v701_v37 = vand.u32 2147483647, %v689_v27  ;;  %vm697_vm15 = vweird.f32 %v689_v27 }
 0x24f   : > { %3496 = vrcp.f32 %v690_v30  ;;  %v661_v28 = vpop.f32.mrf.mxu2  ;;  %v674_v31 = vpop.f32.mrf.mxu3  ;;  %v718_v35 = vand.u32 2147483648, %v690_v30  ;;  %v716_v39 = vand.u32 2147483647, %v690_v30  ;;  %vm712_vm0 = vweird.f32 %v690_v30 }
 0x250   : > { %v704_v43 = vor.u32 1.1754944e-38, %v703_v32  ;;  %vm702_vm3 = vcmp.eq.f32.partialorder %v701_v37, 8.507059e+37  ;;  %v3331_v28 = vld [vmem:[#allocation7 + $0xe4] sm:$0xf] (%p310_p0) }
 0x251   : > { %v719_v5 = vor.u32 1.1754944e-38, %v718_v35  ;;  %vm717_vm4 = vcmp.eq.f32.partialorder %v716_v39, 8.507059e+37  ;;  %v3327_v32 = vld [vmem:[#allocation7 + $0xc4] sm:$0xf] (%p310_p0)  ;;  %v2819_v35 = vld [vmem:[#allocation7 + $0xd0] sm:$0xf0] (%p310_p0) }
 0x252   : > { %v3493_v36 = vpop.eup %3492  ;;  %v2822_v44 = vor.u32 (%p310_p0), %v3327_v32, %v2819_v35  ;;  %v3319_v37 = vld [vmem:[#allocation7 + $0x84] sm:$0xf] (%p310_p0)  ;;  %v2787_v39 = vld [vmem:[#allocation7 + $0x90] sm:$0xf0] (%p310_p0)  ;;  %v4833_v32 = vmov (%p310_p0), 0.0  }
 0x253   : > { %v691_v19 = vadd.f32 1.0, %v3493_v36  ;;  %v2841_v36 = vld [vmem:[#allocation7 + $0xe8] sm:$0xf] (%p310_p0)  ;;  %v3308_v35 = vld [vmem:[#allocation7 + $0x2c] sm:$0xf] (%p310_p0) }
 0x254   : > { %v3495_v23 = vpop.eup %3494 }
 0x255   : > { %v3497_v1 = vpop.eup %3496  ;;  %v693_v25 = vmul.f32 %v3495_v23, %v689_v27  ;;  %3498 = vrcp.f32 %v691_v19  ;;  %vm698_vm13 = vweird.f32 %v3495_v23  ;;  %v733_v24 = vand.u32 2147483648, %v691_v19 }
 0x256   : > { %v708_v34 = vmul.f32 %v3497_v1, %v690_v30  ;;  %3500 = vtanh.f32 %v679_v22  ;;  %vm713_vm14 = vweird.f32 %v3497_v1  ;;  %vm699_vm1 = vmor %vm697_vm15, %vm698_vm13  ;;  %vm727_vm6 = vweird.f32 %v691_v19  ;;  %v3333_v30 = vld [vmem:[#allocation7 + $0xec] sm:$0xf0] (%p310_p0) }
 0x257   : > { %v694_v26 = vsub.f32 1.0, %v693_v25  ;;  %vm714_vm2 = vmor %vm712_vm0, %vm713_vm14  ;;  %v731_v12 = vand.u32 2147483647, %v691_v19  ;;  %v734_v8 = vor.u32 1.1754944e-38, %v733_v24  ;;  %v2843_v25 = vld [vmem:[#allocation7 + $0xf8] sm:$0xf0] (%p310_p0) }
 0x258   : > { %v709_v29 = vsub.f32 1.0, %v708_v34  ;;  %v2817_v34 = vld [vmem:[#allocation7 + $0xc0] sm:$0xf] (%p310_p0) }
 0x259   : > { %v695_v18 = vmul.f32 %v3495_v23, %v694_v26  ;;  %vm732_vm8 = vcmp.eq.f32.partialorder %v731_v12, 8.507059e+37 }
 0x25a   : > { %v710_v38 = vmul.f32 %v3497_v1, %v709_v29  ;;  %v3329_v29 = vld [vmem:[#allocation7 + $0xcc] sm:$0xf0] (%p310_p0) }
 0x25b   : > { %v3499_v40 = vpop.eup %3498  ;;  %v696_v41 = vadd.f32 %v3495_v23, %v695_v18  ;;  %v2818_v18 = vor.u32 (%p310_p0), %v3329_v29, %v2817_v34  ;;  %v3310_v29 = vld [vmem:[#allocation7 + $0x34] sm:$0xf0] (%p310_p0) }
 0x25c   : > { %v723_v42 = vmul.f32 %v3499_v40, %v691_v19  ;;  %v711_v0 = vadd.f32 %v3497_v1, %v710_v38  ;;  %v3501_v16 = vpop.eup %3500  ;;  %vm728_vm5 = vweird.f32 %v3499_v40  ;;  %v3334_v19 = vld [vmem:[#allocation7 + $0xf4] sm:$0xf0] (%p310_p0)  ;;  %v2814_v38 = vor.u32 (%p310_p0), %v3324_v58, %v2811_v59 }
 0x25d   : > { %v700_v3 = vsel %vm699_vm1, %v3495_v23, %v696_v41  ;;  %vm729_vm7 = vmor %vm727_vm6, %vm728_vm5  ;;  %v2838_v23 = vor.u32 (%p310_p0), %v3331_v28, %v2835_v33  ;;  %v2842_v22 = vor.u32 (%p310_p0), %v3334_v19, %v2841_v36  ;;  %v3322_v41 = vld [vmem:[#allocation7 + $0x94] sm:$0xf0] (%p310_p0)  ;;  %v3312_v28 = vld [vmem:[#allocation7 + $0x4c] sm:$0xf] (%p310_p0)  ;;  %v2726_v59 = vor.u32 (%p310_p0), %v3303_v49, %v2723_v51 }
 0x25e   : > { %v724_v17 = vsub.f32 1.0, %v723_v42  ;;  %v705_v11 = vsel %vm702_vm3, %v704_v43, %v700_v3  ;;  %v715_v14 = vsel %vm714_vm2, %v3497_v1, %v711_v0  ;;  %v3332_v1 = vld [vmem:[#allocation7 + $0xec] sm:$0xf] (%p310_p0)  ;;  %v2795_v43 = vld [vmem:[#allocation7 + $0x98] sm:$0xf0] (%p310_p0)  ;;  %v2786_v0 = vor.u32 (%p310_p0), %v3321_v63, %v2785_v62 }
 0x25f   : > { %v720_v15 = vsel %vm717_vm4, %v719_v5, %v715_v14  ;;  %v740_v6 = vmul.f32 %v3501_v16, %v705_v11  ;;  %v2846_v26 = vor.u32 (%p310_p0), %v3332_v1, %v2843_v25  ;;  %992 = vmatpush.bf16.msra.mxu1 (%p310_p0), %v2838_v23  ;;  %1021 = vmatpush.bf16.msra.mxu2 (%p310_p0), %v2842_v22  ;;  %v3320_v42 = vld [vmem:[#allocation7 + $0x8c] sm:$0xf] (%p310_p0)  ;;  %v2769_v16 = vld [vmem:[#allocation7 + $0x60] sm:$0xf] (%p310_p0)  ;;  %v3315_v11 = vld [vmem:[#allocation7 + $0x64] sm:$0xf] (%p310_p0) }
 0x260   : > { %v725_v7 = vmul.f32 %v3499_v40, %v724_v17  ;;  %v739_v9 = vmul.f32 %v720_v15, %v4060_v21  ;;  %v2833_v21 = vld [vmem:[#allocation7 + $0xe0] sm:$0xf] (%p310_p0)  ;;  %v2790_v5 = vor.u32 (%p310_p0), %v3319_v37, %v2787_v39  ;;  %v3317_v17 = vld [vmem:[#allocation7 + $0x6c] sm:$0xf0] (%p310_p0)  ;;  %v2798_v14 = vor.u32 (%p310_p0), %v3320_v42, %v2795_v43  ;;  %v2771_v15 = vld [vmem:[#allocation7 + $0x70] sm:$0xf0] (%p310_p0) }
 0x261   :  { %v2834_v31 = vor.u32 (%p310_p0), %v3333_v30, %v2833_v21  ;;  %1050 = vmatpush.bf16.msra.mxu3 (%p310_p0), %v2846_v26  ;;  %v2774_v24 = vor.u32 (%p310_p0), %v3315_v11, %v2771_v15  ;;  %v2761_v21 = vld [vmem:[#allocation7 + $0x48] sm:$0xf] (%p310_p0)  ;;  %v3314_v30 = vld [vmem:[#allocation7 + $0x54] sm:$0xf0] (%p310_p0)  ;;  %v2737_v36 = vld [vmem:[#allocation7 + $0x20] sm:$0xf] (%p310_p0) }
 0x262   : > { %v741_v20 = vadd.f32 %v740_v6, %v739_v9  ;;  %v726_v2 = vadd.f32 %v3499_v40, %v725_v7  ;;  %v2777_v6 = vld [vmem:[#allocation7 + $0x68] sm:$0xf] (%p310_p0)  ;;  %v3318_v7 = vld [vmem:[#allocation7 + $0x74] sm:$0xf0] (%p310_p0)  ;;  %v3316_v9 = vld [vmem:[#allocation7 + $0x6c] sm:$0xf] (%p310_p0)  ;;  %v2762_v23 = vor.u32 (%p310_p0), %v3314_v30, %v2761_v21 }
 0x263   :  { %963 = vmatpush.bf16.msra.mxu0 (%p310_p0), %v2834_v31  ;;  %993 = vmatpush.bf16.msra.mxu1 (%p310_p0), %v2822_v44  ;;  %v2778_v12 = vor.u32 (%p310_p0), %v3318_v7, %v2777_v6  ;;  %v2763_v31 = vld [vmem:[#allocation7 + $0x58] sm:$0xf0] (%p310_p0)  ;;  %v3309_v22 = vld [vmem:[#allocation7 + $0x2c] sm:$0xf0] (%p310_p0)  ;;  %v3307_v1 = vld [vmem:[#allocation7 + $0x24] sm:$0xf] (%p310_p0) }
 0x264   : > { %3502 = vtanh.f32 %v741_v20  ;;  %744 = vst [vmem:[#allocation5] sm:$0xff] %v741_v20  ;;  %v730_v4 = vsel %vm729_vm7, %v3499_v40, %v726_v2  ;;  %1022 = vmatpush.bf16.msra.mxu2 (%p310_p0), %v2826_v48  ;;  %v2793_v40 = vld [vmem:[#allocation7 + $0x88] sm:$0xf] (%p310_p0)  ;;  %v2779_v20 = vld [vmem:[#allocation7 + $0x78] sm:$0xf0] (%p310_p0)  ;;  %v2770_v2 = vor.u32 (%p310_p0), %v3317_v17, %v2769_v16  ;;  %v2766_v34 = vor.u32 (%p310_p0), %v3312_v28, %v2763_v31 }
 0x265   : > { %v735_v10 = vsel %vm732_vm8, %v734_v8, %v730_v4  ;;  %1051 = vmatpush.bf16.msra.mxu3 (%p310_p0), %v2830_v52  ;;  %v2794_v3 = vor.u32 (%p310_p0), %v3322_v41, %v2793_v40  ;;  %v2753_v4 = vld [vmem:[#allocation7 + $0x40] sm:$0xf] (%p310_p0)  ;;  %v3313_v8 = vld [vmem:[#allocation7 + $0x4c] sm:$0xf0] (%p310_p0)  ;;  %v2739_v25 = vld [vmem:[#allocation7 + $0x30] sm:$0xf0] (%p310_p0)  ;;  %v2738_v44 = vor.u32 (%p310_p0), %v3309_v22, %v2737_v36 }
 0x266   :  { %v2754_v33 = vor.u32 (%p310_p0), %v3313_v8, %v2753_v4  ;;  %v2745_v26 = vld [vmem:[#allocation7 + $0x28] sm:$0xf] (%p310_p0)  ;;  %1112 = vst [vmem:[#allocation5] sm:$0xff] (%p310_p0), %v4833_v32  ;;  %v2742_v45 = vor.u32 (%p310_p0), %v3307_v1, %v2739_v25  ;;  %v3305_v48 = vld [vmem:[#allocation7 + $0xc] sm:$0xf0] (%p310_p0) }
 0x267   :  { %964 = vmatpush.bf16.msra.mxu0 (%p310_p0), %v2818_v18  ;;  %994 = vmatpush.bf16.msra.mxu1 (%p310_p0), %v2806_v60  ;;  %v2747_v18 = vld [vmem:[#allocation7 + $0x38] sm:$0xf0] (%p310_p0)  ;;  %v2746_v46 = vor.u32 (%p310_p0), %v3310_v29, %v2745_v26  ;;  %v2729_v52 = vld [vmem:[#allocation7 + $0x8] sm:$0xf] (%p310_p0)  ;;  %v4104_v49 = vld [vmem:[#allocation9 + $0x104] sm:$0xf] (%p310_p0) }
 0x268   :  { %1023 = vmatpush.bf16.msra.mxu2 (%p310_p0), %v2810_v61  ;;  %v2750_v50 = vor.u32 (%p310_p0), %v3308_v35, %v2747_v18  ;;  %v2730_v60 = vor.u32 (%p310_p0), %v3306_v53, %v2729_v52  ;;  %v2734_v61 = vor.u32 (%p310_p0), %v3304_v54, %v2731_v55  ;;  %4834 = vst [vmem:[#allocation13_spill] sm:$0xff] (%p310_p0), %v4104_v49  ;;  %v4108_v51 = vld [vmem:[#allocation9 + $0x10c] sm:$0xf] (%p310_p0)  ;;  %v4110_v52 = vld [vmem:[#allocation9 + $0x108] sm:$0xf] (%p310_p0) }
 0x269   :  { %1052 = vmatpush.bf16.msra.mxu3 (%p310_p0), %v2814_v38  ;;  %4836 = vst [vmem:[#allocation15_spill] sm:$0xff] (%p310_p0), %v4108_v51  ;;  %v4112_v53 = vld [vmem:[#allocation9 + $0x110] sm:$0xf0] (%p310_p0)  ;;  %v4114_v54 = vld [vmem:[#allocation9 + $0x10c] sm:$0xf0] (%p310_p0) }
 0x26a   : > { %v3503_v13 = vpop.eup %3502  ;;  %312 = sbr.rel (!%p310_p0) target bundleno = 246 (0xf6), region = 100  ;;  %4837 = vst [vmem:[#allocation16_spill] sm:$0xff] (%p310_p0), %v4110_v52  ;;  %v4116_v55 = vld [vmem:[#allocation9 + $0x118] sm:$0xf0] (%p310_p0)  ;;  %v4227_v52 = vld [vmem:[#allocation9 + $0x1e4] sm:$0xf] (%p310_p0) }
 0x26b   : > { %v743_v27 = vmul.f32 %v3503_v13, %v735_v10  ;;  %965 = vmatpush.bf16.msra.mxu0 (%p310_p0), %v2802_v56  ;;  %995 = vmatpush.bf16.msra.mxu1 (%p310_p0), %v2790_v5  ;;  %v3311_v13 = vld [vmem:[#allocation7 + $0x44] sm:$0xf] (%p310_p0)  ;;  %v2782_v10 = vor.u32 (%p310_p0), %v3316_v9, %v2779_v20  ;;  %v2722_v56 = vor.u32 (%p310_p0), %v3305_v48, %v2721_v47  ;;  %v2718_v5 = vld [vmem:[%s4736_s4 + $0x4] sm:$0xf] (%p310_p0)  ;;  %v4229_v49 = vld [vmem:[#allocation9 + $0x1e0] sm:$0xf] (%p310_p0) }
 0x26c   :  { %1024 = vmatpush.bf16.msra.mxu2 (%p310_p0), %v2794_v3  ;;  %v4078_v3 = vperm.slane (%p310_p0), %v2718_v5, 0  ;;  %v4080_v16 = vperm.slane (%p310_p0), %v2718_v5, 1  ;;  %v4084_v6 = vperm.slane (%p310_p0), %v2718_v5, 2  ;;  %v4086_v7 = vperm.slane (%p310_p0), %v2718_v5, 3  ;;  %4838 = vst [vmem:[#allocation17_spill] sm:$0xff] (%p310_p0), %v4112_v53 }
 0x26d   : > { %745 = vst [vmem:[#allocation4] sm:$0xff] %v743_v27  ;;  %1053 = vmatpush.bf16.msra.mxu3 (%p310_p0), %v2798_v14  ;;  %v4139_v5 = vld [vmem:[#allocation9 + $0x144] sm:$0xf] (%p310_p0)  ;;  %v4232_v53 = vld [vmem:[#allocation9 + $0x1ec] sm:$0xf] (%p310_p0) }
 0x26e   : > { %2717 = vst [vmem:[%s608_s12 + $0x8] sm:$0xff] %v743_v27  ;;  %v2755_v27 = vld [vmem:[#allocation7 + $0x50] sm:$0xf0] (%p310_p0) }
 0x26f   :  { %966 = vmatpush.bf16.msra.mxu0 %v2786_v0  ;;  %996 = vmatpush.bf16.msra.mxu1 %v2774_v24  ;;  %v2758_v19 = vor.u32 %v3311_v13, %v2755_v27  ;;  %1111 = vst [vmem:[#allocation4] sm:$0xff] %v4833_v32 }
 0x270   :  { %1025 = vmatpush.bf16.msra.mxu2 %v2778_v12  ;;  %4839 = vst [vmem:[#allocation18_spill] sm:$0xff] %v4114_v54  ;;  %v4234_v54 = vld [vmem:[#allocation9 + $0x1e8] sm:$0xf] }
 0x271   :  { %1054 = vmatpush.bf16.msra.mxu3 %v2782_v10  ;;  %4840 = vst [vmem:[#allocation19_spill] sm:$0xff] %v4116_v55 }
 0x272   :  { %4846 = vst [vmem:[#allocation25_spill] sm:$0xff] %v4139_v5 }
 0x273   :  { %967 = vmatpush.bf16.msra.mxu0 %v2770_v2  ;;  %997 = vmatpush.bf16.msra.mxu1 %v2758_v19 }
 0x274   :  { %1026 = vmatpush.bf16.msra.mxu2 %v2762_v23 }
 0x275   :  { %1055 = vmatpush.bf16.msra.mxu3 %v2766_v34  ;;  %v748_v57 = vld [vmem:[#allocation2] sm:$0xff]  ;;  %v749_v58 = vld [vmem:[#allocation2 + $0x8] sm:$0xff]  ;;  %v750_v63 = vld [vmem:[#allocation2 + $0x10] sm:$0xff] }
 0x276   :  { %v756_v62 = vpack.c.bf16 %v749_v58, %v748_v57  ;;  %v751_v37 = vld [vmem:[#allocation2 + $0x18] sm:$0xff]  ;;  %v752_v39 = vld [vmem:[#allocation2 + $0x20] sm:$0xff]  ;;  %v753_v40 = vld [vmem:[#allocation2 + $0x28] sm:$0xff] }
 0x277   :  { %968 = vmatpush.bf16.msra.mxu0 %v2754_v33  ;;  %998 = vmatpush.bf16.msra.mxu1 %v2742_v45  ;;  %v757_v38 = vpack.c.bf16 %v751_v37, %v750_v63  ;;  %v758_v41 = vpack.c.bf16 %v753_v40, %v752_v39  ;;  %v754_v42 = vld [vmem:[#allocation2 + $0x30] sm:$0xff]  ;;  %v755_v43 = vld [vmem:[#allocation2 + $0x38] sm:$0xff]  ;;  %v4131_v39 = vld [vmem:[#allocation9 + $0x12c] sm:$0xf0] }
 0x278   :  { %1027 = vmatpush.bf16.msra.mxu2 %v2746_v46  ;;  %v759_v0 = vpack.c.bf16 %v755_v43, %v754_v42  ;;  %v4120_v57 = vld [vmem:[#allocation9 + $0x124] sm:$0xf]  ;;  %v4133_v40 = vld [vmem:[#allocation9 + $0x138] sm:$0xf0] }
 0x279   :  { %1056 = vmatpush.bf16.msra.mxu3 %v2750_v50  ;;  %v4106_v50 = vld [vmem:[#allocation9 + $0x100] sm:$0xf]  ;;  %4844 = vst [vmem:[#allocation23_spill] sm:$0xff] %v4133_v40 }
 0x27a   :  { %4835 = vst [vmem:[#allocation14_spill] sm:$0xff] %v4106_v50  ;;  %v4236_v50 = vld [vmem:[#allocation9 + $0x1f0] sm:$0xf0] }
 0x27b   :  { %969 = vmatpush.bf16.msra.mxu0 %v2738_v44  ;;  %999 = vmatpush.bf16.msra.mxu1 %v2726_v59  ;;  %v4122_v59 = vld [vmem:[#allocation9 + $0x120] sm:$0xf] }
 0x27c   :  { %1028 = vmatpush.bf16.msra.mxu2 %v2730_v60  ;;  %v4124_v60 = vld [vmem:[#allocation9 + $0x12c] sm:$0xf] }
 0x27d   :  { %1057 = vmatpush.bf16.msra.mxu3 %v2734_v61  ;;  %4842 = vst [vmem:[#allocation21_spill] sm:$0xff] %v4124_v60  ;;  %v4126_v61 = vld [vmem:[#allocation9 + $0x128] sm:$0xf] }
 0x27e   :  { %1000 = vmatmul.bf16.vlgmr.msra.gmra.mxu1 %v756_v62 }
 0x27f   :  { %970 = vmatpush.bf16.msra.mxu0 %v2722_v56  ;;  %1029 = vmatmul.bf16.vlgmr.msra.gmra.mxu2 %v756_v62  ;;  %v4118_v56 = vld [vmem:[#allocation9 + $0x114] sm:$0xf0] }
 0x280   :  { %1058 = vmatmul.bf16.vlgmr.msra.gmra.mxu3 %v756_v62  ;;  %4841 = vst [vmem:[#allocation20_spill] sm:$0xff] %v4118_v56  ;;  %v4225_v56 = vld [vmem:[#allocation9 + $0x1d4] sm:$0xf0] }
 0x282   :  { %971 = vmatmul.bf16.vlgmr.msra.gmra.mxu0 %v756_v62 }
 0x28e   :  { %1005 = vmatmul.bf16.gmra.mxu1 %v757_v38 }
 0x28f   :  { %1034 = vmatmul.bf16.gmra.mxu2 %v757_v38 }
 0x290   :  { %1063 = vmatmul.bf16.gmra.mxu3 %v757_v38 }
 0x292   :  { %976 = vmatmul.bf16.gmra.mxu0 %v757_v38  ;;  %v4129_v38 = vld [vmem:[#allocation9 + $0x130] sm:$0xf0] }
 0x293   :  { %4843 = vst [vmem:[#allocation22_spill] sm:$0xff] %v4129_v38 }
 0x29e   :  { %1010 = vmatmul.bf16.gmra.mxu1 %v758_v41 }
 0x29f   :  { %1039 = vmatmul.bf16.gmra.mxu2 %v758_v41 }
 0x2a0   :  { %1068 = vmatmul.bf16.gmra.mxu3 %v758_v41 }
 0x2a2   :  { %981 = vmatmul.bf16.gmra.mxu0 %v758_v41 }
 0x2ae   :  { %1015 = vmatmul.bf16.gmra.mxu1 %v759_v0 }
 0x2af   :  { %1044 = vmatmul.bf16.gmra.mxu2 %v759_v0 }
 0x2b0   :  { %1073 = vmatmul.bf16.gmra.mxu3 %v759_v0 }
 0x2b2   :  { %986 = vmatmul.bf16.gmra.mxu0 %v759_v0  ;;  %v4137_v0 = vld [vmem:[#allocation9 + $0x134] sm:$0xf0] }
 0x2b3   :  { %4845 = vst [vmem:[#allocation24_spill] sm:$0xff] %v4137_v0 }
 0x2fb   :  { %v1001_v14 = vpop.f32.mrf.mxu1 }
 0x2fc   :  { %v1002_v15 = vadd.f32 %v1001_v14, %v4080_v16  ;;  %v4144_v14 = vld [vmem:[#allocation9 + $0x14c] sm:$0xf] }
 0x2fd   :  { %4848 = vst [vmem:[#allocation27_spill] sm:$0xff] %v4144_v14 }
 0x2fe   :  { %1080 = vst [vmem:[#allocation3 + $0x8] sm:$0xff] %v1002_v15  ;;  %v4146_v15 = vld [vmem:[#allocation9 + $0x148] sm:$0xf] }
 0x2ff   :  { %v972_v17 = vpop.f32.mrf.mxu0  ;;  %4849 = vst [vmem:[#allocation28_spill] sm:$0xff] %v4146_v15 }
 0x300   :  { %v973_v11 = vadd.f32 %v972_v17, %v4078_v3  ;;  %v4141_v17 = vld [vmem:[#allocation9 + $0x140] sm:$0xf] }
 0x301   :  { %4847 = vst [vmem:[#allocation26_spill] sm:$0xff] %v4141_v17 }
 0x302   :  { %1079 = vst [vmem:[#allocation3] sm:$0xff] %v973_v11  ;;  %v1030_v9 = vpop.f32.mrf.mxu2 }
 0x303   :  { %v1031_v20 = vadd.f32 %v1030_v9, %v4084_v6  ;;  %v1059_v2 = vpop.f32.mrf.mxu3  ;;  %v1003_v8 = vpop.f32.mrf.mxu1  ;;  %v4148_v9 = vld [vmem:[#allocation9 + $0x150] sm:$0xf0] }
 0x304   :  { %v1060_v12 = vadd.f32 %v1059_v2, %v4086_v7  ;;  %v1004_v13 = vadd.f32 %v1003_v8, %v4080_v16  ;;  %4850 = vst [vmem:[#allocation29_spill] sm:$0xff] %v4148_v9  ;;  %v4152_v2 = vld [vmem:[#allocation9 + $0x158] sm:$0xf0]  ;;  %v4160_v8 = vld [vmem:[#allocation9 + $0x16c] sm:$0xf] }
 0x305   :  { %1081 = vst [vmem:[#allocation3 + $0x10] sm:$0xff] %v1031_v20  ;;  %v4150_v20 = vld [vmem:[#allocation9 + $0x14c] sm:$0xf0] }
 0x306   :  { %1082 = vst [vmem:[#allocation3 + $0x18] sm:$0xff] %v1060_v12  ;;  %v4156_v12 = vld [vmem:[#allocation9 + $0x164] sm:$0xf] }
 0x307   :  { %v974_v24 = vpop.f32.mrf.mxu0  ;;  %1084 = vst [vmem:[#allocation3 + $0x28] sm:$0xff] %v1004_v13  ;;  %v4162_v13 = vld [vmem:[#allocation9 + $0x168] sm:$0xf] }
 0x308   :  { %v975_v4 = vadd.f32 %v974_v24, %v4078_v3  ;;  %4851 = vst [vmem:[#allocation30_spill] sm:$0xff] %v4150_v20  ;;  %v4154_v24 = vld [vmem:[#allocation9 + $0x154] sm:$0xf0] }
 0x309   :  { %4852 = vst [vmem:[#allocation31_spill] sm:$0xff] %v4152_v2 }
 0x30a   :  { %1083 = vst [vmem:[#allocation3 + $0x20] sm:$0xff] %v975_v4  ;;  %v1032_v10 = vpop.f32.mrf.mxu2  ;;  %v4158_v4 = vld [vmem:[#allocation9 + $0x160] sm:$0xf] }
 0x30b   :  { %v1033_v27 = vadd.f32 %v1032_v10, %v4084_v6  ;;  %v1061_v21 = vpop.f32.mrf.mxu3  ;;  %v1006_v33 = vpop.f32.mrf.mxu1  ;;  %4853 = vst [vmem:[#allocation32_spill] sm:$0xff] %v4154_v24  ;;  %v4164_v10 = vld [vmem:[#allocation9 + $0x170] sm:$0xf0] }
 0x30c   :  { %v1062_v28 = vadd.f32 %v1061_v21, %v4086_v7  ;;  %v1007_v36 = vadd.f32 %v1006_v33, %v4080_v16  ;;  %4854 = vst [vmem:[#allocation33_spill] sm:$0xff] %v4156_v12  ;;  %v4166_v21 = vld [vmem:[#allocation9 + $0x16c] sm:$0xf0] }
 0x30d   :  { %1085 = vst [vmem:[#allocation3 + $0x30] sm:$0xff] %v1033_v27 }
 0x30e   :  { %1086 = vst [vmem:[#allocation3 + $0x38] sm:$0xff] %v1062_v28  ;;  %v4170_v28 = vld [vmem:[#allocation9 + $0x174] sm:$0xf0] }
 0x30f   :  { %v977_v30 = vpop.f32.mrf.mxu0  ;;  %1088 = vst [vmem:[#allocation3 + $0x48] sm:$0xff] %v1007_v36 }
 0x310   :  { %v978_v31 = vadd.f32 %v977_v30, %v4078_v3  ;;  %4855 = vst [vmem:[#allocation34_spill] sm:$0xff] %v4158_v4  ;;  %v4168_v30 = vld [vmem:[#allocation9 + $0x178] sm:$0xf0] }
 0x311   :  { %4856 = vst [vmem:[#allocation35_spill] sm:$0xff] %v4160_v8 }
 0x312   :  { %1087 = vst [vmem:[#allocation3 + $0x40] sm:$0xff] %v978_v31  ;;  %v1035_v19 = vpop.f32.mrf.mxu2 }
 0x313   :  { %v1036_v23 = vadd.f32 %v1035_v19, %v4084_v6  ;;  %v1064_v22 = vpop.f32.mrf.mxu3  ;;  %v1008_v26 = vpop.f32.mrf.mxu1  ;;  %4857 = vst [vmem:[#allocation36_spill] sm:$0xff] %v4162_v13  ;;  %v4173_v19 = vld [vmem:[#allocation9 + $0x184] sm:$0xf] }
 0x314   :  { %v1065_v25 = vadd.f32 %v1064_v22, %v4086_v7  ;;  %v1009_v29 = vadd.f32 %v1008_v26, %v4080_v16  ;;  %4858 = vst [vmem:[#allocation37_spill] sm:$0xff] %v4164_v10  ;;  %v4177_v22 = vld [vmem:[#allocation9 + $0x18c] sm:$0xf]  ;;  %v4181_v26 = vld [vmem:[#allocation9 + $0x188] sm:$0xf] }
 0x315   :  { %1089 = vst [vmem:[#allocation3 + $0x50] sm:$0xff] %v1036_v23  ;;  %v4175_v23 = vld [vmem:[#allocation9 + $0x180] sm:$0xf] }
 0x316   :  { %1090 = vst [vmem:[#allocation3 + $0x58] sm:$0xff] %v1065_v25 }
 0x317   :  { %v979_v1 = vpop.f32.mrf.mxu0  ;;  %1092 = vst [vmem:[#allocation3 + $0x68] sm:$0xff] %v1009_v29  ;;  %v4183_v29 = vld [vmem:[#allocation9 + $0x190] sm:$0xf0] }
 0x318   :  { %v980_v34 = vadd.f32 %v979_v1, %v4078_v3  ;;  %4859 = vst [vmem:[#allocation38_spill] sm:$0xff] %v4166_v21 }
 0x319   :  { %4860 = vst [vmem:[#allocation39_spill] sm:$0xff] %v4168_v30 }
 0x31a   :  { %1091 = vst [vmem:[#allocation3 + $0x60] sm:$0xff] %v980_v34  ;;  %v1037_v32 = vpop.f32.mrf.mxu2 }
 0x31b   :  { %v1038_v35 = vadd.f32 %v1037_v32, %v4084_v6  ;;  %v1066_v18 = vpop.f32.mrf.mxu3  ;;  %v1011_v47 = vpop.f32.mrf.mxu1  ;;  %4861 = vst [vmem:[#allocation40_spill] sm:$0xff] %v4170_v28  ;;  %v4185_v32 = vld [vmem:[#allocation9 + $0x18c] sm:$0xf0] }
 0x31c   :  { %v1067_v45 = vadd.f32 %v1066_v18, %v4086_v7  ;;  %v1012_v48 = vadd.f32 %v1011_v47, %v4080_v16  ;;  %4862 = vst [vmem:[#allocation41_spill] sm:$0xff] %v4173_v19  ;;  %v4188_v18 = vld [vmem:[#allocation9 + $0x198] sm:$0xf0]  ;;  %v4196_v47 = vld [vmem:[#allocation9 + $0x1ac] sm:$0xf] }
 0x31d   :  { %1093 = vst [vmem:[#allocation3 + $0x70] sm:$0xff] %v1038_v35 }
 0x31e   :  { %1094 = vst [vmem:[#allocation3 + $0x78] sm:$0xff] %v1067_v45  ;;  %v4192_v45 = vld [vmem:[#allocation9 + $0x1a4] sm:$0xf] }
 0x31f   :  { %v982_v44 = vpop.f32.mrf.mxu0  ;;  %1096 = vst [vmem:[#allocation3 + $0x88] sm:$0xff] %v1012_v48  ;;  %v4198_v48 = vld [vmem:[#allocation9 + $0x1a8] sm:$0xf] }
 0x320   :  { %v983_v46 = vadd.f32 %v982_v44, %v4078_v3  ;;  %4863 = vst [vmem:[#allocation42_spill] sm:$0xff] %v4175_v23  ;;  %v4190_v44 = vld [vmem:[#allocation9 + $0x194] sm:$0xf0] }
 0x321   :  { %4864 = vst [vmem:[#allocation43_spill] sm:$0xff] %v4177_v22 }
 0x322   :  { %1095 = vst [vmem:[#allocation3 + $0x80] sm:$0xff] %v983_v46  ;;  %v1040_v58 = vpop.f32.mrf.mxu2  ;;  %v4194_v46 = vld [vmem:[#allocation9 + $0x1a0] sm:$0xf] }
 0x323   :  { %v1041_v62 = vadd.f32 %v1040_v58, %v4084_v6  ;;  %v1069_v63 = vpop.f32.mrf.mxu3  ;;  %v1013_v43 = vpop.f32.mrf.mxu1  ;;  %4865 = vst [vmem:[#allocation44_spill] sm:$0xff] %v4181_v26  ;;  %v4200_v58 = vld [vmem:[#allocation9 + $0x1b0] sm:$0xf0] }
 0x324   :  { %v1070_v41 = vadd.f32 %v1069_v63, %v4086_v7  ;;  %v1014_v11 = vadd.f32 %v1013_v43, %v4080_v16  ;;  %4866 = vst [vmem:[#allocation45_spill] sm:$0xff] %v4183_v29  ;;  %v4204_v63 = vld [vmem:[#allocation9 + $0x1b8] sm:$0xf0]  ;;  %v4210_v43 = vld [vmem:[#allocation9 + $0x1c0] sm:$0xf] }
 0x325   :  { %1097 = vst [vmem:[#allocation3 + $0x90] sm:$0xff] %v1041_v62  ;;  %v4202_v62 = vld [vmem:[#allocation9 + $0x1ac] sm:$0xf0] }
 0x326   :  { %1098 = vst [vmem:[#allocation3 + $0x98] sm:$0xff] %v1070_v41  ;;  %v4208_v41 = vld [vmem:[#allocation9 + $0x1c4] sm:$0xf] }
 0x327   :  { %v984_v37 = vpop.f32.mrf.mxu0  ;;  %1100 = vst [vmem:[#allocation3 + $0xa8] sm:$0xff] %v1014_v11  ;;  %v4212_v11 = vld [vmem:[#allocation9 + $0x1cc] sm:$0xf] }
 0x328   :  { %v985_v42 = vadd.f32 %v984_v37, %v4078_v3  ;;  %4867 = vst [vmem:[#allocation46_spill] sm:$0xff] %v4185_v32  ;;  %v4206_v37 = vld [vmem:[#allocation9 + $0x1b4] sm:$0xf0] }
 0x329   :  { %4868 = vst [vmem:[#allocation47_spill] sm:$0xff] %v4188_v18 }
 0x32a   :  { %1099 = vst [vmem:[#allocation3 + $0xa0] sm:$0xff] %v985_v42  ;;  %v1042_v27 = vpop.f32.mrf.mxu2 }
 0x32b   :  { %v1043_v31 = vadd.f32 %v1042_v27, %v4084_v6  ;;  %v1071_v33 = vpop.f32.mrf.mxu3  ;;  %v1016_v34 = vpop.f32.mrf.mxu1  ;;  %4869 = vst [vmem:[#allocation48_spill] sm:$0xff] %v4206_v37  ;;  %v4214_v27 = vld [vmem:[#allocation9 + $0x1c8] sm:$0xf] }
 0x32c   :  { %v1072_v1 = vadd.f32 %v1071_v33, %v4086_v7  ;;  %v1017_v35 = vadd.f32 %v1016_v34, %v4080_v16  ;;  %4870 = vst [vmem:[#allocation49_spill] sm:$0xff] %v4212_v11  ;;  %v4221_v34 = vld [vmem:[#allocation9 + $0x1d8] sm:$0xf0] }
 0x32d   :  { %1101 = vst [vmem:[#allocation3 + $0xb0] sm:$0xff] %v1043_v31 }
 0x32e   :  { %1102 = vst [vmem:[#allocation3 + $0xb8] sm:$0xff] %v1072_v1  ;;  %v4217_v1 = vld [vmem:[#allocation9 + $0x1d0] sm:$0xf0] }
 0x32f   :  { %v987_v36 = vpop.f32.mrf.mxu0  ;;  %1104 = vst [vmem:[#allocation3 + $0xc8] sm:$0xff] %v1017_v35 }
 0x330   :  { %v988_v25 = vadd.f32 %v987_v36, %v4078_v3  ;;  %4871 = vst [vmem:[#allocation50_spill] sm:$0xff] %v4214_v27 }
 0x331   :  { %4872 = vst [vmem:[#allocation51_spill] sm:$0xff] %v4217_v1 }
 0x332   :  { %1103 = vst [vmem:[#allocation3 + $0xc0] sm:$0xff] %v988_v25  ;;  %v1045_v42 = vpop.f32.mrf.mxu2  ;;  %v4219_v25 = vld [vmem:[#allocation9 + $0x1cc] sm:$0xf0] }
 0x333   :  { %v1046_v31 = vadd.f32 %v1045_v42, %v4084_v6  ;;  %v1074_v33 = vpop.f32.mrf.mxu3  ;;  %4873 = vst [vmem:[#allocation52_spill] sm:$0xff] %v4219_v25  ;;  %v1018_v55 = vpop.f32.mrf.mxu1 }
 0x334   :  { %4874 = vst [vmem:[#allocation53_spill] sm:$0xff] %v4221_v34  ;;  %v1075_v35 = vadd.f32 %v1074_v33, %v4086_v7  ;;  %v1019_v42 = vadd.f32 %v1018_v55, %v4080_v16  ;;  %v4238_v33 = vld [vmem:[#allocation9 + $0x1ec] sm:$0xf0] }
 0x335   :  { %1105 = vst [vmem:[#allocation3 + $0xd0] sm:$0xff] %v1046_v31 }
 0x336   :  { %1106 = vst [vmem:[#allocation3 + $0xd8] sm:$0xff] %v1075_v35 }
 0x337   :  { %v989_v36 = vpop.f32.mrf.mxu0  ;;  %4875 = vst [vmem:[#allocation54_spill] sm:$0xff] %v4238_v33 }
 0x338   :  { %v990_v51 = vadd.f32 %v989_v36, %v4078_v3  ;;  %v4240_v3 = vld [vmem:[#allocation9 + $0x1f8] sm:$0xf0]  ;;  %v4242_v36 = vld [vmem:[#allocation9 + $0x1f4] sm:$0xf0]  ;;  %1108 = vst [vmem:[#allocation3 + $0xe8] sm:$0xff] %v1019_v42 }
 0x339   :  { %4876 = vst [vmem:[#allocation55_spill] sm:$0xff] %v4240_v3 }
 0x33a   :  { %1107 = vst [vmem:[#allocation3 + $0xe0] sm:$0xff] %v990_v51  ;;  %v1047_v60 = vpop.f32.mrf.mxu2 }
 0x33b   :  { %4877 = vst [vmem:[#allocation56_spill] sm:$0xff] %v4242_v36  ;;  %v1048_v31 = vadd.f32 %v1047_v60, %v4084_v6  ;;  %v1076_v40 = vpop.f32.mrf.mxu3 }
 0x33c   :  { %v1077_v16 = vadd.f32 %v1076_v40, %v4086_v7 }
 0x33d   :  { %1109 = vst [vmem:[#allocation3 + $0xf0] sm:$0xff] %v1048_v31 }
 0x33e   :  { %1110 = vst [vmem:[#allocation3 + $0xf8] sm:$0xff] %v1077_v16 }
 0x33f LB: > { %v4878_v33 = vld [vmem:[#allocation54_spill] sm:$0xff]  ;;  %v4257_v55 = vor.u32 %v4227_v52, %v4236_v50  ;;  %v4881_v25 = vld [vmem:[#allocation52_spill] sm:$0xff]  ;;  %v4882_v1 = vld [vmem:[#allocation51_spill] sm:$0xff]  ;;  %v4291_v31 = vor.u32 %v4202_v62, %v4194_v46  ;;  %v4295_v16 = vor.u32 %v4192_v45, %v4200_v58  ;;  %s4356_s19 = sshll.u32 %s3640_s1, 4  ;;  %s1151_s1 = sadd.s32 1, %s3640_s1   ;;  %s3640_s1 = sphi %s4246_s1, %s1151_s1  }
 0x340   : > { %v4253_v51 = vor.u32 %v4878_v33, %v4229_v49  ;;  %v4880_v3 = vld [vmem:[#allocation55_spill] sm:$0xff]  ;;  %v4271_v60 = vor.u32 %v4881_v25, %v4210_v43  ;;  %v4275_v40 = vor.u32 %v4208_v41, %v4882_v1  ;;  %v4883_v27 = vld [vmem:[#allocation50_spill] sm:$0xff]  ;;  %v4884_v34 = vld [vmem:[#allocation53_spill] sm:$0xff]  ;;  %s1153_s20 = sshra.s32 %s4356_s19, 3  ;;  %s1446_s2 = scalar_lea.vmem [#allocation2], %s4356_s19 }
 0x341   : > { %v4265_v7 = vor.u32 %v4232_v53, %v4880_v3  ;;  %1337 = vmatpush.bf16.msra.mxu1 %v4257_v55  ;;  %v4280_v35 = vor.u32 %v4225_v56, %v4883_v27  ;;  %v4885_v11 = vld [vmem:[#allocation49_spill] sm:$0xff]  ;;  %v4886_v37 = vld [vmem:[#allocation48_spill] sm:$0xff]  ;;  %v2945_v3 = vor.u32 %v4196_v47, %v4204_v63  ;;  %v4887_v23 = vld [vmem:[#allocation42_spill] sm:$0xff]  ;;  %s3367_s8 = sshll.u32 %s1153_s20, 5  ;;  %s3369_s3 = sadd.s32 8, %s4356_s19 }
 0x342   : > { %v4879_v36 = vld [vmem:[#allocation56_spill] sm:$0xff]  ;;  %1324 = vmatpush.bf16.msra.mxu0 %v4253_v51  ;;  %v4285_v42 = vor.u32 %v4885_v11, %v4884_v34  ;;  %v2941_v1 = vor.u32 %v4886_v37, %v4198_v48  ;;  %v4888_v32 = vld [vmem:[#allocation46_spill] sm:$0xff]  ;;  %v4889_v29 = vld [vmem:[#allocation45_spill] sm:$0xff]  ;;  %s1157_s21 = scalar_lea.vmem [#allocation3], %s3367_s8  ;;  %s1451_s22 = sshra.s32 %s3369_s3, 3 }
 0x343   : > { %v4261_v6 = vor.u32 %v4879_v36, %v4234_v54  ;;  %1363 = vmatpush.bf16.msra.mxu3 %v4265_v7  ;;  %v2917_v11 = vor.u32 %v4888_v32, %v4887_v23  ;;  %v4890_v19 = vld [vmem:[#allocation41_spill] sm:$0xff]  ;;  %v4891_v26 = vld [vmem:[#allocation44_spill] sm:$0xff]  ;;  %v4892_v18 = vld [vmem:[#allocation47_spill] sm:$0xff]  ;;  %s3370_s23 = sshll.u32 %s1451_s22, 5  ;;  %p1148_p1 = scmp.ge.s32.totalorder %s1151_s1, 4  }
 0x344   : > { %v2921_v25 = vor.u32 %v4890_v19, %v4889_v29  ;;  %v2925_v27 = vor.u32 %v4190_v44, %v4891_v26  ;;  %v4893_v22 = vld [vmem:[#allocation43_spill] sm:$0xff]  ;;  %v4894_v4 = vld [vmem:[#allocation34_spill] sm:$0xff]  ;;  %v4896_v10 = vld [vmem:[#allocation37_spill] sm:$0xff]  ;;  %s1455_s24 = scalar_lea.vmem [#allocation3], %s3370_s23 }
 0x345   : > { %1350 = vmatpush.bf16.msra.mxu2 %v4261_v6  ;;  %1338 = vmatpush.bf16.msra.mxu1 %v4275_v40  ;;  %v2929_v33 = vor.u32 %v4893_v22, %v4892_v18  ;;  %v4895_v21 = vld [vmem:[#allocation38_spill] sm:$0xff]  ;;  %v4897_v12 = vld [vmem:[#allocation33_spill] sm:$0xff]  ;;  %v4898_v13 = vld [vmem:[#allocation36_spill] sm:$0xff] }
 0x346   : > { %1325 = vmatpush.bf16.msra.mxu0 %v4271_v60  ;;  %v2901_v34 = vor.u32 %v4895_v21, %v4894_v4  ;;  %v2905_v36 = vor.u32 %v4897_v12, %v4896_v10  ;;  %v4899_v28 = vld [vmem:[#allocation40_spill] sm:$0xff]  ;;  %v4900_v30 = vld [vmem:[#allocation39_spill] sm:$0xff]  ;;  %v4902_v17 = vld [vmem:[#allocation26_spill] sm:$0xff] }
 0x347   : > { %1364 = vmatpush.bf16.msra.mxu3 %v4285_v42  ;;  %v2909_v19 = vor.u32 %v4899_v28, %v4898_v13  ;;  %v4901_v8 = vld [vmem:[#allocation35_spill] sm:$0xff]  ;;  %v4903_v20 = vld [vmem:[#allocation30_spill] sm:$0xff]  ;;  %v4904_v9 = vld [vmem:[#allocation29_spill] sm:$0xff] }
 0x348   : > { %v2913_v23 = vor.u32 %v4901_v8, %v4900_v30  ;;  %v2885_v18 = vor.u32 %v4903_v20, %v4902_v17  ;;  %v4905_v5 = vld [vmem:[#allocation25_spill] sm:$0xff]  ;;  %v4906_v15 = vld [vmem:[#allocation28_spill] sm:$0xff]  ;;  %v4908_v2 = vld [vmem:[#allocation31_spill] sm:$0xff]  ;;  %v2869_v8 = vor.u32 %v4131_v39, %v4122_v59 }
 0x349   : > { %1351 = vmatpush.bf16.msra.mxu2 %v4280_v35  ;;  %1339 = vmatpush.bf16.msra.mxu1 %v4295_v16  ;;  %v2889_v22 = vor.u32 %v4905_v5, %v4904_v9  ;;  %v4907_v24 = vld [vmem:[#allocation32_spill] sm:$0xff]  ;;  %v4909_v14 = vld [vmem:[#allocation27_spill] sm:$0xff]  ;;  %v4910_v38 = vld [vmem:[#allocation22_spill] sm:$0xff] }
 0x34a   : > { %1326 = vmatpush.bf16.msra.mxu0 %v4291_v31  ;;  %v2893_v4 = vor.u32 %v4907_v24, %v4906_v15  ;;  %v2897_v10 = vor.u32 %v4909_v14, %v4908_v2  ;;  %v2873_v12 = vor.u32 %v4120_v57, %v4910_v38  ;;  %v4911_v0 = vld [vmem:[#allocation24_spill] sm:$0xff]  ;;  %v4912_v9 = vld [vmem:[#allocation23_spill] sm:$0xff]  ;;  %v4913_v13 = vld [vmem:[#allocation21_spill] sm:$0xff] }
 0x34b   : > { %1365 = vmatpush.bf16.msra.mxu3 %v2945_v3  ;;  %v2877_v5 = vor.u32 %v4911_v0, %v4126_v61  ;;  %v2881_v15 = vor.u32 %v4913_v13, %v4912_v9  ;;  %v4914_v17 = vld [vmem:[#allocation14_spill] sm:$0xff]  ;;  %v4916_v20 = vld [vmem:[#allocation17_spill] sm:$0xff]  ;;  %v4918_v28 = vld [vmem:[#allocation16_spill] sm:$0xff] }
 0x34c   : > { %v4915_v2 = vld [vmem:[#allocation18_spill] sm:$0xff]  ;;  %v4917_v21 = vld [vmem:[#allocation13_spill] sm:$0xff]  ;;  %v4919_v29 = vld [vmem:[#allocation20_spill] sm:$0xff] }
 0x34d   : > { %1352 = vmatpush.bf16.msra.mxu2 %v2941_v1  ;;  %1340 = vmatpush.bf16.msra.mxu1 %v2921_v25  ;;  %v2853_v14 = vor.u32 %v4915_v2, %v4914_v17  ;;  %v2857_v24 = vor.u32 %v4917_v21, %v4916_v20  ;;  %v1162_v26 = vld [vmem:[#allocation4] sm:$0xff]  ;;  %v2861_v30 = vor.u32 %v4919_v29, %v4918_v28  ;;  %v3098_v50 = vld [vmem:[#allocation7 + $0x1c8] sm:$0xf] (%p1148_p1)  ;;  %v3399_v52 = vld [vmem:[#allocation7 + $0x1d4] sm:$0xf0] (%p1148_p1) }
 0x34e   : > { %1327 = vmatpush.bf16.msra.mxu0 %v2917_v11  ;;  %v4920_v32 = vld [vmem:[#allocation19_spill] sm:$0xff]  ;;  %v1163_v38 = vpack.c.bf16 %v1162_v26, %v1162_v26  ;;  %v3397_v53 = vld [vmem:[#allocation7 + $0x1cc] sm:$0xf] (%p1148_p1)  ;;  %v3099_v54 = vor.u32 (%p1148_p1), %v3399_v52, %v3098_v50  ;;  %v3100_v56 = vld [vmem:[#allocation7 + $0x1d8] sm:$0xf0] (%p1148_p1) }
 0x34f   : > { %1366 = vmatpush.bf16.msra.mxu3 %v2929_v33  ;;  %v4921_v0 = vld [vmem:[#allocation15_spill] sm:$0xff]  ;;  %v3074_v57 = vld [vmem:[#allocation7 + $0x1a0] sm:$0xf] (%p1148_p1)  ;;  %v3103_v61 = vor.u32 (%p1148_p1), %v3397_v53, %v3100_v56  ;;  %v3392_v39 = vld [vmem:[#allocation7 + $0x1a4] sm:$0xf] (%p1148_p1) }
 0x350   : > { %v2865_v37 = vor.u32 %v4921_v0, %v4920_v32  ;;  %v1159_v0 = vld [vmem:[%s1157_s21 + $0x8] sm:$0xff]  ;;  %v3394_v59 = vld [vmem:[#allocation7 + $0x1ac] sm:$0xf0] (%p1148_p1)  ;;  %v3082_v45 = vld [vmem:[#allocation7 + $0x1a8] sm:$0xf] (%p1148_p1) }
 0x351   : > { %1353 = vmatpush.bf16.msra.mxu2 %v2925_v27  ;;  %1341 = vmatpush.bf16.msra.mxu1 %v2905_v36  ;;  %v3076_v44 = vld [vmem:[#allocation7 + $0x1b0] sm:$0xf0] (%p1148_p1)  ;;  %v3075_v46 = vor.u32 (%p1148_p1), %v3394_v59, %v3074_v57  ;;  %v3395_v47 = vld [vmem:[#allocation7 + $0x1b4] sm:$0xf0] (%p1148_p1)  ;;  %v3393_v48 = vld [vmem:[#allocation7 + $0x1ac] sm:$0xf] (%p1148_p1) }
 0x352   : > { %1328 = vmatpush.bf16.msra.mxu0 %v2901_v34  ;;  %v3084_v58 = vld [vmem:[#allocation7 + $0x1b8] sm:$0xf0] (%p1148_p1)  ;;  %v3079_v62 = vor.u32 (%p1148_p1), %v3392_v39, %v3076_v44  ;;  %v3083_v63 = vor.u32 (%p1148_p1), %v3395_v47, %v3082_v45  ;;  %v3058_v41 = vld [vmem:[#allocation7 + $0x180] sm:$0xf] (%p1148_p1)  ;;  %v3390_v43 = vld [vmem:[#allocation7 + $0x18c] sm:$0xf0] (%p1148_p1) }
 0x353   : > { %1367 = vmatpush.bf16.msra.mxu3 %v2913_v23  ;;  %v2994_v53 = vld [vmem:[#allocation7 + $0x100] sm:$0xf] (%p1148_p1)  ;;  %v3372_v56 = vld [vmem:[#allocation7 + $0x104] sm:$0xf] (%p1148_p1)  ;;  %v2996_v59 = vld [vmem:[#allocation7 + $0x110] sm:$0xf0] (%p1148_p1) }
 0x354   :  { %v3375_v39 = vld [vmem:[#allocation7 + $0x114] sm:$0xf0] (%p1148_p1)  ;;  %v3373_v44 = vld [vmem:[#allocation7 + $0x10c] sm:$0xf] (%p1148_p1)  ;;  %v3004_v45 = vld [vmem:[#allocation7 + $0x118] sm:$0xf0] (%p1148_p1) }
 0x355   : > { %1354 = vmatpush.bf16.msra.mxu2 %v2909_v19  ;;  %1342 = vmatpush.bf16.msra.mxu1 %v2889_v22 }
 0x356   : > { %1329 = vmatpush.bf16.msra.mxu0 %v2885_v18 }
 0x357   : > { %1368 = vmatpush.bf16.msra.mxu3 %v2897_v10 }
 0x359   : > { %1355 = vmatpush.bf16.msra.mxu2 %v2893_v4  ;;  %1343 = vmatpush.bf16.msra.mxu1 %v2873_v12 }
 0x35a   : > { %1330 = vmatpush.bf16.msra.mxu0 %v2869_v8 }
 0x35b   : > { %1369 = vmatpush.bf16.msra.mxu3 %v2881_v15 }
 0x35d   : > { %1356 = vmatpush.bf16.msra.mxu2 %v2877_v5  ;;  %1344 = vmatpush.bf16.msra.mxu1 %v2857_v24 }
 0x35e   : > { %1331 = vmatpush.bf16.msra.mxu0 %v2853_v14 }
 0x35f   : > { %1370 = vmatpush.bf16.msra.mxu3 %v2865_v37 }
 0x360   : > { %1345 = vmatmul.bf16.vlgmr.msra.gmra.mxu1 %v1163_v38 }
 0x361   : > { %1357 = vmatpush.bf16.msra.mxu2 %v2861_v30  ;;  %1475 = vmatpush.bf16.msrb.mxu1 %v4257_v55 }
 0x362   : > { %1462 = vmatpush.bf16.msrb.mxu0 %v4253_v51  ;;  %1371 = vmatmul.bf16.vlgmr.msra.gmra.mxu3 %v1163_v38 }
 0x363   : > { %1332 = vmatmul.bf16.vlgmr.msra.gmra.mxu0 %v1163_v38  ;;  %1501 = vmatpush.bf16.msrb.mxu3 %v4265_v7 }
 0x364   : > { %1358 = vmatmul.bf16.vlgmr.msra.gmra.mxu2 %v1163_v38  ;;  %v1158_v38 = vld [vmem:[%s1157_s21] sm:$0xff] }
 0x365   : > { %1488 = vmatpush.bf16.msrb.mxu2 %v4261_v6  ;;  %1476 = vmatpush.bf16.msrb.mxu1 %v4275_v40 }
 0x366   : > { %1463 = vmatpush.bf16.msrb.mxu0 %v4271_v60 }
 0x367   : > { %1502 = vmatpush.bf16.msrb.mxu3 %v4285_v42 }
 0x369   : > { %1489 = vmatpush.bf16.msrb.mxu2 %v4280_v35  ;;  %1477 = vmatpush.bf16.msrb.mxu1 %v4295_v16 }
 0x36a   : > { %1464 = vmatpush.bf16.msrb.mxu0 %v4291_v31 }
 0x36b   : > { %1503 = vmatpush.bf16.msrb.mxu3 %v2945_v3 }
 0x36d   : > { %1490 = vmatpush.bf16.msrb.mxu2 %v2941_v1  ;;  %1478 = vmatpush.bf16.msrb.mxu1 %v2921_v25 }
 0x36e   : > { %1465 = vmatpush.bf16.msrb.mxu0 %v2917_v11 }
 0x36f   : > { %1504 = vmatpush.bf16.msrb.mxu3 %v2929_v33 }
 0x371   : > { %1491 = vmatpush.bf16.msrb.mxu2 %v2925_v27  ;;  %1479 = vmatpush.bf16.msrb.mxu1 %v2905_v36 }
 0x372   : > { %1466 = vmatpush.bf16.msrb.mxu0 %v2901_v34 }
 0x373   : > { %1505 = vmatpush.bf16.msrb.mxu3 %v2913_v23  ;;  %v1161_v23 = vld [vmem:[%s1157_s21 + $0x18] sm:$0xff] }
 0x375   : > { %1492 = vmatpush.bf16.msrb.mxu2 %v2909_v19  ;;  %1480 = vmatpush.bf16.msrb.mxu1 %v2889_v22 }
 0x376   : > { %1467 = vmatpush.bf16.msrb.mxu0 %v2885_v18 }
 0x377   : > { %1506 = vmatpush.bf16.msrb.mxu3 %v2897_v10 }
 0x379   : > { %1493 = vmatpush.bf16.msrb.mxu2 %v2893_v4  ;;  %1481 = vmatpush.bf16.msrb.mxu1 %v2873_v12 }
 0x37a   : > { %1468 = vmatpush.bf16.msrb.mxu0 %v2869_v8 }
 0x37b   : > { %1507 = vmatpush.bf16.msrb.mxu3 %v2881_v15 }
 0x37d   : > { %1494 = vmatpush.bf16.msrb.mxu2 %v2877_v5  ;;  %1482 = vmatpush.bf16.msrb.mxu1 %v2857_v24  ;;  %v1160_v5 = vld [vmem:[%s1157_s21 + $0x10] sm:$0xff] }
 0x37e   : > { %1469 = vmatpush.bf16.msrb.mxu0 %v2853_v14 }
 0x37f   : > { %1508 = vmatpush.bf16.msrb.mxu3 %v2865_v37 }
 0x381   : > { %1495 = vmatpush.bf16.msrb.mxu2 %v2861_v30 }
 0x3dd   : > { %v1346_v9 = vpop.f32.mrf.mxu1 }
 0x3de   : > { %v1377_v2 = vadd.f32 %v1346_v9, %v1159_v0  ;;  %v1438_v0 = vld [vmem:[#allocation5] sm:$0xff] }
 0x3e0   : > { %v1333_v17 = vpop.f32.mrf.mxu0  ;;  %v2979_v12 = vmul.f32 -1.442695, %v1377_v2 }
 0x3e1   : > { %v1376_v20 = vadd.f32 %v1333_v17, %v1158_v38 }
 0x3e3   : > { %v2978_v4 = vmul.f32 -1.442695, %v1376_v20 }
 0x3e5   : > { %3504 = vpow2.f32 %v2978_v4  ;;  %v1372_v15 = vpop.f32.mrf.mxu3  ;;  %v1348_v13 = vpop.f32.mrf.mxu1 }
 0x3e6   : > { %3506 = vpow2.f32 %v2979_v12  ;;  %v1379_v32 = vadd.f32 %v1372_v15, %v1161_v23  ;;  %v1456_v23 = vld [vmem:[%s1455_s24] sm:$0xff] }
 0x3e7   : > { %v1359_v14 = vpop.f32.mrf.mxu2 }
 0x3e8   : > { %v1378_v24 = vadd.f32 %v1359_v14, %v1160_v5  ;;  %v1335_v8 = vpop.f32.mrf.mxu0 }
 0x3ea   : > { %v2980_v10 = vmul.f32 -1.442695, %v1378_v24 }
 0x3eb   : > { %v3505_v21 = vpop.eup %3504 }
 0x3ec   : > { %v3507_v30 = vpop.eup %3506  ;;  %v1389_v28 = vadd.f32 1.0, %v3505_v21  ;;  %3508 = vpow2.f32 %v2980_v10 }
 0x3ed   : > { %v1390_v19 = vadd.f32 1.0, %v3507_v30  ;;  %v1374_v26 = vpop.f32.mrf.mxu3 }
 0x3ee   : > { %3510 = vrcp.f32 %v1389_v28  ;;  %v1403_v33 = vand.u32 2147483648, %v1389_v28  ;;  %v1401_v51 = vand.u32 2147483647, %v1389_v28  ;;  %vm1397_vm11 = vweird.f32 %v1389_v28 }
 0x3ef   : > { %3512 = vrcp.f32 %v1390_v19  ;;  %v1361_v22 = vpop.f32.mrf.mxu2  ;;  %v1418_v3 = vand.u32 2147483648, %v1390_v19  ;;  %v1416_v6 = vand.u32 2147483647, %v1390_v19  ;;  %vm1412_vm12 = vweird.f32 %v1390_v19 }
 0x3f0   : > { %v1404_v42 = vor.u32 1.1754944e-38, %v1403_v33  ;;  %vm1402_vm15 = vcmp.eq.f32.partialorder %v1401_v51, 8.507059e+37  ;;  %v1457_v22 = vld [vmem:[%s1455_s24 + $0x8] sm:$0xff] }
 0x3f1   : > { %v1419_v16 = vor.u32 1.1754944e-38, %v1418_v3  ;;  %vm1417_vm0 = vcmp.eq.f32.partialorder %v1416_v6, 8.507059e+37 }
 0x3f2   : > { %v3509_v29 = vpop.eup %3508 }
 0x3f3   : > { %v1391_v18 = vadd.f32 1.0, %v3509_v29 }
 0x3f4   : > { %v3511_v37 = vpop.eup %3510 }
 0x3f5   : > { %v3513_v11 = vpop.eup %3512  ;;  %v1393_v27 = vmul.f32 %v3511_v37, %v1389_v28  ;;  %3514 = vrcp.f32 %v1391_v18  ;;  %vm1398_vm9 = vweird.f32 %v3511_v37  ;;  %v1433_v24 = vand.u32 2147483648, %v1391_v18 }
 0x3f6   : > { %v1408_v1 = vmul.f32 %v3513_v11, %v1390_v19  ;;  %3516 = vtanh.f32 %v1379_v32  ;;  %vm1413_vm10 = vweird.f32 %v3513_v11  ;;  %vm1399_vm13 = vmor %vm1397_vm11, %vm1398_vm9  ;;  %vm1427_vm2 = vweird.f32 %v1391_v18 }
 0x3f7   : > { %v1394_v25 = vsub.f32 1.0, %v1393_v27  ;;  %vm1414_vm14 = vmor %vm1412_vm12, %vm1413_vm10  ;;  %v1431_v8 = vand.u32 2147483647, %v1391_v18  ;;  %v1434_v10 = vor.u32 1.1754944e-38, %v1433_v24  ;;  %v1458_v27 = vld [vmem:[%s1455_s24 + $0x10] sm:$0xff] }
 0x3f8   : > { %v1409_v34 = vsub.f32 1.0, %v1408_v1 }
 0x3f9   : > { %v1395_v36 = vmul.f32 %v3511_v37, %v1394_v25  ;;  %vm1432_vm4 = vcmp.eq.f32.partialorder %v1431_v8, 8.507059e+37 }
 0x3fa   : > { %v1410_v55 = vmul.f32 %v3513_v11, %v1409_v34 }
 0x3fb   : > { %v3515_v7 = vpop.eup %3514  ;;  %v1396_v60 = vadd.f32 %v3511_v37, %v1395_v36 }
 0x3fc   : > { %v3517_v40 = vpop.eup %3516  ;;  %v1423_v35 = vmul.f32 %v3515_v7, %v1391_v18  ;;  %v1411_v31 = vadd.f32 %v3513_v11, %v1410_v55  ;;  %vm1428_vm1 = vweird.f32 %v3515_v7 }
 0x3fd   : > { %v1400_v38 = vsel %vm1399_vm13, %v3511_v37, %v1396_v60  ;;  %vm1429_vm3 = vmor %vm1427_vm2, %vm1428_vm1 }
 0x3fe   : > { %v1424_v17 = vsub.f32 1.0, %v1423_v35  ;;  %v1405_v9 = vsel %vm1402_vm15, %v1404_v42, %v1400_v38  ;;  %v1415_v20 = vsel %vm1414_vm14, %v3513_v11, %v1411_v31  ;;  %v1459_v35 = vld [vmem:[%s1455_s24 + $0x18] sm:$0xff] }
 0x3ff   : > { %v1420_v2 = vsel %vm1417_vm0, %v1419_v16, %v1415_v20  ;;  %v1440_v4 = vmul.f32 %v3517_v40, %v1405_v9 }
 0x400   : > { %v1425_v12 = vmul.f32 %v3515_v7, %v1424_v17  ;;  %v1439_v5 = vmul.f32 %v1438_v0, %v1420_v2 }
 0x402   : > { %v4359_v14 = vadd.f32 %v1440_v4, %v1439_v5  ;;  %v1426_v15 = vadd.f32 %v3515_v7, %v1425_v12 }
 0x404   : > { %3518 = vtanh.f32 %v4359_v14  ;;  %v1430_v13 = vsel %vm1429_vm3, %v3515_v7, %v1426_v15 }
 0x405   : > { %v1435_v30 = vsel %vm1432_vm4, %v1434_v10, %v1430_v13 }
 0x40a   : > { %v3519_v21 = vpop.eup %3518 }
 0x40b   : > { %v1443_v28 = vmul.f32 %v3519_v21, %v1435_v30 }
 0x40d   : > { %1447 = vst [vmem:[%s1446_s2] sm:$0xff] %v1443_v28  ;;  %v1461_v19 = vpack.c.bf16 %v1443_v28, %v1443_v28 }
 0x40f   : > { %1470 = vmatmul.bf16.vlgmr.msrb.gmra.mxu0 %v1461_v19  ;;  %1483 = vmatmul.bf16.vlgmr.msrb.gmra.mxu1 %v1461_v19 }
 0x410   : > { %1496 = vmatmul.bf16.vlgmr.msrb.gmra.mxu2 %v1461_v19  ;;  %1509 = vmatmul.bf16.vlgmr.msrb.gmra.mxu3 %v1461_v19 }
 0x48c   : > { %v1471_v26 = vpop.f32.mrf.mxu0  ;;  %v1484_v29 = vpop.f32.mrf.mxu1 }
 0x48d   : > { %v1514_v32 = vadd.f32 %v1471_v26, %v1456_v23  ;;  %v1515_v18 = vadd.f32 %v1484_v29, %v1457_v22 }
 0x48f   : > { %v2985_v37 = vmul.f32 -1.442695, %v1514_v32  ;;  %v2986_v11 = vmul.f32 -1.442695, %v1515_v18 }
 0x491   : > { %3520 = vpow2.f32 %v2985_v37 }
 0x492   : > { %3522 = vpow2.f32 %v2986_v11 }
 0x493   : > { %v1497_v1 = vpop.f32.mrf.mxu2  ;;  %v1510_v25 = vpop.f32.mrf.mxu3 }
 0x494   : > { %v1516_v34 = vadd.f32 %v1497_v1, %v1458_v27  ;;  %v1473_v33 = vpop.f32.mrf.mxu0  ;;  %v1486_v3 = vpop.f32.mrf.mxu1  ;;  %v1517_v38 = vadd.f32 %v1510_v25, %v1459_v35  ;;  %v3108_v35 = vld [vmem:[#allocation7 + $0x1f0] sm:$0xf0] (%p1148_p1) }
 0x496   : > { %v2987_v36 = vmul.f32 -1.442695, %v1516_v34 }
 0x497   : > { %v3521_v51 = vpop.eup %3520 }
 0x498   : > { %v3523_v55 = vpop.eup %3522  ;;  %v1527_v6 = vadd.f32 1.0, %v3521_v51  ;;  %3524 = vpow2.f32 %v2987_v36 }
 0x499   : > { %v1528_v7 = vadd.f32 1.0, %v3523_v55 }
 0x49a   : > { %3526 = vrcp.f32 %v1527_v6  ;;  %v1541_v4 = vand.u32 2147483648, %v1527_v6  ;;  %v1539_v15 = vand.u32 2147483647, %v1527_v6  ;;  %vm1535_vm7 = vweird.f32 %v1527_v6 }
 0x49b   : > { %3528 = vrcp.f32 %v1528_v7  ;;  %v1499_v60 = vpop.f32.mrf.mxu2  ;;  %v1512_v40 = vpop.f32.mrf.mxu3  ;;  %v1556_v12 = vand.u32 2147483648, %v1528_v7  ;;  %v1554_v8 = vand.u32 2147483647, %v1528_v7  ;;  %vm1550_vm8 = vweird.f32 %v1528_v7 }
 0x49c   : > { %v1542_v30 = vor.u32 1.1754944e-38, %v1541_v4  ;;  %vm1540_vm11 = vcmp.eq.f32.partialorder %v1539_v15, 8.507059e+37  ;;  %v3400_v60 = vld [vmem:[#allocation7 + $0x1e4] sm:$0xf] (%p1148_p1) }
 0x49d   : > { %v1557_v19 = vor.u32 1.1754944e-38, %v1556_v12  ;;  %vm1555_vm12 = vcmp.eq.f32.partialorder %v1554_v8, 8.507059e+37  ;;  %v3396_v4 = vld [vmem:[#allocation7 + $0x1c4] sm:$0xf] (%p1148_p1)  ;;  %v3092_v12 = vld [vmem:[#allocation7 + $0x1d0] sm:$0xf0] (%p1148_p1) }
 0x49e   : > { %v3525_v42 = vpop.eup %3524  ;;  %v3095_v49 = vor.u32 (%p1148_p1), %v3396_v4, %v3092_v12  ;;  %v3388_v15 = vld [vmem:[#allocation7 + $0x184] sm:$0xf] (%p1148_p1)  ;;  %v3060_v8 = vld [vmem:[#allocation7 + $0x190] sm:$0xf0] (%p1148_p1)  ;;  %v4922_v4 = vmov (%p1148_p1), 0.0  }
 0x49f   : > { %v1529_v31 = vadd.f32 1.0, %v3525_v42  ;;  %v3114_v42 = vld [vmem:[#allocation7 + $0x1e8] sm:$0xf] (%p1148_p1)  ;;  %v3377_v12 = vld [vmem:[#allocation7 + $0x12c] sm:$0xf] (%p1148_p1) }
 0x4a0   : > { %v3527_v16 = vpop.eup %3526 }
 0x4a1   : > { %v3529_v0 = vpop.eup %3528  ;;  %v1531_v17 = vmul.f32 %v3527_v16, %v1527_v6  ;;  %3530 = vrcp.f32 %v1529_v31  ;;  %vm1536_vm5 = vweird.f32 %v3527_v16  ;;  %v1571_v34 = vand.u32 2147483648, %v1529_v31 }
 0x4a2   : > { %v1546_v9 = vmul.f32 %v3529_v0, %v1528_v7  ;;  %3532 = vtanh.f32 %v1517_v38  ;;  %vm1551_vm6 = vweird.f32 %v3529_v0  ;;  %vm1537_vm9 = vmor %vm1535_vm7, %vm1536_vm5  ;;  %vm1565_vm14 = vweird.f32 %v1529_v31  ;;  %v3402_v7 = vld [vmem:[#allocation7 + $0x1ec] sm:$0xf0] (%p1148_p1) }
 0x4a3   : > { %v1532_v20 = vsub.f32 1.0, %v1531_v17  ;;  %vm1552_vm10 = vmor %vm1550_vm8, %vm1551_vm6  ;;  %v1569_v33 = vand.u32 2147483647, %v1529_v31  ;;  %v1572_v36 = vor.u32 1.1754944e-38, %v1571_v34  ;;  %v3116_v17 = vld [vmem:[#allocation7 + $0x1f8] sm:$0xf0] (%p1148_p1) }
 0x4a4   : > { %v1547_v2 = vsub.f32 1.0, %v1546_v9  ;;  %v3090_v9 = vld [vmem:[#allocation7 + $0x1c0] sm:$0xf] (%p1148_p1) }
 0x4a5   : > { %v1533_v5 = vmul.f32 %v3527_v16, %v1532_v20  ;;  %vm1570_vm0 = vcmp.eq.f32.partialorder %v1569_v33, 8.507059e+37 }
 0x4a6   : > { %v1548_v24 = vmul.f32 %v3529_v0, %v1547_v2  ;;  %v3398_v2 = vld [vmem:[#allocation7 + $0x1cc] sm:$0xf0] (%p1148_p1) }
 0x4a7   : > { %v3531_v13 = vpop.eup %3530  ;;  %v1534_v10 = vadd.f32 %v3527_v16, %v1533_v5  ;;  %v3091_v5 = vor.u32 (%p1148_p1), %v3398_v2, %v3090_v9  ;;  %v3379_v2 = vld [vmem:[#allocation7 + $0x134] sm:$0xf0] (%p1148_p1) }
 0x4a8   : > { %v1561_v21 = vmul.f32 %v3531_v13, %v1529_v31  ;;  %v1549_v28 = vadd.f32 %v3529_v0, %v1548_v24  ;;  %v3533_v22 = vpop.eup %3532  ;;  %vm1566_vm13 = vweird.f32 %v3531_v13  ;;  %v3403_v31 = vld [vmem:[#allocation7 + $0x1f4] sm:$0xf0] (%p1148_p1)  ;;  %v3087_v24 = vor.u32 (%p1148_p1), %v3393_v48, %v3084_v58 }
 0x4a9   : > { %v1538_v23 = vsel %vm1537_vm9, %v3527_v16, %v1534_v10  ;;  %vm1567_vm15 = vmor %vm1565_vm14, %vm1566_vm13  ;;  %v3111_v16 = vor.u32 (%p1148_p1), %v3400_v60, %v3108_v35  ;;  %v3115_v38 = vor.u32 (%p1148_p1), %v3403_v31, %v3114_v42  ;;  %v3391_v10 = vld [vmem:[#allocation7 + $0x194] sm:$0xf0] (%p1148_p1)  ;;  %v3381_v60 = vld [vmem:[#allocation7 + $0x14c] sm:$0xf] (%p1148_p1)  ;;  %v2999_v58 = vor.u32 (%p1148_p1), %v3372_v56, %v2996_v59 }
 0x4aa   : > { %v1562_v26 = vsub.f32 1.0, %v1561_v21  ;;  %v1543_v29 = vsel %vm1540_vm11, %v1542_v30, %v1538_v23  ;;  %v1553_v32 = vsel %vm1552_vm10, %v3529_v0, %v1549_v28  ;;  %v3401_v0 = vld [vmem:[#allocation7 + $0x1ec] sm:$0xf] (%p1148_p1)  ;;  %v3068_v30 = vld [vmem:[#allocation7 + $0x198] sm:$0xf0] (%p1148_p1)  ;;  %v3059_v28 = vor.u32 (%p1148_p1), %v3390_v43, %v3058_v41 }
 0x4ab   : > { %v1558_v18 = vsel %vm1555_vm12, %v1557_v19, %v1553_v32  ;;  %v1578_v37 = vmul.f32 %v3533_v22, %v1543_v29  ;;  %v3119_v20 = vor.u32 (%p1148_p1), %v3401_v0, %v3116_v17  ;;  %1831 = vmatpush.bf16.msra.mxu1 (%p1148_p1), %v3111_v16  ;;  %1860 = vmatpush.bf16.msra.mxu2 (%p1148_p1), %v3115_v38  ;;  %v3389_v21 = vld [vmem:[#allocation7 + $0x18c] sm:$0xf] (%p1148_p1)  ;;  %v3042_v22 = vld [vmem:[#allocation7 + $0x160] sm:$0xf] (%p1148_p1)  ;;  %v3384_v29 = vld [vmem:[#allocation7 + $0x164] sm:$0xf] (%p1148_p1) }
 0x4ac   : > { %v1563_v11 = vmul.f32 %v3531_v13, %v1562_v26  ;;  %v1577_v27 = vmul.f32 %v1558_v18, %v4359_v14  ;;  %v3106_v14 = vld [vmem:[#allocation7 + $0x1e0] sm:$0xf] (%p1148_p1)  ;;  %v3063_v19 = vor.u32 (%p1148_p1), %v3388_v15, %v3060_v8  ;;  %v3386_v26 = vld [vmem:[#allocation7 + $0x16c] sm:$0xf0] (%p1148_p1)  ;;  %v3071_v32 = vor.u32 (%p1148_p1), %v3389_v21, %v3068_v30  ;;  %v3044_v18 = vld [vmem:[#allocation7 + $0x170] sm:$0xf0] (%p1148_p1) }
 0x4ad   :  { %v3107_v40 = vor.u32 (%p1148_p1), %v3402_v7, %v3106_v14  ;;  %1889 = vmatpush.bf16.msra.mxu3 (%p1148_p1), %v3119_v20  ;;  %v3047_v34 = vor.u32 (%p1148_p1), %v3384_v29, %v3044_v18  ;;  %v3034_v14 = vld [vmem:[#allocation7 + $0x148] sm:$0xf] (%p1148_p1)  ;;  %v3383_v7 = vld [vmem:[#allocation7 + $0x154] sm:$0xf0] (%p1148_p1)  ;;  %v3010_v42 = vld [vmem:[#allocation7 + $0x120] sm:$0xf] (%p1148_p1) }
 0x4ae   : > { %v1579_v1 = vadd.f32 %v1578_v37, %v1577_v27  ;;  %v1564_v25 = vadd.f32 %v3531_v13, %v1563_v11  ;;  %v3050_v37 = vld [vmem:[#allocation7 + $0x168] sm:$0xf] (%p1148_p1)  ;;  %v3387_v11 = vld [vmem:[#allocation7 + $0x174] sm:$0xf0] (%p1148_p1)  ;;  %v3385_v27 = vld [vmem:[#allocation7 + $0x16c] sm:$0xf] (%p1148_p1)  ;;  %v3035_v16 = vor.u32 (%p1148_p1), %v3383_v7, %v3034_v14 }
 0x4af   :  { %1802 = vmatpush.bf16.msra.mxu0 (%p1148_p1), %v3107_v40  ;;  %1832 = vmatpush.bf16.msra.mxu1 (%p1148_p1), %v3095_v49  ;;  %v3051_v33 = vor.u32 (%p1148_p1), %v3387_v11, %v3050_v37  ;;  %v3036_v40 = vld [vmem:[#allocation7 + $0x158] sm:$0xf0] (%p1148_p1)  ;;  %v3378_v38 = vld [vmem:[#allocation7 + $0x12c] sm:$0xf0] (%p1148_p1)  ;;  %v3376_v0 = vld [vmem:[#allocation7 + $0x124] sm:$0xf] (%p1148_p1) }
 0x4b0   : > { %3534 = vtanh.f32 %v1579_v1  ;;  %1582 = vst [vmem:[#allocation5] sm:$0xff] %v1579_v1  ;;  %v1568_v3 = vsel %vm1567_vm15, %v3531_v13, %v1564_v25  ;;  %1861 = vmatpush.bf16.msra.mxu2 (%p1148_p1), %v3099_v54  ;;  %v3066_v13 = vld [vmem:[#allocation7 + $0x188] sm:$0xf] (%p1148_p1)  ;;  %v3052_v1 = vld [vmem:[#allocation7 + $0x178] sm:$0xf0] (%p1148_p1)  ;;  %v3043_v25 = vor.u32 (%p1148_p1), %v3386_v26, %v3042_v22  ;;  %v3039_v9 = vor.u32 (%p1148_p1), %v3381_v60, %v3036_v40 }
 0x4b1   : > { %v1573_v55 = vsel %vm1570_vm0, %v1572_v36, %v1568_v3  ;;  %1890 = vmatpush.bf16.msra.mxu3 (%p1148_p1), %v3103_v61  ;;  %v3067_v23 = vor.u32 (%p1148_p1), %v3391_v10, %v3066_v13  ;;  %v3026_v3 = vld [vmem:[#allocation7 + $0x140] sm:$0xf] (%p1148_p1)  ;;  %v3382_v36 = vld [vmem:[#allocation7 + $0x14c] sm:$0xf0] (%p1148_p1)  ;;  %v3012_v17 = vld [vmem:[#allocation7 + $0x130] sm:$0xf0] (%p1148_p1)  ;;  %v3011_v49 = vor.u32 (%p1148_p1), %v3378_v38, %v3010_v42 }
 0x4b2   :  { %v3027_v35 = vor.u32 (%p1148_p1), %v3382_v36, %v3026_v3  ;;  %v3018_v20 = vld [vmem:[#allocation7 + $0x128] sm:$0xf] (%p1148_p1)  ;;  %1951 = vst [vmem:[#allocation5] sm:$0xff] (%p1148_p1), %v4922_v4  ;;  %v3015_v50 = vor.u32 (%p1148_p1), %v3376_v0, %v3012_v17  ;;  %v3374_v54 = vld [vmem:[#allocation7 + $0x10c] sm:$0xf0] (%p1148_p1) }
 0x4b3   :  { %1803 = vmatpush.bf16.msra.mxu0 (%p1148_p1), %v3091_v5  ;;  %1833 = vmatpush.bf16.msra.mxu1 (%p1148_p1), %v3079_v62  ;;  %v3020_v5 = vld [vmem:[#allocation7 + $0x138] sm:$0xf0] (%p1148_p1)  ;;  %v3019_v52 = vor.u32 (%p1148_p1), %v3379_v2, %v3018_v20  ;;  %v3002_v61 = vld [vmem:[#allocation7 + $0x108] sm:$0xf] (%p1148_p1)  ;;  %v4403_v56 = vld [vmem:[#allocation9 + $0x204] sm:$0xf] (%p1148_p1) }
 0x4b4   :  { %1862 = vmatpush.bf16.msra.mxu2 (%p1148_p1), %v3083_v63  ;;  %v3023_v57 = vor.u32 (%p1148_p1), %v3377_v12, %v3020_v5  ;;  %v3003_v62 = vor.u32 (%p1148_p1), %v3375_v39, %v3002_v61  ;;  %v3007_v63 = vor.u32 (%p1148_p1), %v3373_v44, %v3004_v45  ;;  %4923 = vst [vmem:[#allocation13_spill] sm:$0xff] (%p1148_p1), %v4403_v56  ;;  %v4407_v59 = vld [vmem:[#allocation9 + $0x20c] sm:$0xf] (%p1148_p1)  ;;  %v4409_v61 = vld [vmem:[#allocation9 + $0x208] sm:$0xf] (%p1148_p1) }
 0x4b5   :  { %1891 = vmatpush.bf16.msra.mxu3 (%p1148_p1), %v3087_v24  ;;  %4925 = vst [vmem:[#allocation15_spill] sm:$0xff] (%p1148_p1), %v4407_v59  ;;  %v4411_v39 = vld [vmem:[#allocation9 + $0x210] sm:$0xf0] (%p1148_p1)  ;;  %v4413_v44 = vld [vmem:[#allocation9 + $0x20c] sm:$0xf0] (%p1148_p1) }
 0x4b6   : > { %v3535_v51 = vpop.eup %3534  ;;  %1150 = sbr.rel (!%p1148_p1) target bundleno = 831 (0x33f), region = 111  ;;  %4926 = vst [vmem:[#allocation16_spill] sm:$0xff] (%p1148_p1), %v4409_v61  ;;  %v4415_v45 = vld [vmem:[#allocation9 + $0x218] sm:$0xf0] (%p1148_p1)  ;;  %v4526_v61 = vld [vmem:[#allocation9 + $0x2e4] sm:$0xf] (%p1148_p1) }
 0x4b7   : > { %v1581_v6 = vmul.f32 %v3535_v51, %v1573_v55  ;;  %1804 = vmatpush.bf16.msra.mxu0 (%p1148_p1), %v3075_v46  ;;  %1834 = vmatpush.bf16.msra.mxu1 (%p1148_p1), %v3063_v19  ;;  %v3380_v51 = vld [vmem:[#allocation7 + $0x144] sm:$0xf] (%p1148_p1)  ;;  %v3055_v55 = vor.u32 (%p1148_p1), %v3385_v27, %v3052_v1  ;;  %v2995_v46 = vor.u32 (%p1148_p1), %v3374_v54, %v2994_v53  ;;  %v2991_v19 = vld [vmem:[%s4736_s4 + $0x8] sm:$0xf] (%p1148_p1)  ;;  %v4528_v56 = vld [vmem:[#allocation9 + $0x2e0] sm:$0xf] (%p1148_p1) }
 0x4b8   :  { %1863 = vmatpush.bf16.msra.mxu2 (%p1148_p1), %v3067_v23  ;;  %v4377_v23 = vperm.slane (%p1148_p1), %v2991_v19, 0  ;;  %v4379_v22 = vperm.slane (%p1148_p1), %v2991_v19, 1  ;;  %v4383_v37 = vperm.slane (%p1148_p1), %v2991_v19, 2  ;;  %v4385_v11 = vperm.slane (%p1148_p1), %v2991_v19, 3  ;;  %4927 = vst [vmem:[#allocation17_spill] sm:$0xff] (%p1148_p1), %v4411_v39  ;;  %s4545_s4 = smov (%p1148_p1), 0  }
 0x4b9   : > { %1583 = vst [vmem:[#allocation4] sm:$0xff] %v1581_v6  ;;  %1892 = vmatpush.bf16.msra.mxu3 (%p1148_p1), %v3071_v32  ;;  %v4438_v19 = vld [vmem:[#allocation9 + $0x244] sm:$0xf] (%p1148_p1)  ;;  %v4531_v39 = vld [vmem:[#allocation9 + $0x2ec] sm:$0xf] (%p1148_p1) }
 0x4ba   : > { %2990 = vst [vmem:[%s1446_s2 + $0x8] sm:$0xff] %v1581_v6  ;;  %v3028_v6 = vld [vmem:[#allocation7 + $0x150] sm:$0xf0] (%p1148_p1) }
 0x4bb   :  { %1805 = vmatpush.bf16.msra.mxu0 %v3059_v28  ;;  %1835 = vmatpush.bf16.msra.mxu1 %v3047_v34  ;;  %v3031_v31 = vor.u32 %v3380_v51, %v3028_v6  ;;  %1950 = vst [vmem:[#allocation4] sm:$0xff] %v4922_v4 }
 0x4bc   :  { %1864 = vmatpush.bf16.msra.mxu2 %v3051_v33  ;;  %4928 = vst [vmem:[#allocation18_spill] sm:$0xff] %v4413_v44  ;;  %v4533_v44 = vld [vmem:[#allocation9 + $0x2e8] sm:$0xf] }
 0x4bd   :  { %1893 = vmatpush.bf16.msra.mxu3 %v3055_v55  ;;  %4929 = vst [vmem:[#allocation19_spill] sm:$0xff] %v4415_v45 }
 0x4be   :  { %4936 = vst [vmem:[#allocation26_spill] sm:$0xff] %v4438_v19 }
 0x4bf   :  { %1806 = vmatpush.bf16.msra.mxu0 %v3043_v25  ;;  %1836 = vmatpush.bf16.msra.mxu1 %v3031_v31  ;;  %4964 = vst [vmem:[#allocation54_spill] sm:$0xff] %v4531_v39 }
 0x4c0   :  { %1865 = vmatpush.bf16.msra.mxu2 %v3035_v16 }
 0x4c1   :  { %1894 = vmatpush.bf16.msra.mxu3 %v3039_v9  ;;  %v1586_v47 = vld [vmem:[#allocation2] sm:$0xff]  ;;  %v1587_v48 = vld [vmem:[#allocation2 + $0x8] sm:$0xff]  ;;  %v1588_v43 = vld [vmem:[#allocation2 + $0x10] sm:$0xff] }
 0x4c2   :  { %v1594_v41 = vpack.c.bf16 %v1587_v48, %v1586_v47  ;;  %v1589_v15 = vld [vmem:[#allocation2 + $0x18] sm:$0xff]  ;;  %v1590_v8 = vld [vmem:[#allocation2 + $0x20] sm:$0xff]  ;;  %v1591_v13 = vld [vmem:[#allocation2 + $0x28] sm:$0xff] }
 0x4c3   :  { %1807 = vmatpush.bf16.msra.mxu0 %v3027_v35  ;;  %1837 = vmatpush.bf16.msra.mxu1 %v3015_v50  ;;  %v1595_v24 = vpack.c.bf16 %v1589_v15, %v1588_v43  ;;  %v1596_v10 = vpack.c.bf16 %v1591_v13, %v1590_v8  ;;  %v1592_v21 = vld [vmem:[#allocation2 + $0x30] sm:$0xff]  ;;  %v1593_v30 = vld [vmem:[#allocation2 + $0x38] sm:$0xff]  ;;  %v4430_v8 = vld [vmem:[#allocation9 + $0x22c] sm:$0xf0] }
 0x4c4   :  { %1866 = vmatpush.bf16.msra.mxu2 %v3019_v52  ;;  %v1597_v28 = vpack.c.bf16 %v1593_v30, %v1592_v21  ;;  %v4419_v47 = vld [vmem:[#allocation9 + $0x224] sm:$0xf]  ;;  %4933 = vst [vmem:[#allocation23_spill] sm:$0xff] %v4430_v8  ;;  %v4432_v13 = vld [vmem:[#allocation9 + $0x238] sm:$0xf0] }
 0x4c5   :  { %1895 = vmatpush.bf16.msra.mxu3 %v3023_v57  ;;  %v4405_v57 = vld [vmem:[#allocation9 + $0x200] sm:$0xf]  ;;  %4934 = vst [vmem:[#allocation24_spill] sm:$0xff] %v4432_v13 }
 0x4c6   :  { %4924 = vst [vmem:[#allocation14_spill] sm:$0xff] %v4405_v57  ;;  %v4535_v57 = vld [vmem:[#allocation9 + $0x2f0] sm:$0xf0] }
 0x4c7   :  { %1808 = vmatpush.bf16.msra.mxu0 %v3011_v49  ;;  %1838 = vmatpush.bf16.msra.mxu1 %v2999_v58  ;;  %v4421_v58 = vld [vmem:[#allocation9 + $0x220] sm:$0xf] }
 0x4c8   :  { %1867 = vmatpush.bf16.msra.mxu2 %v3003_v62  ;;  %v4423_v62 = vld [vmem:[#allocation9 + $0x22c] sm:$0xf] }
 0x4c9   :  { %1896 = vmatpush.bf16.msra.mxu3 %v3007_v63  ;;  %4931 = vst [vmem:[#allocation21_spill] sm:$0xff] %v4423_v62  ;;  %v4425_v63 = vld [vmem:[#allocation9 + $0x228] sm:$0xf] }
 0x4ca   :  { %1839 = vmatmul.bf16.vlgmr.msra.gmra.mxu1 %v1594_v41 }
 0x4cb   :  { %1809 = vmatpush.bf16.msra.mxu0 %v2995_v46  ;;  %1868 = vmatmul.bf16.vlgmr.msra.gmra.mxu2 %v1594_v41  ;;  %v4417_v46 = vld [vmem:[#allocation9 + $0x214] sm:$0xf0] }
 0x4cc   :  { %1897 = vmatmul.bf16.vlgmr.msra.gmra.mxu3 %v1594_v41  ;;  %4930 = vst [vmem:[#allocation20_spill] sm:$0xff] %v4417_v46  ;;  %v4524_v46 = vld [vmem:[#allocation9 + $0x2d4] sm:$0xf0] }
 0x4ce   :  { %1810 = vmatmul.bf16.vlgmr.msra.gmra.mxu0 %v1594_v41 }
 0x4da   :  { %1844 = vmatmul.bf16.gmra.mxu1 %v1595_v24 }
 0x4db   :  { %1873 = vmatmul.bf16.gmra.mxu2 %v1595_v24 }
 0x4dc   :  { %1902 = vmatmul.bf16.gmra.mxu3 %v1595_v24 }
 0x4de   :  { %1815 = vmatmul.bf16.gmra.mxu0 %v1595_v24  ;;  %v4428_v24 = vld [vmem:[#allocation9 + $0x230] sm:$0xf0] }
 0x4df   :  { %4932 = vst [vmem:[#allocation22_spill] sm:$0xff] %v4428_v24 }
 0x4ea   :  { %1849 = vmatmul.bf16.gmra.mxu1 %v1596_v10 }
 0x4eb   :  { %1878 = vmatmul.bf16.gmra.mxu2 %v1596_v10 }
 0x4ec   :  { %1907 = vmatmul.bf16.gmra.mxu3 %v1596_v10 }
 0x4ee   :  { %1820 = vmatmul.bf16.gmra.mxu0 %v1596_v10 }
 0x4fa   :  { %1854 = vmatmul.bf16.gmra.mxu1 %v1597_v28 }
 0x4fb   :  { %1883 = vmatmul.bf16.gmra.mxu2 %v1597_v28 }
 0x4fc   :  { %1912 = vmatmul.bf16.gmra.mxu3 %v1597_v28 }
 0x4fe   :  { %1825 = vmatmul.bf16.gmra.mxu0 %v1597_v28  ;;  %v4436_v28 = vld [vmem:[#allocation9 + $0x234] sm:$0xf0] }
 0x4ff   :  { %4935 = vst [vmem:[#allocation25_spill] sm:$0xff] %v4436_v28 }
 0x547   :  { %v1840_v32 = vpop.f32.mrf.mxu1 }
 0x548   :  { %v1841_v18 = vadd.f32 %v1840_v32, %v4379_v22  ;;  %v4443_v32 = vld [vmem:[#allocation9 + $0x24c] sm:$0xf] }
 0x549   :  { %4938 = vst [vmem:[#allocation28_spill] sm:$0xff] %v4443_v32 }
 0x54a   :  { %1919 = vst [vmem:[#allocation3 + $0x8] sm:$0xff] %v1841_v18  ;;  %v4445_v18 = vld [vmem:[#allocation9 + $0x248] sm:$0xf] }
 0x54b   :  { %v1811_v26 = vpop.f32.mrf.mxu0  ;;  %4939 = vst [vmem:[#allocation29_spill] sm:$0xff] %v4445_v18 }
 0x54c   :  { %v1812_v29 = vadd.f32 %v1811_v26, %v4377_v23  ;;  %v4440_v26 = vld [vmem:[#allocation9 + $0x240] sm:$0xf] }
 0x54d   :  { %4937 = vst [vmem:[#allocation27_spill] sm:$0xff] %v4440_v26 }
 0x54e   :  { %1918 = vst [vmem:[#allocation3] sm:$0xff] %v1812_v29  ;;  %v1869_v27 = vpop.f32.mrf.mxu2 }
 0x54f   :  { %v1870_v1 = vadd.f32 %v1869_v27, %v4383_v37  ;;  %v1898_v25 = vpop.f32.mrf.mxu3  ;;  %v1842_v36 = vpop.f32.mrf.mxu1  ;;  %v4447_v27 = vld [vmem:[#allocation9 + $0x250] sm:$0xf0] }
 0x550   :  { %v1899_v33 = vadd.f32 %v1898_v25, %v4385_v11  ;;  %v1843_v51 = vadd.f32 %v1842_v36, %v4379_v22  ;;  %4940 = vst [vmem:[#allocation30_spill] sm:$0xff] %v4447_v27  ;;  %v4451_v25 = vld [vmem:[#allocation9 + $0x258] sm:$0xf0]  ;;  %v4459_v36 = vld [vmem:[#allocation9 + $0x26c] sm:$0xf] }
 0x551   :  { %1920 = vst [vmem:[#allocation3 + $0x10] sm:$0xff] %v1870_v1  ;;  %v4449_v1 = vld [vmem:[#allocation9 + $0x24c] sm:$0xf0] }
 0x552   :  { %1921 = vst [vmem:[#allocation3 + $0x18] sm:$0xff] %v1899_v33  ;;  %v4455_v33 = vld [vmem:[#allocation9 + $0x264] sm:$0xf] }
 0x553   :  { %v1813_v34 = vpop.f32.mrf.mxu0  ;;  %1923 = vst [vmem:[#allocation3 + $0x28] sm:$0xff] %v1843_v51  ;;  %v4461_v51 = vld [vmem:[#allocation9 + $0x268] sm:$0xf] }
 0x554   :  { %v1814_v3 = vadd.f32 %v1813_v34, %v4377_v23  ;;  %4941 = vst [vmem:[#allocation31_spill] sm:$0xff] %v4449_v1  ;;  %v4453_v34 = vld [vmem:[#allocation9 + $0x254] sm:$0xf0] }
 0x555   :  { %4942 = vst [vmem:[#allocation32_spill] sm:$0xff] %v4451_v25 }
 0x556   :  { %1922 = vst [vmem:[#allocation3 + $0x20] sm:$0xff] %v1814_v3  ;;  %v1871_v55 = vpop.f32.mrf.mxu2  ;;  %v4457_v3 = vld [vmem:[#allocation9 + $0x260] sm:$0xf] }
 0x557   :  { %v1872_v6 = vadd.f32 %v1871_v55, %v4383_v37  ;;  %v1900_v14 = vpop.f32.mrf.mxu3  ;;  %v1845_v35 = vpop.f32.mrf.mxu1  ;;  %4943 = vst [vmem:[#allocation33_spill] sm:$0xff] %v4453_v34  ;;  %v4463_v55 = vld [vmem:[#allocation9 + $0x270] sm:$0xf0] }
 0x558   :  { %v1901_v60 = vadd.f32 %v1900_v14, %v4385_v11  ;;  %v1846_v42 = vadd.f32 %v1845_v35, %v4379_v22  ;;  %4944 = vst [vmem:[#allocation34_spill] sm:$0xff] %v4455_v33  ;;  %v4465_v14 = vld [vmem:[#allocation9 + $0x26c] sm:$0xf0] }
 0x559   :  { %1924 = vst [vmem:[#allocation3 + $0x30] sm:$0xff] %v1872_v6 }
 0x55a   :  { %1925 = vst [vmem:[#allocation3 + $0x38] sm:$0xff] %v1901_v60  ;;  %v4469_v60 = vld [vmem:[#allocation9 + $0x274] sm:$0xf0] }
 0x55b   :  { %v1816_v7 = vpop.f32.mrf.mxu0  ;;  %1927 = vst [vmem:[#allocation3 + $0x48] sm:$0xff] %v1846_v42 }
 0x55c   :  { %v1817_v40 = vadd.f32 %v1816_v7, %v4377_v23  ;;  %4945 = vst [vmem:[#allocation35_spill] sm:$0xff] %v4457_v3  ;;  %v4467_v7 = vld [vmem:[#allocation9 + $0x278] sm:$0xf0] }
 0x55d   :  { %4946 = vst [vmem:[#allocation36_spill] sm:$0xff] %v4459_v36 }
 0x55e   :  { %1926 = vst [vmem:[#allocation3 + $0x40] sm:$0xff] %v1817_v40  ;;  %v1874_v31 = vpop.f32.mrf.mxu2 }
 0x55f   :  { %v1875_v16 = vadd.f32 %v1874_v31, %v4383_v37  ;;  %v1903_v38 = vpop.f32.mrf.mxu3  ;;  %v1847_v20 = vpop.f32.mrf.mxu1  ;;  %4947 = vst [vmem:[#allocation37_spill] sm:$0xff] %v4465_v14  ;;  %v4472_v31 = vld [vmem:[#allocation9 + $0x284] sm:$0xf] }
 0x560   :  { %v1904_v17 = vadd.f32 %v1903_v38, %v4385_v11  ;;  %v1848_v2 = vadd.f32 %v1847_v20, %v4379_v22  ;;  %4948 = vst [vmem:[#allocation38_spill] sm:$0xff] %v4467_v7  ;;  %v4476_v38 = vld [vmem:[#allocation9 + $0x28c] sm:$0xf]  ;;  %v4480_v20 = vld [vmem:[#allocation9 + $0x288] sm:$0xf] }
 0x561   :  { %1928 = vst [vmem:[#allocation3 + $0x50] sm:$0xff] %v1875_v16  ;;  %v4474_v16 = vld [vmem:[#allocation9 + $0x280] sm:$0xf] }
 0x562   :  { %1929 = vst [vmem:[#allocation3 + $0x58] sm:$0xff] %v1904_v17 }
 0x563   :  { %v1818_v0 = vpop.f32.mrf.mxu0  ;;  %1931 = vst [vmem:[#allocation3 + $0x68] sm:$0xff] %v1848_v2  ;;  %v4482_v2 = vld [vmem:[#allocation9 + $0x290] sm:$0xf0] }
 0x564   :  { %v1819_v9 = vadd.f32 %v1818_v0, %v4377_v23  ;;  %4949 = vst [vmem:[#allocation39_spill] sm:$0xff] %v4472_v31 }
 0x565   :  { %4950 = vst [vmem:[#allocation40_spill] sm:$0xff] %v4474_v16 }
 0x566   :  { %1930 = vst [vmem:[#allocation3 + $0x60] sm:$0xff] %v1819_v9  ;;  %v1876_v4 = vpop.f32.mrf.mxu2 }
 0x567   :  { %v1877_v12 = vadd.f32 %v1876_v4, %v4383_v37  ;;  %v1905_v5 = vpop.f32.mrf.mxu3  ;;  %v1850_v53 = vpop.f32.mrf.mxu1  ;;  %4951 = vst [vmem:[#allocation41_spill] sm:$0xff] %v4476_v38  ;;  %v4484_v4 = vld [vmem:[#allocation9 + $0x28c] sm:$0xf0] }
 0x568   :  { %v1906_v50 = vadd.f32 %v1905_v5, %v4385_v11  ;;  %v1851_v54 = vadd.f32 %v1850_v53, %v4379_v22  ;;  %4952 = vst [vmem:[#allocation42_spill] sm:$0xff] %v4480_v20  ;;  %v4487_v5 = vld [vmem:[#allocation9 + $0x298] sm:$0xf0]  ;;  %v4495_v53 = vld [vmem:[#allocation9 + $0x2ac] sm:$0xf] }
 0x569   :  { %1932 = vst [vmem:[#allocation3 + $0x70] sm:$0xff] %v1877_v12 }
 0x56a   :  { %1933 = vst [vmem:[#allocation3 + $0x78] sm:$0xff] %v1906_v50  ;;  %v4491_v50 = vld [vmem:[#allocation9 + $0x2a4] sm:$0xf] }
 0x56b   :  { %v1821_v49 = vpop.f32.mrf.mxu0  ;;  %1935 = vst [vmem:[#allocation3 + $0x88] sm:$0xff] %v1851_v54  ;;  %v4497_v54 = vld [vmem:[#allocation9 + $0x2a8] sm:$0xf] }
 0x56c   :  { %v1822_v52 = vadd.f32 %v1821_v49, %v4377_v23  ;;  %4953 = vst [vmem:[#allocation43_spill] sm:$0xff] %v4482_v2  ;;  %v4489_v49 = vld [vmem:[#allocation9 + $0x294] sm:$0xf0] }
 0x56d   :  { %4954 = vst [vmem:[#allocation44_spill] sm:$0xff] %v4484_v4 }
 0x56e   :  { %1934 = vst [vmem:[#allocation3 + $0x80] sm:$0xff] %v1822_v52  ;;  %v1879_v48 = vpop.f32.mrf.mxu2  ;;  %v4493_v52 = vld [vmem:[#allocation9 + $0x2a0] sm:$0xf] }
 0x56f   :  { %v1880_v41 = vadd.f32 %v1879_v48, %v4383_v37  ;;  %v1908_v43 = vpop.f32.mrf.mxu3  ;;  %v1852_v30 = vpop.f32.mrf.mxu1  ;;  %4955 = vst [vmem:[#allocation45_spill] sm:$0xff] %v4487_v5  ;;  %v4499_v48 = vld [vmem:[#allocation9 + $0x2b0] sm:$0xf0] }
 0x570   :  { %v1909_v10 = vadd.f32 %v1908_v43, %v4385_v11  ;;  %v1853_v29 = vadd.f32 %v1852_v30, %v4379_v22  ;;  %v4503_v43 = vld [vmem:[#allocation9 + $0x2b8] sm:$0xf0]  ;;  %v4509_v30 = vld [vmem:[#allocation9 + $0x2c0] sm:$0xf] }
 0x571   :  { %1936 = vst [vmem:[#allocation3 + $0x90] sm:$0xff] %v1880_v41  ;;  %v4501_v41 = vld [vmem:[#allocation9 + $0x2ac] sm:$0xf0] }
 0x572   :  { %1937 = vst [vmem:[#allocation3 + $0x98] sm:$0xff] %v1909_v10  ;;  %v4507_v10 = vld [vmem:[#allocation9 + $0x2c4] sm:$0xf] }
 0x573   :  { %v1823_v15 = vpop.f32.mrf.mxu0  ;;  %1939 = vst [vmem:[#allocation3 + $0xa8] sm:$0xff] %v1853_v29  ;;  %v4511_v29 = vld [vmem:[#allocation9 + $0x2cc] sm:$0xf] }
 0x574   :  { %v1824_v21 = vadd.f32 %v1823_v15, %v4377_v23  ;;  %v4505_v15 = vld [vmem:[#allocation9 + $0x2b4] sm:$0xf0]  ;;  %4957 = vst [vmem:[#allocation47_spill] sm:$0xff] %v4507_v10 }
 0x575   :  { %4956 = vst [vmem:[#allocation46_spill] sm:$0xff] %v4505_v15 }
 0x576   :  { %1938 = vst [vmem:[#allocation3 + $0xa0] sm:$0xff] %v1824_v21  ;;  %v1881_v6 = vpop.f32.mrf.mxu2 }
 0x577   :  { %v1882_v40 = vadd.f32 %v1881_v6, %v4383_v37  ;;  %v1910_v35 = vpop.f32.mrf.mxu3  ;;  %v1855_v9 = vpop.f32.mrf.mxu1  ;;  %4958 = vst [vmem:[#allocation48_spill] sm:$0xff] %v4509_v30  ;;  %v4513_v6 = vld [vmem:[#allocation9 + $0x2c8] sm:$0xf] }
 0x578   :  { %v1911_v0 = vadd.f32 %v1910_v35, %v4385_v11  ;;  %v1856_v12 = vadd.f32 %v1855_v9, %v4379_v22  ;;  %4959 = vst [vmem:[#allocation49_spill] sm:$0xff] %v4511_v29  ;;  %v4520_v9 = vld [vmem:[#allocation9 + $0x2d8] sm:$0xf0] }
 0x579   :  { %1940 = vst [vmem:[#allocation3 + $0xb0] sm:$0xff] %v1882_v40 }
 0x57a   :  { %1941 = vst [vmem:[#allocation3 + $0xb8] sm:$0xff] %v1911_v0  ;;  %v4516_v0 = vld [vmem:[#allocation9 + $0x2d0] sm:$0xf0] }
 0x57b   :  { %v1826_v42 = vpop.f32.mrf.mxu0  ;;  %1943 = vst [vmem:[#allocation3 + $0xc8] sm:$0xff] %v1856_v12 }
 0x57c   :  { %v1827_v17 = vadd.f32 %v1826_v42, %v4377_v23  ;;  %4960 = vst [vmem:[#allocation50_spill] sm:$0xff] %v4513_v6 }
 0x57d   :  { %4961 = vst [vmem:[#allocation51_spill] sm:$0xff] %v4516_v0 }
 0x57e   :  { %1942 = vst [vmem:[#allocation3 + $0xc0] sm:$0xff] %v1827_v17  ;;  %v1884_v21 = vpop.f32.mrf.mxu2  ;;  %v4518_v17 = vld [vmem:[#allocation9 + $0x2cc] sm:$0xf0] }
 0x57f   :  { %v1885_v40 = vadd.f32 %v1884_v21, %v4383_v37  ;;  %v1913_v35 = vpop.f32.mrf.mxu3  ;;  %4962 = vst [vmem:[#allocation52_spill] sm:$0xff] %v4518_v17  ;;  %v1857_v45 = vpop.f32.mrf.mxu1 }
 0x580   :  { %4963 = vst [vmem:[#allocation53_spill] sm:$0xff] %v4520_v9  ;;  %v1914_v12 = vadd.f32 %v1913_v35, %v4385_v11  ;;  %v1858_v21 = vadd.f32 %v1857_v45, %v4379_v22  ;;  %v4537_v35 = vld [vmem:[#allocation9 + $0x2ec] sm:$0xf0] }
 0x581   :  { %1944 = vst [vmem:[#allocation3 + $0xd0] sm:$0xff] %v1885_v40 }
 0x582   :  { %1945 = vst [vmem:[#allocation3 + $0xd8] sm:$0xff] %v1914_v12 }
 0x583   :  { %v1828_v42 = vpop.f32.mrf.mxu0  ;;  %4965 = vst [vmem:[#allocation55_spill] sm:$0xff] %v4537_v35 }
 0x584   :  { %v1829_v59 = vadd.f32 %v1828_v42, %v4377_v23  ;;  %v4539_v23 = vld [vmem:[#allocation9 + $0x2f8] sm:$0xf0]  ;;  %v4541_v42 = vld [vmem:[#allocation9 + $0x2f4] sm:$0xf0]  ;;  %1947 = vst [vmem:[#allocation3 + $0xe8] sm:$0xff] %v1858_v21 }
 0x585   :  { %4966 = vst [vmem:[#allocation56_spill] sm:$0xff] %v4539_v23 }
 0x586   :  { %1946 = vst [vmem:[#allocation3 + $0xe0] sm:$0xff] %v1829_v59  ;;  %v1886_v62 = vpop.f32.mrf.mxu2 }
 0x587   :  { %v1887_v40 = vadd.f32 %v1886_v62, %v4383_v37  ;;  %v1915_v13 = vpop.f32.mrf.mxu3 }
 0x588   :  { %v1916_v22 = vadd.f32 %v1915_v13, %v4385_v11 }
 0x589   :  { %1948 = vst [vmem:[#allocation3 + $0xf0] sm:$0xff] %v1887_v40 }
 0x58a   :  { %1949 = vst [vmem:[#allocation3 + $0xf8] sm:$0xff] %v1916_v22 }
 0x58b LB: > { %v4967_v35 = vld [vmem:[#allocation55_spill] sm:$0xff]  ;;  %v4556_v45 = vor.u32 %v4526_v61, %v4535_v57  ;;  %v4560_v37 = vor.u32 %v4541_v42, %v4533_v44  ;;  %v4969_v39 = vld [vmem:[#allocation54_spill] sm:$0xff]  ;;  %v4970_v30 = vld [vmem:[#allocation48_spill] sm:$0xff]  ;;  %v4590_v40 = vor.u32 %v4501_v41, %v4493_v52  ;;  %v4594_v22 = vor.u32 %v4491_v50, %v4499_v48  ;;  %s3120_s27 = sshll.u32 %s3644_s4, 4  ;;  %s1990_s4 = sadd.s32 1, %s3644_s4   ;;  %s3644_s4 = sphi %s4545_s4, %s1990_s4  }
 0x58c   : > { %v4552_v59 = vor.u32 %v4967_v35, %v4528_v56  ;;  %v4968_v23 = vld [vmem:[#allocation56_spill] sm:$0xff]  ;;  %v4972_v0 = vld [vmem:[#allocation51_spill] sm:$0xff]  ;;  %v4974_v6 = vld [vmem:[#allocation50_spill] sm:$0xff]  ;;  %s1992_s28 = sshra.s32 %s3120_s27, 3  ;;  %s3438_s30 = sadd.s32 8, %s3120_s27 }
 0x58d   : > { %v4564_v11 = vor.u32 %v4969_v39, %v4968_v23  ;;  %2176 = vmatpush.bf16.msra.mxu1 %v4556_v45  ;;  %v4971_v17 = vld [vmem:[#allocation52_spill] sm:$0xff]  ;;  %v4973_v10 = vld [vmem:[#allocation47_spill] sm:$0xff]  ;;  %2189 = vmatpush.bf16.msra.mxu2 %v4560_v37  ;;  %v4579_v12 = vor.u32 %v4524_v46, %v4974_v6  ;;  %v4975_v9 = vld [vmem:[#allocation53_spill] sm:$0xff]  ;;  %v3218_v6 = vor.u32 %v4495_v53, %v4503_v43  ;;  %s3436_s0 = sshll.u32 %s1992_s28, 5  ;;  %s2288_s10 = sshra.s32 %s3438_s30, 3 }
 0x58e   : > { %2163 = vmatpush.bf16.msra.mxu0 %v4552_v59  ;;  %v4570_v62 = vor.u32 %v4971_v17, %v4970_v30  ;;  %v4574_v13 = vor.u32 %v4973_v10, %v4972_v0  ;;  %v4976_v29 = vld [vmem:[#allocation49_spill] sm:$0xff]  ;;  %v4977_v15 = vld [vmem:[#allocation46_spill] sm:$0xff]  ;;  %v4978_v16 = vld [vmem:[#allocation40_spill] sm:$0xff]  ;;  %s1996_s29 = scalar_lea.vmem [#allocation3], %s3436_s0  ;;  %s3439_s11 = sshll.u32 %s2288_s10, 5 }
 0x58f   : > { %2202 = vmatpush.bf16.msra.mxu3 %v4564_v11  ;;  %v4584_v21 = vor.u32 %v4976_v29, %v4975_v9  ;;  %v3214_v0 = vor.u32 %v4977_v15, %v4497_v54  ;;  %v4979_v4 = vld [vmem:[#allocation44_spill] sm:$0xff]  ;;  %v4980_v2 = vld [vmem:[#allocation43_spill] sm:$0xff]  ;;  %v4982_v20 = vld [vmem:[#allocation42_spill] sm:$0xff]  ;;  %s2292_s12 = scalar_lea.vmem [#allocation3], %s3439_s11  ;;  %p1987_p2 = scmp.ge.s32.totalorder %s1990_s4, 4  }
 0x590   : > { %v3190_v9 = vor.u32 %v4979_v4, %v4978_v16  ;;  %v4981_v31 = vld [vmem:[#allocation39_spill] sm:$0xff]  ;;  %v3198_v17 = vor.u32 %v4489_v49, %v4982_v20  ;;  %v4983_v5 = vld [vmem:[#allocation45_spill] sm:$0xff]  ;;  %v4987_v33 = vld [vmem:[#allocation34_spill] sm:$0xff] }
 0x591   : > { %2177 = vmatpush.bf16.msra.mxu1 %v4574_v13  ;;  %2190 = vmatpush.bf16.msra.mxu2 %v4579_v12  ;;  %v3194_v10 = vor.u32 %v4981_v31, %v4980_v2  ;;  %v4984_v38 = vld [vmem:[#allocation41_spill] sm:$0xff]  ;;  %v4985_v3 = vld [vmem:[#allocation35_spill] sm:$0xff]  ;;  %v3178_v29 = vor.u32 %v4987_v33, %v4463_v55  ;;  %v3182_v2 = vor.u32 %v4469_v60, %v4461_v51  ;;  %v4988_v7 = vld [vmem:[#allocation38_spill] sm:$0xff] }
 0x592   : > { %2164 = vmatpush.bf16.msra.mxu0 %v4570_v62  ;;  %v3202_v15 = vor.u32 %v4984_v38, %v4983_v5  ;;  %v4986_v14 = vld [vmem:[#allocation37_spill] sm:$0xff]  ;;  %v4989_v36 = vld [vmem:[#allocation36_spill] sm:$0xff]  ;;  %v4990_v26 = vld [vmem:[#allocation27_spill] sm:$0xff] }
 0x593   : > { %2203 = vmatpush.bf16.msra.mxu3 %v4584_v21  ;;  %v3174_v23 = vor.u32 %v4986_v14, %v4985_v3  ;;  %v3186_v4 = vor.u32 %v4989_v36, %v4988_v7  ;;  %v4991_v1 = vld [vmem:[#allocation31_spill] sm:$0xff]  ;;  %v4992_v27 = vld [vmem:[#allocation30_spill] sm:$0xff]  ;;  %v4994_v18 = vld [vmem:[#allocation29_spill] sm:$0xff] }
 0x594   : > { %v3158_v5 = vor.u32 %v4991_v1, %v4990_v26  ;;  %v4993_v19 = vld [vmem:[#allocation26_spill] sm:$0xff]  ;;  %v4995_v34 = vld [vmem:[#allocation33_spill] sm:$0xff]  ;;  %v4996_v25 = vld [vmem:[#allocation32_spill] sm:$0xff] }
 0x595   : > { %2178 = vmatpush.bf16.msra.mxu1 %v4594_v22  ;;  %2191 = vmatpush.bf16.msra.mxu2 %v3214_v0  ;;  %v3162_v16 = vor.u32 %v4993_v19, %v4992_v27  ;;  %v3166_v3 = vor.u32 %v4995_v34, %v4994_v18  ;;  %v4997_v32 = vld [vmem:[#allocation28_spill] sm:$0xff]  ;;  %v4998_v8 = vld [vmem:[#allocation23_spill] sm:$0xff]  ;;  %v4999_v24 = vld [vmem:[#allocation22_spill] sm:$0xff] }
 0x596   : > { %2165 = vmatpush.bf16.msra.mxu0 %v4590_v40  ;;  %v3170_v14 = vor.u32 %v4997_v32, %v4996_v25  ;;  %v3142_v7 = vor.u32 %v4998_v8, %v4421_v58  ;;  %v3146_v20 = vor.u32 %v4419_v47, %v4999_v24  ;;  %v5000_v28 = vld [vmem:[#allocation25_spill] sm:$0xff]  ;;  %v5001_v19 = vld [vmem:[#allocation24_spill] sm:$0xff]  ;;  %v5003_v27 = vld [vmem:[#allocation14_spill] sm:$0xff] }
 0x597   : > { %2204 = vmatpush.bf16.msra.mxu3 %v3218_v6  ;;  %v3150_v1 = vor.u32 %v5000_v28, %v4425_v63  ;;  %v5002_v26 = vld [vmem:[#allocation21_spill] sm:$0xff]  ;;  %v5004_v25 = vld [vmem:[#allocation18_spill] sm:$0xff]  ;;  %v5007_v34 = vld [vmem:[#allocation16_spill] sm:$0xff] }
 0x598   : > { %v3154_v18 = vor.u32 %v5002_v26, %v5001_v19  ;;  %v3126_v30 = vor.u32 %v5004_v25, %v5003_v27  ;;  %v5005_v31 = vld [vmem:[#allocation17_spill] sm:$0xff]  ;;  %v2001_v8 = vld [vmem:[#allocation4] sm:$0xff]  ;;  %v5008_v24 = vld [vmem:[#allocation20_spill] sm:$0xff] }
 0x599   : > { %2179 = vmatpush.bf16.msra.mxu1 %v3194_v10  ;;  %2192 = vmatpush.bf16.msra.mxu2 %v3198_v17  ;;  %v5006_v32 = vld [vmem:[#allocation13_spill] sm:$0xff]  ;;  %v3134_v35 = vor.u32 %v5008_v24, %v5007_v34  ;;  %v5009_v36 = vld [vmem:[#allocation19_spill] sm:$0xff]  ;;  %v2002_v39 = vpack.c.bf16 %v2001_v8, %v2001_v8  ;;  %v3568_v41 = vld [vmem:[%s4738_s6] ss:$0 sm:$0xff] (%p1987_p2) }
 0x59a   : > { %2166 = vmatpush.bf16.msra.mxu0 %v3190_v9  ;;  %v3130_v33 = vor.u32 %v5006_v32, %v5005_v31  ;;  %v5010_v28 = vld [vmem:[#allocation15_spill] sm:$0xff]  ;;  %v2466_v56 = vld [vmem:[%s4739_s7 + $0x18] sm:$0xff] (%p1987_p2)  ;;  %v2432_v61 = vld [vmem:[%s4737_s5 + $0x50] sm:$0xff] (%p1987_p2) }
 0x59b   : > { %2205 = vmatpush.bf16.msra.mxu3 %v3202_v15  ;;  %v3138_v38 = vor.u32 %v5010_v28, %v5009_v36  ;;  %v1998_v24 = vld [vmem:[%s1996_s29 + $0x8] sm:$0xff]  ;;  %v2433_v57 = vld [vmem:[%s4737_s5 + $0x58] sm:$0xff] (%p1987_p2)  ;;  %v2430_v46 = vld [vmem:[%s4737_s5 + $0x40] sm:$0xff] (%p1987_p2) }
 0x59c   :  { %v2431_v44 = vld [vmem:[%s4737_s5 + $0x48] sm:$0xff] (%p1987_p2)  ;;  %v2429_v47 = vld [vmem:[%s4737_s5 + $0x38] sm:$0xff] (%p1987_p2)  ;;  %v2428_v58 = vld [vmem:[%s4737_s5 + $0x30] sm:$0xff] (%p1987_p2) }
 0x59d   : > { %2180 = vmatpush.bf16.msra.mxu1 %v3178_v29  ;;  %2193 = vmatpush.bf16.msra.mxu2 %v3182_v2  ;;  %v2427_v63 = vld [vmem:[%s4737_s5 + $0x28] sm:$0xff] (%p1987_p2)  ;;  %v2426_v51 = vld [vmem:[%s4737_s5 + $0x20] sm:$0xff] (%p1987_p2)  ;;  %v2425_v55 = vld [vmem:[%s4737_s5 + $0x18] sm:$0xff] (%p1987_p2) }
 0x59e   : > { %2167 = vmatpush.bf16.msra.mxu0 %v3174_v23  ;;  %v2424_v60 = vld [vmem:[%s4737_s5 + $0x10] sm:$0xff] (%p1987_p2)  ;;  %v2423_v49 = vld [vmem:[%s4737_s5 + $0x8] sm:$0xff] (%p1987_p2)  ;;  %v2422_v50 = vld [vmem:[%s4737_s5] sm:$0xff] (%p1987_p2) }
 0x59f   : > { %2206 = vmatpush.bf16.msra.mxu3 %v3186_v4  ;;  %v2465_v53 = vld [vmem:[%s4739_s7 + $0x10] sm:$0xff] (%p1987_p2)  ;;  %v2464_v54 = vld [vmem:[%s4739_s7 + $0x8] sm:$0xff] (%p1987_p2)  ;;  %v2463_v48 = vld [vmem:[%s4739_s7] sm:$0xff] (%p1987_p2) }
 0x5a1   : > { %2181 = vmatpush.bf16.msra.mxu1 %v3162_v16  ;;  %2194 = vmatpush.bf16.msra.mxu2 %v3166_v3 }
 0x5a2   : > { %2168 = vmatpush.bf16.msra.mxu0 %v3158_v5 }
 0x5a3   : > { %2207 = vmatpush.bf16.msra.mxu3 %v3170_v14 }
 0x5a5   : > { %2182 = vmatpush.bf16.msra.mxu1 %v3146_v20  ;;  %2195 = vmatpush.bf16.msra.mxu2 %v3150_v1 }
 0x5a6   : > { %2169 = vmatpush.bf16.msra.mxu0 %v3142_v7 }
 0x5a7   : > { %2208 = vmatpush.bf16.msra.mxu3 %v3154_v18 }
 0x5a9   : > { %2183 = vmatpush.bf16.msra.mxu1 %v3130_v33  ;;  %2196 = vmatpush.bf16.msra.mxu2 %v3134_v35 }
 0x5aa   : > { %2170 = vmatpush.bf16.msra.mxu0 %v3126_v30 }
 0x5ab   : > { %2209 = vmatpush.bf16.msra.mxu3 %v3138_v38 }
 0x5ac   : > { %2184 = vmatmul.bf16.vlgmr.msra.gmra.mxu1 %v2002_v39  ;;  %2197 = vmatmul.bf16.vlgmr.msra.gmra.mxu2 %v2002_v39 }
 0x5ad   : > { %2312 = vmatpush.bf16.msrb.mxu1 %v4556_v45  ;;  %2171 = vmatmul.bf16.vlgmr.msra.gmra.mxu0 %v2002_v39 }
 0x5ae   : > { %2299 = vmatpush.bf16.msrb.mxu0 %v4552_v59  ;;  %2210 = vmatmul.bf16.vlgmr.msra.gmra.mxu3 %v2002_v39  ;;  %v1997_v39 = vld [vmem:[%s1996_s29] sm:$0xff] }
 0x5af   : > { %2325 = vmatpush.bf16.msrb.mxu2 %v4560_v37  ;;  %2338 = vmatpush.bf16.msrb.mxu3 %v4564_v11 }
 0x5b1   : > { %2313 = vmatpush.bf16.msrb.mxu1 %v4574_v13 }
 0x5b2   : > { %2300 = vmatpush.bf16.msrb.mxu0 %v4570_v62 }
 0x5b3   : > { %2326 = vmatpush.bf16.msrb.mxu2 %v4579_v12  ;;  %2339 = vmatpush.bf16.msrb.mxu3 %v4584_v21 }
 0x5b5   : > { %2314 = vmatpush.bf16.msrb.mxu1 %v4594_v22 }
 0x5b6   : > { %2301 = vmatpush.bf16.msrb.mxu0 %v4590_v40 }
 0x5b7   : > { %2327 = vmatpush.bf16.msrb.mxu2 %v3214_v0  ;;  %2340 = vmatpush.bf16.msrb.mxu3 %v3218_v6 }
 0x5b9   : > { %2315 = vmatpush.bf16.msrb.mxu1 %v3194_v10 }
 0x5ba   : > { %2302 = vmatpush.bf16.msrb.mxu0 %v3190_v9 }
 0x5bb   : > { %2328 = vmatpush.bf16.msrb.mxu2 %v3198_v17  ;;  %2341 = vmatpush.bf16.msrb.mxu3 %v3202_v15 }
 0x5bd   : > { %2316 = vmatpush.bf16.msrb.mxu1 %v3178_v29 }
 0x5be   : > { %2303 = vmatpush.bf16.msrb.mxu0 %v3174_v23 }
 0x5bf   : > { %2329 = vmatpush.bf16.msrb.mxu2 %v3182_v2  ;;  %2342 = vmatpush.bf16.msrb.mxu3 %v3186_v4 }
 0x5c1   : > { %2317 = vmatpush.bf16.msrb.mxu1 %v3162_v16 }
 0x5c2   : > { %2304 = vmatpush.bf16.msrb.mxu0 %v3158_v5 }
 0x5c3   : > { %2330 = vmatpush.bf16.msrb.mxu2 %v3166_v3  ;;  %2343 = vmatpush.bf16.msrb.mxu3 %v3170_v14 }
 0x5c5   : > { %2318 = vmatpush.bf16.msrb.mxu1 %v3146_v20 }
 0x5c6   : > { %2305 = vmatpush.bf16.msrb.mxu0 %v3142_v7 }
 0x5c7   : > { %2331 = vmatpush.bf16.msrb.mxu2 %v3150_v1  ;;  %2344 = vmatpush.bf16.msrb.mxu3 %v3154_v18  ;;  %v1999_v1 = vld [vmem:[%s1996_s29 + $0x10] sm:$0xff] }
 0x5c9   : > { %2319 = vmatpush.bf16.msrb.mxu1 %v3130_v33 }
 0x5ca   : > { %2306 = vmatpush.bf16.msrb.mxu0 %v3126_v30 }
 0x5cb   : > { %2332 = vmatpush.bf16.msrb.mxu2 %v3134_v35  ;;  %2345 = vmatpush.bf16.msrb.mxu3 %v3138_v38  ;;  %v2000_v38 = vld [vmem:[%s1996_s29 + $0x18] sm:$0xff] }
 0x5cd   :  { %2487 = vmatpush.msra.mxu1 (%p1987_p2), %v2466_v56 }
 0x5cf   :  { %2488 = vmatpush.msra.mxu1 (%p1987_p2), %v2465_v53 }
 0x5d1   :  { %2489 = vmatpush.msra.mxu1 (%p1987_p2), %v2464_v54 }
 0x5d3   :  { %2490 = vmatpush.msra.mxu1 (%p1987_p2), %v2463_v48 }
 0x629   : > { %v2185_v28 = vpop.f32.mrf.mxu1 }
 0x62a   : > { %v2172_v8 = vpop.f32.mrf.mxu0  ;;  %v2216_v26 = vadd.f32 %v2185_v28, %v1998_v24  ;;  %v2277_v24 = vld [vmem:[#allocation5] sm:$0xff] }
 0x62b   : > { %v2215_v19 = vadd.f32 %v2172_v8, %v1997_v39 }
 0x62c   : > { %v3252_v27 = vmul.f32 -1.442695, %v2216_v26 }
 0x62d   : > { %v3251_v32 = vmul.f32 -1.442695, %v2215_v19 }
 0x62f   : > { %3536 = vpow2.f32 %v3251_v32  ;;  %v2198_v18 = vpop.f32.mrf.mxu2 }
 0x630   : > { %3538 = vpow2.f32 %v3252_v27  ;;  %v2217_v34 = vadd.f32 %v2198_v18, %v1999_v1 }
 0x631   : > { %v2211_v25 = vpop.f32.mrf.mxu3  ;;  %v2187_v3 = vpop.f32.mrf.mxu1 }
 0x632   : > { %v2174_v33 = vpop.f32.mrf.mxu0  ;;  %v3253_v36 = vmul.f32 -1.442695, %v2217_v34  ;;  %v2218_v5 = vadd.f32 %v2211_v25, %v2000_v38  ;;  %v2293_v38 = vld [vmem:[%s2292_s12] sm:$0xff] }
 0x634   : > { %3540 = vpow2.f32 %v3253_v36 }
 0x635   : > { %v3537_v14 = vpop.eup %3536 }
 0x636   : > { %v3539_v7 = vpop.eup %3538  ;;  %v2228_v31 = vadd.f32 1.0, %v3537_v14 }
 0x637   : > { %v2229_v16 = vadd.f32 1.0, %v3539_v7  ;;  %v2200_v20 = vpop.f32.mrf.mxu2 }
 0x638   : > { %3542 = vrcp.f32 %v2228_v31  ;;  %v2242_v9 = vand.u32 2147483648, %v2228_v31  ;;  %v2240_v59 = vand.u32 2147483647, %v2228_v31  ;;  %vm2236_vm3 = vweird.f32 %v2228_v31  ;;  %v2294_v20 = vld [vmem:[%s2292_s12 + $0x8] sm:$0xff] }
 0x639   : > { %3544 = vrcp.f32 %v2229_v16  ;;  %v2213_v2 = vpop.f32.mrf.mxu3  ;;  %v2257_v35 = vand.u32 2147483648, %v2229_v16  ;;  %v2255_v37 = vand.u32 2147483647, %v2229_v16  ;;  %vm2251_vm4 = vweird.f32 %v2229_v16 }
 0x63a   : > { %v3541_v4 = vpop.eup %3540  ;;  %v2243_v21 = vor.u32 1.1754944e-38, %v2242_v9  ;;  %vm2241_vm7 = vcmp.eq.f32.partialorder %v2240_v59, 8.507059e+37 }
 0x63b   : > { %v2230_v15 = vadd.f32 1.0, %v3541_v4  ;;  %v2258_v22 = vor.u32 1.1754944e-38, %v2257_v35  ;;  %vm2256_vm8 = vcmp.eq.f32.partialorder %v2255_v37, 8.507059e+37 }
 0x63d   : > { %3546 = vrcp.f32 %v2230_v15  ;;  %v2272_v34 = vand.u32 2147483648, %v2230_v15  ;;  %vm2266_vm10 = vweird.f32 %v2230_v15  ;;  %v2270_v33 = vand.u32 2147483647, %v2230_v15 }
 0x63e   : > { %v3543_v10 = vpop.eup %3542  ;;  %3548 = vtanh.f32 %v2218_v5 }
 0x63f   : > { %v3545_v30 = vpop.eup %3544  ;;  %v2232_v29 = vmul.f32 %v3543_v10, %v2228_v31  ;;  %vm2237_vm1 = vweird.f32 %v3543_v10  ;;  %v2273_v36 = vor.u32 1.1754944e-38, %v2272_v34  ;;  %vm2271_vm12 = vcmp.eq.f32.partialorder %v2270_v33, 8.507059e+37 }
 0x640   : > { %v2247_v6 = vmul.f32 %v3545_v30, %v2229_v16  ;;  %vm2252_vm2 = vweird.f32 %v3545_v30  ;;  %vm2238_vm5 = vmor %vm2236_vm3, %vm2237_vm1 }
 0x641   : > { %v2233_v0 = vsub.f32 1.0, %v2232_v29  ;;  %vm2253_vm6 = vmor %vm2251_vm4, %vm2252_vm2  ;;  %v2295_v29 = vld [vmem:[%s2292_s12 + $0x10] sm:$0xff] }
 0x642   : > { %v2248_v17 = vsub.f32 1.0, %v2247_v6 }
 0x643   : > { %v2234_v23 = vmul.f32 %v3543_v10, %v2233_v0  ;;  %v3547_v11 = vpop.eup %3546 }
 0x644   : > { %v2249_v45 = vmul.f32 %v3545_v30, %v2248_v17  ;;  %v3549_v13 = vpop.eup %3548  ;;  %v2262_v12 = vmul.f32 %v3547_v11, %v2230_v15  ;;  %vm2267_vm9 = vweird.f32 %v3547_v11 }
 0x645   : > { %v2235_v62 = vadd.f32 %v3543_v10, %v2234_v23  ;;  %vm2268_vm11 = vmor %vm2266_vm10, %vm2267_vm9  ;;  %vm2471_vm9 = vcmask (%p1987_p2), 261120   ;;  %vm2495_vm10 = vcmask (%p1987_p2), 7168  }
 0x646   : > { %v2250_v40 = vadd.f32 %v3545_v30, %v2249_v45  ;;  %v2263_v8 = vsub.f32 1.0, %v2262_v12  ;;  %v2296_v12 = vld [vmem:[%s2292_s12 + $0x18] sm:$0xff] }
 0x647   : > { %v2239_v39 = vsel %vm2238_vm5, %v3543_v10, %v2235_v62 }
 0x648   : > { %v2244_v28 = vsel %vm2241_vm7, %v2243_v21, %v2239_v39  ;;  %v2254_v19 = vsel %vm2253_vm6, %v3545_v30, %v2250_v40  ;;  %v2264_v27 = vmul.f32 %v3547_v11, %v2263_v8 }
 0x649   : > { %v2259_v26 = vsel %vm2256_vm8, %v2258_v22, %v2254_v19  ;;  %v2279_v32 = vmul.f32 %v3549_v13, %v2244_v28 }
 0x64a   : > { %v2278_v1 = vmul.f32 %v2277_v24, %v2259_v26  ;;  %v2265_v25 = vadd.f32 %v3547_v11, %v2264_v27 }
 0x64c   : > { %v4657_v18 = vadd.f32 %v2279_v32, %v2278_v1  ;;  %v2269_v3 = vsel %vm2268_vm11, %v3547_v11, %v2265_v25 }
 0x64d   : > { %v2274_v7 = vsel %vm2271_vm12, %v2273_v36, %v2269_v3 }
 0x64e   : > { %3550 = vtanh.f32 %v4657_v18 }
 0x654   : > { %v3551_v14 = vpop.eup %3550 }
 0x655   : > { %v2282_v31 = vmul.f32 %v3551_v14, %v2274_v7 }
 0x657   : > { %v2298_v16 = vpack.c.bf16 %v2282_v31, %v2282_v31 }
 0x659   : > { %2307 = vmatmul.bf16.vlgmr.msrb.gmra.mxu0 %v2298_v16  ;;  %2320 = vmatmul.bf16.vlgmr.msrb.gmra.mxu1 %v2298_v16 }
 0x65a   : > { %2333 = vmatmul.bf16.vlgmr.msrb.gmra.mxu2 %v2298_v16  ;;  %2346 = vmatmul.bf16.vlgmr.msrb.gmra.mxu3 %v2298_v16 }
 0x6d6   : > { %v2308_v2 = vpop.f32.mrf.mxu0  ;;  %v2321_v4 = vpop.f32.mrf.mxu1 }
 0x6d7   : > { %v2351_v5 = vadd.f32 %v2308_v2, %v2293_v38  ;;  %v2352_v15 = vadd.f32 %v2321_v4, %v2294_v20 }
 0x6d9   : > { %v3258_v10 = vmul.f32 -1.442695, %v2351_v5  ;;  %v3259_v30 = vmul.f32 -1.442695, %v2352_v15 }
 0x6db   : > { %3552 = vpow2.f32 %v3258_v10 }
 0x6dc   : > { %3554 = vpow2.f32 %v3259_v30 }
 0x6dd   : > { %v2334_v6 = vpop.f32.mrf.mxu2  ;;  %v2347_v0 = vpop.f32.mrf.mxu3 }
 0x6de   : > { %v2353_v17 = vadd.f32 %v2334_v6, %v2295_v29  ;;  %v2310_v9 = vpop.f32.mrf.mxu0  ;;  %v2323_v35 = vpop.f32.mrf.mxu1  ;;  %v2354_v39 = vadd.f32 %v2347_v0, %v2296_v12 }
 0x6e0   : > { %v3260_v23 = vmul.f32 -1.442695, %v2353_v17 }
 0x6e1   : > { %v3553_v59 = vpop.eup %3552 }
 0x6e2   : > { %v3555_v45 = vpop.eup %3554  ;;  %v2364_v37 = vadd.f32 1.0, %v3553_v59  ;;  %3556 = vpow2.f32 %v3260_v23 }
 0x6e3   : > { %v2365_v11 = vadd.f32 1.0, %v3555_v45 }
 0x6e4   : > { %3558 = vrcp.f32 %v2364_v37  ;;  %v2378_v32 = vand.u32 2147483648, %v2364_v37  ;;  %v2376_v25 = vand.u32 2147483647, %v2364_v37  ;;  %vm2372_vm15 = vweird.f32 %v2364_v37 }
 0x6e5   : > { %3560 = vrcp.f32 %v2365_v11  ;;  %v2336_v62 = vpop.f32.mrf.mxu2  ;;  %v2349_v13 = vpop.f32.mrf.mxu3  ;;  %v2393_v27 = vand.u32 2147483648, %v2365_v11  ;;  %v2391_v33 = vand.u32 2147483647, %v2365_v11  ;;  %vm2387_vm0 = vweird.f32 %v2365_v11 }
 0x6e6   : > { %v2379_v7 = vor.u32 1.1754944e-38, %v2378_v32  ;;  %vm2377_vm3 = vcmp.eq.f32.partialorder %v2376_v25, 8.507059e+37  ;;  %v2435_v62 = vld [vmem:[%s4737_s5 + $0x68] sm:$0xff] (%p1987_p2)  ;;  %v2434_v13 = vld [vmem:[%s4737_s5 + $0x60] sm:$0xff] (%p1987_p2) }
 0x6e7   : > { %v2394_v16 = vor.u32 1.1754944e-38, %v2393_v27  ;;  %vm2392_vm4 = vcmp.eq.f32.partialorder %v2391_v33, 8.507059e+37 }
 0x6e8   : > { %v3557_v21 = vpop.eup %3556 }
 0x6e9   : > { %v2366_v40 = vadd.f32 1.0, %v3557_v21  ;;  %v3569_v21 = vld [vmem:[#allocation6] ss:$0 sm:$0xff] (%p1987_p2) }
 0x6ea   : > { %v3559_v22 = vpop.eup %3558 }
 0x6eb   : > { %v3561_v24 = vpop.eup %3560  ;;  %v2368_v8 = vmul.f32 %v3559_v22, %v2364_v37  ;;  %3562 = vrcp.f32 %v2366_v40  ;;  %vm2373_vm13 = vweird.f32 %v3559_v22  ;;  %v2408_v17 = vand.u32 2147483648, %v2366_v40 }
 0x6ec   : > { %v2383_v28 = vmul.f32 %v3561_v24, %v2365_v11  ;;  %3564 = vtanh.f32 %v2354_v39  ;;  %vm2388_vm14 = vweird.f32 %v3561_v24  ;;  %vm2374_vm1 = vmor %vm2372_vm15, %vm2373_vm13  ;;  %vm2402_vm6 = vweird.f32 %v2366_v40  ;;  %v2436_v11 = vld [vmem:[%s4737_s5 + $0x70] sm:$0xff] (%p1987_p2) }
 0x6ed   : > { %v2369_v19 = vsub.f32 1.0, %v2368_v8  ;;  %vm2389_vm2 = vmor %vm2387_vm0, %vm2388_vm14  ;;  %v2406_v9 = vand.u32 2147483647, %v2366_v40  ;;  %v2409_v23 = vor.u32 1.1754944e-38, %v2408_v17 }
 0x6ee   : > { %v2384_v26 = vsub.f32 1.0, %v2383_v28 }
 0x6ef   : > { %v2370_v1 = vmul.f32 %v3559_v22, %v2369_v19  ;;  %vm2407_vm8 = vcmp.eq.f32.partialorder %v2406_v9, 8.507059e+37 }
 0x6f0   : > { %v2385_v34 = vmul.f32 %v3561_v24, %v2384_v26 }
 0x6f1   : > { %v3563_v3 = vpop.eup %3562  ;;  %v2371_v36 = vadd.f32 %v3559_v22, %v2370_v1 }
 0x6f2   : > { %v2398_v14 = vmul.f32 %v3563_v3, %v2366_v40  ;;  %v2386_v31 = vadd.f32 %v3561_v24, %v2385_v34  ;;  %v3565_v20 = vpop.eup %3564  ;;  %vm2403_vm5 = vweird.f32 %v3563_v3 }
 0x6f3   : > { %v2375_v38 = vsel %vm2374_vm1, %v3559_v22, %v2371_v36  ;;  %vm2404_vm7 = vmor %vm2402_vm6, %vm2403_vm5 }
 0x6f4   : > { %v2399_v2 = vsub.f32 1.0, %v2398_v14  ;;  %v2380_v4 = vsel %vm2377_vm3, %v2379_v7, %v2375_v38  ;;  %v2390_v5 = vsel %vm2389_vm2, %v3561_v24, %v2386_v31 }
 0x6f5   : > { %v2395_v15 = vsel %vm2392_vm4, %v2394_v16, %v2390_v5  ;;  %v2415_v10 = vmul.f32 %v3565_v20, %v2380_v4 }
 0x6f6   : > { %v2400_v30 = vmul.f32 %v3563_v3, %v2399_v2  ;;  %v2414_v29 = vmul.f32 %v2395_v15, %v4657_v18  ;;  %v2437_v18 = vld [vmem:[%s4737_s5 + $0x78] sm:$0xff] (%p1987_p2) }
 0x6f7   :  { %2442 = vmatpush.msra.mxu0 (%p1987_p2), %v2437_v18 }
 0x6f8   : > { %v2416_v6 = vadd.f32 %v2415_v10, %v2414_v29  ;;  %v2401_v0 = vadd.f32 %v3563_v3, %v2400_v30 }
 0x6f9   :  { %2443 = vmatpush.msra.mxu0 (%p1987_p2), %v2436_v11 }
 0x6fa   : > { %3566 = vtanh.f32 %v2416_v6  ;;  %2419 = vst [vmem:[#allocation5] sm:$0xff] %v2416_v6  ;;  %v2405_v35 = vsel %vm2404_vm7, %v3563_v3, %v2401_v0 }
 0x6fb   : > { %v2410_v45 = vsel %vm2407_vm8, %v2409_v23, %v2405_v35  ;;  %2444 = vmatpush.msra.mxu0 (%p1987_p2), %v2435_v62 }
 0x6fd   :  { %2445 = vmatpush.msra.mxu0 (%p1987_p2), %v2434_v13 }
 0x6ff   :  { %1989 = sbr.rel (!%p1987_p2) target bundleno = 1419 (0x58b), region = 122  ;;  %2446 = vmatpush.msra.mxu0 (%p1987_p2), %v2433_v57 }
 0x700   : > { %v3567_v59 = vpop.eup %3566 }
 0x701   : > { %v2418_v37 = vmul.f32 %v3567_v59, %v2410_v45  ;;  %2447 = vmatpush.msra.mxu0 (%p1987_p2), %v2432_v61 }
 0x703   : > { %2420 = vst [vmem:[#allocation4] sm:$0xff] %v2418_v37  ;;  %2448 = vmatpush.msra.mxu0 (%p1987_p2), %v2431_v44 }
 0x705   :  { %2449 = vmatpush.msra.mxu0 %v2430_v46 }
 0x707   :  { %2450 = vmatpush.msra.mxu0 %v2429_v47 }
 0x709   :  { %2451 = vmatpush.msra.mxu0 %v2428_v58 }
 0x70a   :  { %v2421_v52 = vld [vmem:[#allocation4] sm:$0xff] }
 0x70b   :  { %2452 = vmatpush.msra.mxu0 %v2427_v63 }
 0x70d   :  { %2453 = vmatpush.msra.mxu0 %v2426_v51 }
 0x70f   :  { %2454 = vmatpush.msra.mxu0 %v2425_v55 }
 0x711   :  { %2455 = vmatpush.msra.mxu0 %v2424_v60 }
 0x713   :  { %2456 = vmatpush.msra.mxu0 %v2423_v49 }
 0x715   :  { %2457 = vmatpush.msra.mxu0 %v2422_v50 }
 0x716   :  { %2458 = vmatmul.f32.vlgmr.msra.gmra.mxu0 %v2421_v52 }
 0x793   :  { %v2459_v43 = vpop.f32.mrf.mxu0 }
 0x794   :  { %v2460_v42 = vadd.f32 %v3568_v41, %v2459_v43 }
 0x796   :  { %v2462_v12 = vmax.f32 %v2460_v42, 0.0 }
 0x798   :  { %3261 = vmatmul.msk.f32.vlgmr.msra.gmra.mxu1 %vm2471_vm9, %v2462_v12 }
 0x815   :  { %v2492_v40 = vpop.f32.mrf.mxu1 }
 0x816   :  { %v2493_v22 = vadd.f32 %v3569_v21, %v2492_v40 }
 0x818   :  { %2496 = vst.msk [vmem:[%s4741_s9] sm:$0xff] %vm2495_vm10, %v2493_v22 }
 0x819   :  { %2501 = vsyncpa [#allocation8], 1 }
 0x81a   :  { %2502 = vsyncpa [#allocation10], 1 }

</bundles_post_ra>
